<compile_context>
chip_gen: v5e
topology: v5e:2x2
jax: 0.10.0
libtpu: 0.0.40
codegen_flags: <defaults>
</compile_context>

<pallas_src>
import math

import jax
import jax.numpy as jnp
from jax import lax
from jax.experimental import pallas as pl
from jax.experimental.pallas import tpu as pltpu

# ---- model / problem sizes (small, consistent with the module) --------------
ODIM = 16          # vocab size
D = 128            # attention_dim
H = 4              # attention_heads
HEAD_DIM = D // H
FF = 256           # linear_units
NUM_BLOCKS = 2     # => 1 ExtractDecoderLayer + 1 NoForwardDecoderLayer per stream
B = 2              # batch
L = 8              # decoder (tgt) length
T = 8              # encoder (memory) length
EPS = 1e-12        # ESPnet LayerNorm eps

NE = NUM_BLOCKS - 1          # ExtractDecoderLayers per stream
NSELF = NE + 1               # self-attention blocks per stream
NCROSS = NE + 1              # src-attention blocks per stream
PROJ = 6 * D                 # fused self-attn projection [Wq | Wk | Wvo_0..H-1]
CKV = 5 * D                  # per-src-attn fused [Wk | Wvo_0..H-1]
OUT_PAD = 128                # lane-dense padded output width (>= ODIM)
NEG = -1e30                  # additive-mask "drop" value
BL = B * L
BT = B * T
VMEM_LIMIT = 32 * 1024 * 1024


def _is_v7x():
    # v7x has 2 TensorCores/chip -> keep the two-call structure with a parallel stream grid.
    try:
        for d in jax.devices():
            kind = str(getattr(d, "device_kind", "")).lower()
            if "v7" in kind or "7x" in kind:
                return True
    except Exception:
        pass
    return False


SPLIT_STREAMS = _is_v7x()


# =============================== kernel bodies ================================

def _layer_norm(v):
    # Affine (gamma/beta) is folded into the following projection weights at init time.
    m = jnp.mean(v, axis=-1, keepdims=True)
    c = v - m
    var = jnp.mean(c * c, axis=-1, keepdims=True)
    return c * lax.rsqrt(var + EPS)


def _mha(q_bf, kv_bf, amask, bo):
    """Multi-head attention, batch folded into rows, heads folded for the PV matmul.

    q_bf:  (R, D)    bf16 projected queries.
    kv_bf: (Rk, 5D)  bf16 = [K | V_0@Wo_0 | ... | V_{H-1}@Wo_{H-1}]  (per-head Wv/Wo folded).
    amask: (R, Rk)   f32 additive mask (0 keep / -1e30 drop), block-diagonal over batch.
    bo:    (1, D)    f32 output-projection bias.
    """
    scale = 1.0 / math.sqrt(HEAD_DIM)
    k_bf = kv_bf[:, :D]
    probs = []
    for h in range(H):                                        # static unroll
        qh = q_bf[:, h * HEAD_DIM:(h + 1) * HEAD_DIM]
        kh = k_bf[:, h * HEAD_DIM:(h + 1) * HEAD_DIM]
        s = lax.dot_general(qh, kh, (((1,), (1,)), ((), ())),
                            preferred_element_type=jnp.float32) * scale + amask
        e = jnp.exp(s)                                        # masked entries -> exp(-1e30) == 0
        denom = jnp.sum(e, axis=-1, keepdims=True)
        # fully-masked rows: denom == 0 -> probabilities stay exactly 0 (ESPnet zeroing)
        p = e * pl.reciprocal(denom + 1e-30, approx=True)
        probs.append(p.astype(jnp.bfloat16))
    p_cat = jnp.concatenate(probs, axis=1)                    # (R, H*Rk)
    v_all = jnp.concatenate(                                  # (H*Rk, D), aligned sublane concat
        [kv_bf[:, (1 + h) * D:(2 + h) * D] for h in range(H)], axis=0)
    ctx = jnp.dot(p_cat, v_all, preferred_element_type=jnp.float32)   # ONE PV matmul for all heads
    return ctx + bo


def _run_stream_stack(x_ref, mem_ref, samask_ref, camask_ref,
                      sw_ref, sb_ref, sbo_ref,
                      cqw_ref, cqb_ref, ckvw_ref, ckvb_ref, cbo_ref,
                      w1_ref, b1_ref, w2_ref, b2_ref):
    """(NUM_BLOCKS-1) ExtractDecoderLayers + 1 NoForwardDecoderLayer for one stream."""
    x2 = x_ref[0]                                             # (B*L, D) f32
    samask = samask_ref[...]                                  # (B*L, B*L) additive
    camask = camask_ref[...]                                  # (B*L, B*T) additive

    # Hoisted, layer-invariant src-attention K/Veff projection of the encoder memory:
    # one wide matmul for all NCROSS blocks, cached in bf16 and sliced per layer.
    mem_bf = mem_ref[0].astype(jnp.bfloat16)                  # (B*T, D)
    memkv = (jnp.dot(mem_bf, ckvw_ref[0], preferred_element_type=jnp.float32)
             + ckvb_ref[0]).astype(jnp.bfloat16)              # (B*T, NCROSS*5D)

    def self_attn(x, idx):
        xn = _layer_norm(x).astype(jnp.bfloat16)
        qkv = (jnp.dot(xn, sw_ref[0, idx], preferred_element_type=jnp.float32)
               + sb_ref[0, idx]).astype(jnp.bfloat16)         # (B*L, 6D) single wide projection
        return x + _mha(qkv[:, :D], qkv[:, D:], samask, sbo_ref[0, idx])

    def src_attn(x, idx):
        xn = _layer_norm(x).astype(jnp.bfloat16)
        q = (jnp.dot(xn, cqw_ref[0, idx], preferred_element_type=jnp.float32)
             + cqb_ref[0, idx]).astype(jnp.bfloat16)          # (B*L, D)
        kv = memkv[:, idx * CKV:(idx + 1) * CKV]              # lane slice at 128-multiples
        return x + _mha(q, kv, camask, cbo_ref[0, idx])

    def ffn(x, idx):
        xn = _layer_norm(x).astype(jnp.bfloat16)
        h1 = jnp.maximum(jnp.dot(xn, w1_ref[0, idx], preferred_element_type=jnp.float32)
                         + b1_ref[0, idx], 0.0)
        return x + (jnp.dot(h1.astype(jnp.bfloat16), w2_ref[0, idx],
                            preferred_element_type=jnp.float32) + b2_ref[0, idx])

    for i in range(NE):                                       # ExtractDecoderLayer(s)
        x2 = self_attn(x2, i)
        x2 = src_attn(x2, i)
        x2 = ffn(x2, i)
    x2 = self_attn(x2, NE)                                    # NoForwardDecoderLayer
    x2 = src_attn(x2, NE)
    return x2


def _epilogue_body(xa, xb, strw_ref, ew1_ref, eb1_ref, ew2_ref, eb2_ref, ow_ref, ob_ref):
    """Sparsemax stream attention + pre-norm FFN + after_norm + lane-dense output linear."""
    # One matmul for all three stream-attention projections (row-concatenated inputs).
    rows = jnp.concatenate([0.5 * (xa + xb), xa, xb], axis=0).astype(jnp.bfloat16)  # (3*B*L, D)
    proj = jnp.dot(rows, strw_ref[...], preferred_element_type=jnp.float32)          # (3*B*L, 3D)
    q = proj[:BL, :D]
    kva = proj[BL:2 * BL, D:]                                 # [Ka | Va]
    kvb = proj[2 * BL:, D:]                                   # [Kb | Vb]
    inv = 1.0 / math.sqrt(D)
    sa = jnp.sum(q * kva[:, :D], axis=-1, keepdims=True) * inv
    sb = jnp.sum(q * kvb[:, :D], axis=-1, keepdims=True) * inv
    pa = jnp.clip(0.5 * (sa - sb) + 0.5, 0.0, 1.0)            # closed-form 2-way sparsemax
    x = pa * kva[:, D:] + (1.0 - pa) * kvb[:, D:]

    xn = _layer_norm(x).astype(jnp.bfloat16)                  # pre-FFN LN (affine folded into ew1/eb1)
    h1 = jnp.maximum(jnp.dot(xn, ew1_ref[...], preferred_element_type=jnp.float32)
                     + eb1_ref[...], 0.0)
    x = x + (jnp.dot(h1.astype(jnp.bfloat16), ew2_ref[...],
                     preferred_element_type=jnp.float32) + eb2_ref[...])
    x = _layer_norm(x).astype(jnp.bfloat16)                   # after_norm (affine folded into ow/ob)
    return jnp.dot(x, ow_ref[...], preferred_element_type=jnp.float32) + ob_ref[...]


# ------------------------------- kernels --------------------------------------

def _merged_kernel(x_ref, mem_ref, samask_ref, camask_ref,
                   sw_ref, sb_ref, sbo_ref,
                   cqw_ref, cqb_ref, ckvw_ref, ckvb_ref, cbo_ref,
                   w1_ref, b1_ref, w2_ref, b2_ref,
                   strw_ref, ew1_ref, eb1_ref, ew2_ref, eb2_ref, ow_ref, ob_ref,
                   out_ref, x0_scratch):
    """Single-call path (v5e/v6e): serial grid over the 2 streams + fused epilogue."""
    s = pl.program_id(0)
    x2 = _run_stream_stack(x_ref, mem_ref, samask_ref, camask_ref,
                           sw_ref, sb_ref, sbo_ref,
                           cqw_ref, cqb_ref, ckvw_ref, ckvb_ref, cbo_ref,
                           w1_ref, b1_ref, w2_ref, b2_ref)

    @pl.when(s == 0)
    def _():
        x0_scratch[...] = x2                                  # keep stream 0 (air) VMEM-resident

    @pl.when(s == pl.num_programs(0) - 1)
    def _():
        out_ref[...] = _epilogue_body(x0_scratch[...], x2, strw_ref, ew1_ref, eb1_ref,
                                      ew2_ref, eb2_ref, ow_ref, ob_ref)


def _stack_kernel(x_ref, mem_ref, samask_ref, camask_ref,
                  sw_ref, sb_ref, sbo_ref,
                  cqw_ref, cqb_ref, ckvw_ref, ckvb_ref, cbo_ref,
                  w1_ref, b1_ref, w2_ref, b2_ref, out_ref):
    """Two-call path (v7x): per-stream stack, one stream per TensorCore."""
    out_ref[0] = _run_stream_stack(x_ref, mem_ref, samask_ref, camask_ref,
                                   sw_ref, sb_ref, sbo_ref,
                                   cqw_ref, cqb_ref, ckvw_ref, ckvb_ref, cbo_ref,
                                   w1_ref, b1_ref, w2_ref, b2_ref)


def _epilogue_kernel(xs_ref, strw_ref, ew1_ref, eb1_ref, ew2_ref, eb2_ref,
                     ow_ref, ob_ref, out_ref):
    out_ref[...] = _epilogue_body(xs_ref[0], xs_ref[1], strw_ref, ew1_ref, eb1_ref,
                                  ew2_ref, eb2_ref, ow_ref, ob_ref)


# ============================ pallas_call wrappers =============================

def _stream_specs():
    smap3 = lambda s: (s, 0, 0)
    smap4 = lambda s: (s, 0, 0, 0)
    const2 = lambda s: (0, 0)
    return [
        pl.BlockSpec((1, BL, D), smap3),                      # stream activations (B*L, D)
        pl.BlockSpec((1, BT, D), smap3),                      # encoder memory
        pl.BlockSpec((BL, BL), const2),                       # additive self mask
        pl.BlockSpec((BL, BT), const2),                       # additive src mask
        pl.BlockSpec((1, NSELF, D, PROJ), smap4),             # fused self-attn [Wq|Wk|Wvo] (bf16)
        pl.BlockSpec((1, NSELF, 1, PROJ), smap4),             # fused self-attn biases
        pl.BlockSpec((1, NSELF, 1, D), smap4),                # self-attn output biases
        pl.BlockSpec((1, NCROSS, D, D), smap4),               # src-attn Q weights (bf16)
        pl.BlockSpec((1, NCROSS, 1, D), smap4),               # src-attn Q biases
        pl.BlockSpec((1, D, NCROSS * CKV), smap3),            # hoisted src-attn [Wk|Wvo] (bf16)
        pl.BlockSpec((1, 1, NCROSS * CKV), smap3),            # hoisted src-attn biases
        pl.BlockSpec((1, NCROSS, 1, D), smap4),               # src-attn output biases
        pl.BlockSpec((1, NE, D, FF), smap4),                  # FFN W1 (bf16)
        pl.BlockSpec((1, NE, 1, FF), smap4),                  # FFN b1
        pl.BlockSpec((1, NE, FF, D), smap4),                  # FFN W2 (bf16)
        pl.BlockSpec((1, NE, 1, D), smap4),                   # FFN b2
    ]


def _stack_args(x, mem, samask, camask, st):
    return (x, mem, samask, camask,
            st["self_w"], st["self_b"], st["self_bo"],
            st["crossq_w"], st["crossq_b"], st["crosskv_w"], st["crosskv_b"], st["cross_bo"],
            st["ffn_w1"], st["ffn_b1"], st["ffn_w2"], st["ffn_b2"])


def _forward_merged(x, mem, samask, camask, st, p):
    const2 = lambda s: (0, 0)
    ep_specs = [
        pl.BlockSpec((D, 3 * D), const2),                     # stream-attention [Wq|Wk|Wv] (bf16)
        pl.BlockSpec((D, FF), const2),                        # stream FFN W1 (bf16)
        pl.BlockSpec((1, FF), const2),
        pl.BlockSpec((FF, D), const2),                        # stream FFN W2 (bf16)
        pl.BlockSpec((1, D), const2),
        pl.BlockSpec((D, OUT_PAD), const2),                   # output linear (bf16, lane-dense)
        pl.BlockSpec((1, OUT_PAD), const2),
    ]
    return pl.pallas_call(
        _merged_kernel,
        grid=(2,),
        in_specs=_stream_specs() + ep_specs,
        out_specs=pl.BlockSpec((BL, OUT_PAD), const2),
        out_shape=jax.ShapeDtypeStruct((BL, OUT_PAD), jnp.float32),
        scratch_shapes=[pltpu.VMEM((BL, D), jnp.float32)],
        compiler_params=pltpu.CompilerParams(
            dimension_semantics=("arbitrary",),               # scratch carries stream 0 across steps
            vmem_limit_bytes=VMEM_LIMIT),
    )(*_stack_args(x, mem, samask, camask, st),
      p["str_w"], p["str_ffn_w1"], p["str_ffn_b1"], p["str_ffn_w2"], p["str_ffn_b2"],
      p["out_w"], p["out_b"])


def _forward_split(x, mem, samask, camask, st, p):
    x_out = pl.pallas_call(
        _stack_kernel,
        grid=(2,),
        in_specs=_stream_specs(),
        out_specs=pl.BlockSpec((1, BL, D), lambda s: (s, 0, 0)),
        out_shape=jax.ShapeDtypeStruct((2, BL, D), jnp.float32),
        compiler_params=pltpu.CompilerParams(
            dimension_semantics=("parallel",),                # v7x: one stream per TensorCore
            vmem_limit_bytes=VMEM_LIMIT),
    )(*_stack_args(x, mem, samask, camask, st))
    return pl.pallas_call(
        _epilogue_kernel,
        out_shape=jax.ShapeDtypeStruct((BL, OUT_PAD), jnp.float32),
        compiler_params=pltpu.CompilerParams(vmem_limit_bytes=VMEM_LIMIT),
    )(x_out, p["str_w"], p["str_ffn_w1"], p["str_ffn_b1"],
      p["str_ffn_w2"], p["str_ffn_b2"], p["out_w"], p["out_b"])


# ============================== forward (JAX glue) =============================

def positional_encoding(length, d_model):
    pos = jnp.arange(length)[:, None].astype(jnp.float32)
    div = jnp.exp(jnp.arange(0, d_model, 2).astype(jnp.float32)
                  * (-math.log(10000.0) / d_model))
    pe = jnp.zeros((length, d_model), jnp.float32)
    pe = pe.at[:, 0::2].set(jnp.sin(pos * div))
    pe = pe.at[:, 1::2].set(jnp.cos(pos * div))
    return pe


def double_decoder_forward(params, tgt, tgt_mask, memory_air, memory_bone,
                           memory_mask, num_encs):
    del num_encs
    b, l = tgt.shape
    t = memory_air.shape[1]

    # Additive, block-diagonal-over-batch attention masks (0 keep / -1e30 drop) for the
    # batch-folded (B*L, D) row layout used inside the kernels.
    causal = jnp.tril(jnp.ones((l, l), jnp.float32))
    self_keep = causal[None] * tgt_mask[:, None, :].astype(jnp.float32)              # (B, L, L)
    src_keep = jnp.broadcast_to(memory_mask[:, None, :].astype(jnp.float32), (b, l, t))
    eye = jnp.eye(b, dtype=jnp.float32)
    self_keep = (eye[:, None, :, None] * self_keep[:, :, None, :]).reshape(b * l, b * l)
    src_keep = (eye[:, None, :, None] * src_keep[:, :, None, :]).reshape(b * l, b * t)
    samask = jnp.where(self_keep > 0.5, 0.0, NEG).astype(jnp.float32)
    camask = jnp.where(src_keep > 0.5, 0.0, NEG).astype(jnp.float32)

    # embedding + ESPnet PositionalEncoding (x * sqrt(d_model) + pe); dropout = identity
    pe = positional_encoding(l, D)[None]
    x_air = jnp.take(params["embed_air"], tgt, axis=0) * math.sqrt(D) + pe
    x_bone = jnp.take(params["embed_bone"], tgt, axis=0) * math.sqrt(D) + pe
    x = jnp.stack([x_air, x_bone], axis=0).reshape(2, b * l, D)      # batch folded into rows
    mem = jnp.stack([memory_air, memory_bone], axis=0).reshape(2, b * t, D)

    # TODO(synk): StreamAttentionDecoderLayer / SparseAttention sources are unavailable; the
    # stream mixing is a closed-form 2-way sparsemax over {air, bone} (v_trans=True), and the
    # per-layer "guide" attention maps are not materialized since nothing consumes them here.
    if SPLIT_STREAMS:
        out = _forward_split(x, mem, samask, camask, params["stack"], params)
    else:
        out = _forward_merged(x, mem, samask, camask, params["stack"], params)

    logits = out[:, :ODIM].reshape(b, l, ODIM)
    return logits, tgt_mask


# =============================== params =======================================

def init_params(key):
    keys = iter(jax.random.split(key, 512))

    def w(shape, scale=0.02):
        return (scale * jax.random.normal(next(keys), shape)).astype(jnp.float32)

    def zeros(shape):
        return jnp.zeros(shape, jnp.float32)

    def ones(shape):
        return jnp.ones(shape, jnp.float32)

    def fold_ln(gamma, beta, W, bias):
        # (n * gamma + beta) @ W + bias == n @ (gamma[:, None] * W) + (beta @ W + bias)
        return gamma[:, None] * W, beta[None, :] @ W + bias

    def raw_attention():
        # raw MultiHeadedAttention params (linear_q / linear_k / linear_v / linear_out)
        wq, wk, wv, wo = w((D, D)), w((D, D)), w((D, D)), w((D, D))
        bq, bk, bv, bo = zeros((1, D)), zeros((1, D)), zeros((1, D)), zeros((1, D))
        # exact per-head fold:  Wvo_h = Wv[:, h] @ Wo[h, :],  bvo_h = bv[:, h] @ Wo[h, :]
        wvo = [wv[:, i * HEAD_DIM:(i + 1) * HEAD_DIM] @ wo[i * HEAD_DIM:(i + 1) * HEAD_DIM, :]
               for i in range(H)]
        bvo = [bv[:, i * HEAD_DIM:(i + 1) * HEAD_DIM] @ wo[i * HEAD_DIM:(i + 1) * HEAD_DIM, :]
               for i in range(H)]
        wkv = jnp.concatenate([wk] + wvo, axis=1)              # (D, 5D)
        bkv = jnp.concatenate([bk] + bvo, axis=1)              # (1, 5D)
        return wq, bq, wkv, bkv, bo

    def stream_params():
        # LayerNorm affine params (identity at init) folded into the following projections.
        ln_g = [ones((D,)) for _ in range(3 * NE + 2)]
        ln_b = [zeros((D,)) for _ in range(3 * NE + 2)]
        self_w, self_b, self_bo = [], [], []
        crossq_w, crossq_b, crosskv_w, crosskv_b, cross_bo = [], [], [], [], []
        ffn_w1, ffn_b1, ffn_w2, ffn_b2 = [], [], [], []

        def add_self(ln_idx):
            wq, bq, wkv, bkv, bo = raw_attention()
            wf, bf = fold_ln(ln_g[ln_idx], ln_b[ln_idx],
                             jnp.concatenate([wq, wkv], axis=1),
                             jnp.concatenate([bq, bkv], axis=1))
            self_w.append(wf); self_b.append(bf); self_bo.append(bo)

        def add_cross(ln_idx):
            wq, bq, wkv, bkv, bo = raw_attention()
            wqf, bqf = fold_ln(ln_g[ln_idx], ln_b[ln_idx], wq, bq)   # LN feeds only the Q path
            crossq_w.append(wqf); crossq_b.append(bqf)
            crosskv_w.append(wkv); crosskv_b.append(bkv); cross_bo.append(bo)

        for i in range(NE):
            add_self(3 * i)
            add_cross(3 * i + 1)
            w1f, b1f = fold_ln(ln_g[3 * i + 2], ln_b[3 * i + 2], w((D, FF)), zeros((1, FF)))
            ffn_w1.append(w1f); ffn_b1.append(b1f)
            ffn_w2.append(w((FF, D))); ffn_b2.append(zeros((1, D)))
        add_self(3 * NE)
        add_cross(3 * NE + 1)

        return dict(
            self_w=jnp.stack(self_w).astype(jnp.bfloat16),            # (NSELF, D, 6D)
            self_b=jnp.stack(self_b),                                 # (NSELF, 1, 6D)
            self_bo=jnp.stack(self_bo),                               # (NSELF, 1, D)
            crossq_w=jnp.stack(crossq_w).astype(jnp.bfloat16),        # (NCROSS, D, D)
            crossq_b=jnp.stack(crossq_b),                             # (NCROSS, 1, D)
            crosskv_w=jnp.concatenate(crosskv_w, axis=1).astype(jnp.bfloat16),  # (D, NCROSS*5D)
            crosskv_b=jnp.concatenate(crosskv_b, axis=1),             # (1, NCROSS*5D)
            cross_bo=jnp.stack(cross_bo),                             # (NCROSS, 1, D)
            ffn_w1=jnp.stack(ffn_w1).astype(jnp.bfloat16),
            ffn_b1=jnp.stack(ffn_b1),
            ffn_w2=jnp.stack(ffn_w2).astype(jnp.bfloat16),
            ffn_b2=jnp.stack(ffn_b2),
        )

    air, bone = stream_params(), stream_params()
    stack = {k: jnp.stack([air[k], bone[k]], axis=0) for k in air}    # leading axis: stream

    # StreamAttention (SparseAttention, v_trans=True): [Wq | Wk | Wv]
    str_w = jnp.concatenate([w((D, D)), w((D, D)), w((D, D))], axis=1)
    # Epilogue LNs (stream-layer pre-FFN norm, after_norm) folded into the following matmuls.
    ep_g = [ones((D,)), ones((D,))]
    ep_b = [zeros((D,)), zeros((D,))]
    ew1, eb1 = fold_ln(ep_g[0], ep_b[0], w((D, FF)), zeros((1, FF)))
    # lane-dense padded output projection (ODIM -> 128); sliced back in the wrapper
    ow_raw = jnp.pad(w((D, ODIM)), ((0, 0), (0, OUT_PAD - ODIM)))
    ob_raw = jnp.pad(zeros((1, ODIM)), ((0, 0), (0, OUT_PAD - ODIM)))
    ow, ob = fold_ln(ep_g[1], ep_b[1], ow_raw, ob_raw)

    return dict(
        embed_air=w((ODIM, D), 1.0),
        embed_bone=w((ODIM, D), 1.0),
        stack=stack,
        str_w=str_w.astype(jnp.bfloat16),
        str_ffn_w1=ew1.astype(jnp.bfloat16), str_ffn_b1=eb1,
        str_ffn_w2=w((FF, D)).astype(jnp.bfloat16), str_ffn_b2=zeros((1, D)),
        out_w=ow.astype(jnp.bfloat16), out_b=ob,
    )


# ================================= main =======================================

if __name__ == "__main__":
    key = jax.random.PRNGKey(0)
    kp, kt, ka, kb = jax.random.split(key, 4)
    params = init_params(kp)

    tgt = jax.random.randint(kt, (B, L), 0, ODIM, dtype=jnp.int32)
    tgt_mask = jnp.ones((B, L), dtype=jnp.bool_)
    memory_air = jax.random.normal(ka, (B, T, D), dtype=jnp.float32)
    memory_bone = jax.random.normal(kb, (B, T, D), dtype=jnp.float32)
    memory_mask = jnp.ones((B, T), dtype=jnp.bool_)

    fwd = jax.jit(double_decoder_forward)
    out, out_mask = fwd(params, tgt, tgt_mask, memory_air, memory_bone, memory_mask, 2)
    jax.block_until_ready(out)

    assert out.shape == (B, L, ODIM), out.shape
    assert out_mask.shape == (B, L), out_mask.shape
    assert bool(jnp.all(jnp.isfinite(out)))
    print("KERNEL_OK")
</pallas_src>

<mosaic_0001>
module attributes {stable_mosaic.version = 11 : i64} {
  func.func @_merged_kernel(%arg0: i32, %arg1: memref<1x16x128xf32, #tpu.memory_space<vmem>>, %arg2: memref<1x16x128xf32, #tpu.memory_space<vmem>>, %arg3: memref<16x16xf32, #tpu.memory_space<vmem>>, %arg4: memref<16x16xf32, #tpu.memory_space<vmem>>, %arg5: memref<1x2x128x768xbf16, #tpu.memory_space<vmem>>, %arg6: memref<1x2x1x768xf32, #tpu.memory_space<vmem>>, %arg7: memref<1x2x1x128xf32, #tpu.memory_space<vmem>>, %arg8: memref<1x2x128x128xbf16, #tpu.memory_space<vmem>>, %arg9: memref<1x2x1x128xf32, #tpu.memory_space<vmem>>, %arg10: memref<1x128x1280xbf16, #tpu.memory_space<vmem>>, %arg11: memref<1x1x1280xf32, #tpu.memory_space<vmem>>, %arg12: memref<1x2x1x128xf32, #tpu.memory_space<vmem>>, %arg13: memref<1x1x128x256xbf16, #tpu.memory_space<vmem>>, %arg14: memref<1x1x1x256xf32, #tpu.memory_space<vmem>>, %arg15: memref<1x1x256x128xbf16, #tpu.memory_space<vmem>>, %arg16: memref<1x1x1x128xf32, #tpu.memory_space<vmem>>, %arg17: memref<128x384xbf16, #tpu.memory_space<vmem>>, %arg18: memref<128x256xbf16, #tpu.memory_space<vmem>>, %arg19: memref<1x256xf32, #tpu.memory_space<vmem>>, %arg20: memref<256x128xbf16, #tpu.memory_space<vmem>>, %arg21: memref<1x128xf32, #tpu.memory_space<vmem>>, %arg22: memref<128x128xbf16, #tpu.memory_space<vmem>>, %arg23: memref<1x128xf32, #tpu.memory_space<vmem>>, %arg24: memref<16x128xf32, #tpu.memory_space<vmem>>, %arg25: memref<16x128xf32, #tpu.memory_space<vmem>>) attributes {dimension_semantics = [#tpu.dimension_semantics<arbitrary>], iteration_bounds = array<i64: 2>, scalar_prefetch = 0 : i64, scratch_operands = 1 : i64, tpu.core_type = #tpu.core_type<tc>, window_params = [{transform_indices = @transform_0, window_bounds = array<i64: 1, 16, 128>}, {transform_indices = @transform_1, window_bounds = array<i64: 1, 16, 128>}, {pipeline_mode = #tpu.pipeline_mode<synchronous>, transform_indices = @transform_2, window_bounds = array<i64: 16, 16>}, {pipeline_mode = #tpu.pipeline_mode<synchronous>, transform_indices = @transform_3, window_bounds = array<i64: 16, 16>}, {transform_indices = @transform_4, window_bounds = array<i64: 1, 2, 128, 768>}, {transform_indices = @transform_5, window_bounds = array<i64: 1, 2, 1, 768>}, {transform_indices = @transform_6, window_bounds = array<i64: 1, 2, 1, 128>}, {transform_indices = @transform_7, window_bounds = array<i64: 1, 2, 128, 128>}, {transform_indices = @transform_8, window_bounds = array<i64: 1, 2, 1, 128>}, {transform_indices = @transform_9, window_bounds = array<i64: 1, 128, 1280>}, {transform_indices = @transform_10, window_bounds = array<i64: 1, 1, 1280>}, {transform_indices = @transform_11, window_bounds = array<i64: 1, 2, 1, 128>}, {transform_indices = @transform_12, window_bounds = array<i64: 1, 1, 128, 256>}, {transform_indices = @transform_13, window_bounds = array<i64: 1, 1, 1, 256>}, {transform_indices = @transform_14, window_bounds = array<i64: 1, 1, 256, 128>}, {transform_indices = @transform_15, window_bounds = array<i64: 1, 1, 1, 128>}, {pipeline_mode = #tpu.pipeline_mode<synchronous>, transform_indices = @transform_16, window_bounds = array<i64: 128, 384>}, {pipeline_mode = #tpu.pipeline_mode<synchronous>, transform_indices = @transform_17, window_bounds = array<i64: 128, 256>}, {pipeline_mode = #tpu.pipeline_mode<synchronous>, transform_indices = @transform_18, window_bounds = array<i64: 1, 256>}, {pipeline_mode = #tpu.pipeline_mode<synchronous>, transform_indices = @transform_19, window_bounds = array<i64: 256, 128>}, {pipeline_mode = #tpu.pipeline_mode<synchronous>, transform_indices = @transform_20, window_bounds = array<i64: 1, 128>}, {pipeline_mode = #tpu.pipeline_mode<synchronous>, transform_indices = @transform_21, window_bounds = array<i64: 128, 128>}, {pipeline_mode = #tpu.pipeline_mode<synchronous>, transform_indices = @transform_22, window_bounds = array<i64: 1, 128>}, {pipeline_mode = #tpu.pipeline_mode<synchronous>, transform_indices = @transform_23, window_bounds = array<i64: 16, 128>}]} {
    %c0 = arith.constant 0 : index
    %c0_0 = arith.constant 0 : index
    %c0_1 = arith.constant 0 : index
    %0 = vector.load %arg1[%c0, %c0_0, %c0_1] : memref<1x16x128xf32, #tpu.memory_space<vmem>>, vector<1x16x128xf32>
    %1 = vector.shape_cast %0 : vector<1x16x128xf32> to vector<16x128xf32>
    %c0_2 = arith.constant 0 : index
    %c0_3 = arith.constant 0 : index
    %2 = vector.load %arg3[%c0_2, %c0_3] : memref<16x16xf32, #tpu.memory_space<vmem>>, vector<16x16xf32>
    %c0_4 = arith.constant 0 : index
    %c0_5 = arith.constant 0 : index
    %3 = vector.load %arg4[%c0_4, %c0_5] : memref<16x16xf32, #tpu.memory_space<vmem>>, vector<16x16xf32>
    %c0_6 = arith.constant 0 : index
    %c0_7 = arith.constant 0 : index
    %c0_8 = arith.constant 0 : index
    %4 = vector.load %arg2[%c0_6, %c0_7, %c0_8] : memref<1x16x128xf32, #tpu.memory_space<vmem>>, vector<1x16x128xf32>
    %5 = vector.shape_cast %4 : vector<1x16x128xf32> to vector<16x128xf32>
    %6 = arith.truncf %5 : vector<16x128xf32> to vector<16x128xbf16>
    %c0_9 = arith.constant 0 : index
    %c0_10 = arith.constant 0 : index
    %c0_11 = arith.constant 0 : index
    %7 = vector.load %arg10[%c0_9, %c0_10, %c0_11] : memref<1x128x1280xbf16, #tpu.memory_space<vmem>>, vector<1x128x1280xbf16>
    %8 = vector.shape_cast %7 : vector<1x128x1280xbf16> to vector<128x1280xbf16>
    %cst = arith.constant dense<0.000000e+00> : vector<16x1280xf32>
    %9 = tpu.matmul %6, %8, %cst {dimension_numbers = #tpu.dot_dimension_numbers<[1], [0], [0], [1], [0, 0, 1, 1], [], []>} : vector<16x128xbf16>, vector<128x1280xbf16>, vector<16x1280xf32> -> vector<16x1280xf32>
    %c0_12 = arith.constant 0 : index
    %c0_13 = arith.constant 0 : index
    %c0_14 = arith.constant 0 : index
    %10 = vector.load %arg11[%c0_12, %c0_13, %c0_14] : memref<1x1x1280xf32, #tpu.memory_space<vmem>>, vector<1x1x1280xf32>
    %11 = vector.shape_cast %10 : vector<1x1x1280xf32> to vector<1x1280xf32>
    %12 = vector.broadcast %11 : vector<1x1280xf32> to vector<16x1280xf32>
    %13 = arith.addf %9, %12 : vector<16x1280xf32>
    %14 = arith.truncf %13 : vector<16x1280xf32> to vector<16x1280xbf16>
    %cst_15 = arith.constant dense<0.000000e+00> : vector<16xf32>
    %15 = vector.multi_reduction <add>, %1, %cst_15 [1] : vector<16x128xf32> to vector<16xf32>
    %16 = vector.shape_cast %15 : vector<16xf32> to vector<16x1xf32>
    %cst_16 = arith.constant 1.280000e+02 : f32
    %17 = vector.broadcast %cst_16 : f32 to vector<16x1xf32>
    %18 = arith.divf %16, %17 : vector<16x1xf32>
    %19 = vector.broadcast %18 : vector<16x1xf32> to vector<16x128xf32>
    %20 = arith.subf %1, %19 : vector<16x128xf32>
    %21 = arith.mulf %20, %20 : vector<16x128xf32>
    %cst_17 = arith.constant dense<0.000000e+00> : vector<16xf32>
    %22 = vector.multi_reduction <add>, %21, %cst_17 [1] : vector<16x128xf32> to vector<16xf32>
    %23 = vector.shape_cast %22 : vector<16xf32> to vector<16x1xf32>
    %cst_18 = arith.constant 1.280000e+02 : f32
    %24 = vector.broadcast %cst_18 : f32 to vector<16x1xf32>
    %25 = arith.divf %23, %24 : vector<16x1xf32>
    %cst_19 = arith.constant 9.99999996E-13 : f32
    %26 = vector.broadcast %cst_19 : f32 to vector<16x1xf32>
    %27 = arith.addf %25, %26 : vector<16x1xf32>
    %28 = math.rsqrt %27 : vector<16x1xf32>
    %29 = vector.broadcast %28 : vector<16x1xf32> to vector<16x128xf32>
    %30 = arith.mulf %20, %29 : vector<16x128xf32>
    %31 = arith.truncf %30 : vector<16x128xf32> to vector<16x128xbf16>
    %c0_20 = arith.constant 0 : index
    %c0_21 = arith.constant 0 : index
    %c0_22 = arith.constant 0 : index
    %c0_23 = arith.constant 0 : index
    %32 = vector.load %arg5[%c0_20, %c0_21, %c0_22, %c0_23] : memref<1x2x128x768xbf16, #tpu.memory_space<vmem>>, vector<1x1x128x768xbf16>
    %33 = vector.shape_cast %32 : vector<1x1x128x768xbf16> to vector<128x768xbf16>
    %cst_24 = arith.constant dense<0.000000e+00> : vector<16x768xf32>
    %34 = tpu.matmul %31, %33, %cst_24 {dimension_numbers = #tpu.dot_dimension_numbers<[1], [0], [0], [1], [0, 0, 1, 1], [], []>} : vector<16x128xbf16>, vector<128x768xbf16>, vector<16x768xf32> -> vector<16x768xf32>
    %c0_25 = arith.constant 0 : index
    %c0_26 = arith.constant 0 : index
    %c0_27 = arith.constant 0 : index
    %c0_28 = arith.constant 0 : index
    %35 = vector.load %arg6[%c0_25, %c0_26, %c0_27, %c0_28] : memref<1x2x1x768xf32, #tpu.memory_space<vmem>>, vector<1x1x1x768xf32>
    %36 = vector.shape_cast %35 : vector<1x1x1x768xf32> to vector<1x768xf32>
    %37 = vector.broadcast %36 : vector<1x768xf32> to vector<16x768xf32>
    %38 = arith.addf %34, %37 : vector<16x768xf32>
    %39 = arith.truncf %38 : vector<16x768xf32> to vector<16x768xbf16>
    %40 = vector.extract_strided_slice %39 {offsets = [0, 0], sizes = [16, 128], strides = [1, 1]} : vector<16x768xbf16> to vector<16x128xbf16>
    %41 = vector.extract_strided_slice %39 {offsets = [0, 128], sizes = [16, 640], strides = [1, 1]} : vector<16x768xbf16> to vector<16x640xbf16>
    %c0_29 = arith.constant 0 : index
    %c0_30 = arith.constant 0 : index
    %c0_31 = arith.constant 0 : index
    %c0_32 = arith.constant 0 : index
    %42 = vector.load %arg7[%c0_29, %c0_30, %c0_31, %c0_32] : memref<1x2x1x128xf32, #tpu.memory_space<vmem>>, vector<1x1x1x128xf32>
    %43 = vector.shape_cast %42 : vector<1x1x1x128xf32> to vector<1x128xf32>
    %44 = vector.extract_strided_slice %41 {offsets = [0, 0], sizes = [16, 128], strides = [1, 1]} : vector<16x640xbf16> to vector<16x128xbf16>
    %45 = vector.extract_strided_slice %40 {offsets = [0, 0], sizes = [16, 32], strides = [1, 1]} : vector<16x128xbf16> to vector<16x32xbf16>
    %46 = vector.extract_strided_slice %44 {offsets = [0, 0], sizes = [16, 32], strides = [1, 1]} : vector<16x128xbf16> to vector<16x32xbf16>
    %cst_33 = arith.constant dense<0.000000e+00> : vector<16x16xf32>
    %47 = tpu.matmul %45, %46, %cst_33 {dimension_numbers = #tpu.dot_dimension_numbers<[1], [1], [0], [0], [0, 0, 1, 0], [], []>} : vector<16x32xbf16>, vector<16x32xbf16>, vector<16x16xf32> -> vector<16x16xf32>
    %cst_34 = arith.constant 0.176776692 : f32
    %48 = vector.broadcast %cst_34 : f32 to vector<16x16xf32>
    %49 = arith.mulf %47, %48 : vector<16x16xf32>
    %50 = arith.addf %49, %2 : vector<16x16xf32>
    %51 = math.exp %50 : vector<16x16xf32>
    %cst_35 = arith.constant dense<0.000000e+00> : vector<16xf32>
    %52 = vector.multi_reduction <add>, %51, %cst_35 [1] : vector<16x16xf32> to vector<16xf32>
    %53 = vector.shape_cast %52 : vector<16xf32> to vector<16x1xf32>
    %cst_36 = arith.constant 1.000000e-30 : f32
    %54 = vector.broadcast %cst_36 : f32 to vector<16x1xf32>
    %55 = arith.addf %53, %54 : vector<16x1xf32>
    %56 = tpu.reciprocal %55 {approx = true} : vector<16x1xf32> -> vector<16x1xf32>
    %57 = vector.broadcast %56 : vector<16x1xf32> to vector<16x16xf32>
    %58 = arith.mulf %51, %57 : vector<16x16xf32>
    %59 = arith.truncf %58 : vector<16x16xf32> to vector<16x16xbf16>
    %60 = vector.extract_strided_slice %40 {offsets = [0, 32], sizes = [16, 32], strides = [1, 1]} : vector<16x128xbf16> to vector<16x32xbf16>
    %61 = vector.extract_strided_slice %44 {offsets = [0, 32], sizes = [16, 32], strides = [1, 1]} : vector<16x128xbf16> to vector<16x32xbf16>
    %cst_37 = arith.constant dense<0.000000e+00> : vector<16x16xf32>
    %62 = tpu.matmul %60, %61, %cst_37 {dimension_numbers = #tpu.dot_dimension_numbers<[1], [1], [0], [0], [0, 0, 1, 0], [], []>} : vector<16x32xbf16>, vector<16x32xbf16>, vector<16x16xf32> -> vector<16x16xf32>
    %cst_38 = arith.constant 0.176776692 : f32
    %63 = vector.broadcast %cst_38 : f32 to vector<16x16xf32>
    %64 = arith.mulf %62, %63 : vector<16x16xf32>
    %65 = arith.addf %64, %2 : vector<16x16xf32>
    %66 = math.exp %65 : vector<16x16xf32>
    %cst_39 = arith.constant dense<0.000000e+00> : vector<16xf32>
    %67 = vector.multi_reduction <add>, %66, %cst_39 [1] : vector<16x16xf32> to vector<16xf32>
    %68 = vector.shape_cast %67 : vector<16xf32> to vector<16x1xf32>
    %cst_40 = arith.constant 1.000000e-30 : f32
    %69 = vector.broadcast %cst_40 : f32 to vector<16x1xf32>
    %70 = arith.addf %68, %69 : vector<16x1xf32>
    %71 = tpu.reciprocal %70 {approx = true} : vector<16x1xf32> -> vector<16x1xf32>
    %72 = vector.broadcast %71 : vector<16x1xf32> to vector<16x16xf32>
    %73 = arith.mulf %66, %72 : vector<16x16xf32>
    %74 = arith.truncf %73 : vector<16x16xf32> to vector<16x16xbf16>
    %75 = vector.extract_strided_slice %40 {offsets = [0, 64], sizes = [16, 32], strides = [1, 1]} : vector<16x128xbf16> to vector<16x32xbf16>
    %76 = vector.extract_strided_slice %44 {offsets = [0, 64], sizes = [16, 32], strides = [1, 1]} : vector<16x128xbf16> to vector<16x32xbf16>
    %cst_41 = arith.constant dense<0.000000e+00> : vector<16x16xf32>
    %77 = tpu.matmul %75, %76, %cst_41 {dimension_numbers = #tpu.dot_dimension_numbers<[1], [1], [0], [0], [0, 0, 1, 0], [], []>} : vector<16x32xbf16>, vector<16x32xbf16>, vector<16x16xf32> -> vector<16x16xf32>
    %cst_42 = arith.constant 0.176776692 : f32
    %78 = vector.broadcast %cst_42 : f32 to vector<16x16xf32>
    %79 = arith.mulf %77, %78 : vector<16x16xf32>
    %80 = arith.addf %79, %2 : vector<16x16xf32>
    %81 = math.exp %80 : vector<16x16xf32>
    %cst_43 = arith.constant dense<0.000000e+00> : vector<16xf32>
    %82 = vector.multi_reduction <add>, %81, %cst_43 [1] : vector<16x16xf32> to vector<16xf32>
    %83 = vector.shape_cast %82 : vector<16xf32> to vector<16x1xf32>
    %cst_44 = arith.constant 1.000000e-30 : f32
    %84 = vector.broadcast %cst_44 : f32 to vector<16x1xf32>
    %85 = arith.addf %83, %84 : vector<16x1xf32>
    %86 = tpu.reciprocal %85 {approx = true} : vector<16x1xf32> -> vector<16x1xf32>
    %87 = vector.broadcast %86 : vector<16x1xf32> to vector<16x16xf32>
    %88 = arith.mulf %81, %87 : vector<16x16xf32>
    %89 = arith.truncf %88 : vector<16x16xf32> to vector<16x16xbf16>
    %90 = vector.extract_strided_slice %40 {offsets = [0, 96], sizes = [16, 32], strides = [1, 1]} : vector<16x128xbf16> to vector<16x32xbf16>
    %91 = vector.extract_strided_slice %44 {offsets = [0, 96], sizes = [16, 32], strides = [1, 1]} : vector<16x128xbf16> to vector<16x32xbf16>
    %cst_45 = arith.constant dense<0.000000e+00> : vector<16x16xf32>
    %92 = tpu.matmul %90, %91, %cst_45 {dimension_numbers = #tpu.dot_dimension_numbers<[1], [1], [0], [0], [0, 0, 1, 0], [], []>} : vector<16x32xbf16>, vector<16x32xbf16>, vector<16x16xf32> -> vector<16x16xf32>
    %cst_46 = arith.constant 0.176776692 : f32
    %93 = vector.broadcast %cst_46 : f32 to vector<16x16xf32>
    %94 = arith.mulf %92, %93 : vector<16x16xf32>
    %95 = arith.addf %94, %2 : vector<16x16xf32>
    %96 = math.exp %95 : vector<16x16xf32>
    %cst_47 = arith.constant dense<0.000000e+00> : vector<16xf32>
    %97 = vector.multi_reduction <add>, %96, %cst_47 [1] : vector<16x16xf32> to vector<16xf32>
    %98 = vector.shape_cast %97 : vector<16xf32> to vector<16x1xf32>
    %cst_48 = arith.constant 1.000000e-30 : f32
    %99 = vector.broadcast %cst_48 : f32 to vector<16x1xf32>
    %100 = arith.addf %98, %99 : vector<16x1xf32>
    %101 = tpu.reciprocal %100 {approx = true} : vector<16x1xf32> -> vector<16x1xf32>
    %102 = vector.broadcast %101 : vector<16x1xf32> to vector<16x16xf32>
    %103 = arith.mulf %96, %102 : vector<16x16xf32>
    %104 = arith.truncf %103 : vector<16x16xf32> to vector<16x16xbf16>
    %105 = tpu.concatenate %59, %74, %89, %104 in 1 : vector<16x16xbf16>, vector<16x16xbf16>, vector<16x16xbf16>, vector<16x16xbf16> -> vector<16x64xbf16>
    %106 = vector.extract_strided_slice %41 {offsets = [0, 128], sizes = [16, 128], strides = [1, 1]} : vector<16x640xbf16> to vector<16x128xbf16>
    %107 = vector.extract_strided_slice %41 {offsets = [0, 256], sizes = [16, 128], strides = [1, 1]} : vector<16x640xbf16> to vector<16x128xbf16>
    %108 = vector.extract_strided_slice %41 {offsets = [0, 384], sizes = [16, 128], strides = [1, 1]} : vector<16x640xbf16> to vector<16x128xbf16>
    %109 = vector.extract_strided_slice %41 {offsets = [0, 512], sizes = [16, 128], strides = [1, 1]} : vector<16x640xbf16> to vector<16x128xbf16>
    %110 = tpu.concatenate %106, %107, %108, %109 in 0 : vector<16x128xbf16>, vector<16x128xbf16>, vector<16x128xbf16>, vector<16x128xbf16> -> vector<64x128xbf16>
    %cst_49 = arith.constant dense<0.000000e+00> : vector<16x128xf32>
    %111 = tpu.matmul %105, %110, %cst_49 {dimension_numbers = #tpu.dot_dimension_numbers<[1], [0], [0], [1], [0, 0, 1, 1], [], []>} : vector<16x64xbf16>, vector<64x128xbf16>, vector<16x128xf32> -> vector<16x128xf32>
    %112 = vector.broadcast %43 : vector<1x128xf32> to vector<16x128xf32>
    %113 = arith.addf %111, %112 : vector<16x128xf32>
    %114 = arith.addf %1, %113 : vector<16x128xf32>
    %cst_50 = arith.constant dense<0.000000e+00> : vector<16xf32>
    %115 = vector.multi_reduction <add>, %114, %cst_50 [1] : vector<16x128xf32> to vector<16xf32>
    %116 = vector.shape_cast %115 : vector<16xf32> to vector<16x1xf32>
    %cst_51 = arith.constant 1.280000e+02 : f32
    %117 = vector.broadcast %cst_51 : f32 to vector<16x1xf32>
    %118 = arith.divf %116, %117 : vector<16x1xf32>
    %119 = vector.broadcast %118 : vector<16x1xf32> to vector<16x128xf32>
    %120 = arith.subf %114, %119 : vector<16x128xf32>
    %121 = arith.mulf %120, %120 : vector<16x128xf32>
    %cst_52 = arith.constant dense<0.000000e+00> : vector<16xf32>
    %122 = vector.multi_reduction <add>, %121, %cst_52 [1] : vector<16x128xf32> to vector<16xf32>
    %123 = vector.shape_cast %122 : vector<16xf32> to vector<16x1xf32>
    %cst_53 = arith.constant 1.280000e+02 : f32
    %124 = vector.broadcast %cst_53 : f32 to vector<16x1xf32>
    %125 = arith.divf %123, %124 : vector<16x1xf32>
    %cst_54 = arith.constant 9.99999996E-13 : f32
    %126 = vector.broadcast %cst_54 : f32 to vector<16x1xf32>
    %127 = arith.addf %125, %126 : vector<16x1xf32>
    %128 = math.rsqrt %127 : vector<16x1xf32>
    %129 = vector.broadcast %128 : vector<16x1xf32> to vector<16x128xf32>
    %130 = arith.mulf %120, %129 : vector<16x128xf32>
    %131 = arith.truncf %130 : vector<16x128xf32> to vector<16x128xbf16>
    %c0_55 = arith.constant 0 : index
    %c0_56 = arith.constant 0 : index
    %c0_57 = arith.constant 0 : index
    %c0_58 = arith.constant 0 : index
    %132 = vector.load %arg8[%c0_55, %c0_56, %c0_57, %c0_58] : memref<1x2x128x128xbf16, #tpu.memory_space<vmem>>, vector<1x1x128x128xbf16>
    %133 = vector.shape_cast %132 : vector<1x1x128x128xbf16> to vector<128x128xbf16>
    %cst_59 = arith.constant dense<0.000000e+00> : vector<16x128xf32>
    %134 = tpu.matmul %131, %133, %cst_59 {dimension_numbers = #tpu.dot_dimension_numbers<[1], [0], [0], [1], [0, 0, 1, 1], [], []>} : vector<16x128xbf16>, vector<128x128xbf16>, vector<16x128xf32> -> vector<16x128xf32>
    %c0_60 = arith.constant 0 : index
    %c0_61 = arith.constant 0 : index
    %c0_62 = arith.constant 0 : index
    %c0_63 = arith.constant 0 : index
    %135 = vector.load %arg9[%c0_60, %c0_61, %c0_62, %c0_63] : memref<1x2x1x128xf32, #tpu.memory_space<vmem>>, vector<1x1x1x128xf32>
    %136 = vector.shape_cast %135 : vector<1x1x1x128xf32> to vector<1x128xf32>
    %137 = vector.broadcast %136 : vector<1x128xf32> to vector<16x128xf32>
    %138 = arith.addf %134, %137 : vector<16x128xf32>
    %139 = arith.truncf %138 : vector<16x128xf32> to vector<16x128xbf16>
    %140 = vector.extract_strided_slice %14 {offsets = [0, 0], sizes = [16, 640], strides = [1, 1]} : vector<16x1280xbf16> to vector<16x640xbf16>
    %c0_64 = arith.constant 0 : index
    %c0_65 = arith.constant 0 : index
    %c0_66 = arith.constant 0 : index
    %c0_67 = arith.constant 0 : index
    %141 = vector.load %arg12[%c0_64, %c0_65, %c0_66, %c0_67] : memref<1x2x1x128xf32, #tpu.memory_space<vmem>>, vector<1x1x1x128xf32>
    %142 = vector.shape_cast %141 : vector<1x1x1x128xf32> to vector<1x128xf32>
    %143 = vector.extract_strided_slice %140 {offsets = [0, 0], sizes = [16, 128], strides = [1, 1]} : vector<16x640xbf16> to vector<16x128xbf16>
    %144 = vector.extract_strided_slice %139 {offsets = [0, 0], sizes = [16, 32], strides = [1, 1]} : vector<16x128xbf16> to vector<16x32xbf16>
    %145 = vector.extract_strided_slice %143 {offsets = [0, 0], sizes = [16, 32], strides = [1, 1]} : vector<16x128xbf16> to vector<16x32xbf16>
    %cst_68 = arith.constant dense<0.000000e+00> : vector<16x16xf32>
    %146 = tpu.matmul %144, %145, %cst_68 {dimension_numbers = #tpu.dot_dimension_numbers<[1], [1], [0], [0], [0, 0, 1, 0], [], []>} : vector<16x32xbf16>, vector<16x32xbf16>, vector<16x16xf32> -> vector<16x16xf32>
    %cst_69 = arith.constant 0.176776692 : f32
    %147 = vector.broadcast %cst_69 : f32 to vector<16x16xf32>
    %148 = arith.mulf %146, %147 : vector<16x16xf32>
    %149 = arith.addf %148, %3 : vector<16x16xf32>
    %150 = math.exp %149 : vector<16x16xf32>
    %cst_70 = arith.constant dense<0.000000e+00> : vector<16xf32>
    %151 = vector.multi_reduction <add>, %150, %cst_70 [1] : vector<16x16xf32> to vector<16xf32>
    %152 = vector.shape_cast %151 : vector<16xf32> to vector<16x1xf32>
    %cst_71 = arith.constant 1.000000e-30 : f32
    %153 = vector.broadcast %cst_71 : f32 to vector<16x1xf32>
    %154 = arith.addf %152, %153 : vector<16x1xf32>
    %155 = tpu.reciprocal %154 {approx = true} : vector<16x1xf32> -> vector<16x1xf32>
    %156 = vector.broadcast %155 : vector<16x1xf32> to vector<16x16xf32>
    %157 = arith.mulf %150, %156 : vector<16x16xf32>
    %158 = arith.truncf %157 : vector<16x16xf32> to vector<16x16xbf16>
    %159 = vector.extract_strided_slice %139 {offsets = [0, 32], sizes = [16, 32], strides = [1, 1]} : vector<16x128xbf16> to vector<16x32xbf16>
    %160 = vector.extract_strided_slice %143 {offsets = [0, 32], sizes = [16, 32], strides = [1, 1]} : vector<16x128xbf16> to vector<16x32xbf16>
    %cst_72 = arith.constant dense<0.000000e+00> : vector<16x16xf32>
    %161 = tpu.matmul %159, %160, %cst_72 {dimension_numbers = #tpu.dot_dimension_numbers<[1], [1], [0], [0], [0, 0, 1, 0], [], []>} : vector<16x32xbf16>, vector<16x32xbf16>, vector<16x16xf32> -> vector<16x16xf32>
    %cst_73 = arith.constant 0.176776692 : f32
    %162 = vector.broadcast %cst_73 : f32 to vector<16x16xf32>
    %163 = arith.mulf %161, %162 : vector<16x16xf32>
    %164 = arith.addf %163, %3 : vector<16x16xf32>
    %165 = math.exp %164 : vector<16x16xf32>
    %cst_74 = arith.constant dense<0.000000e+00> : vector<16xf32>
    %166 = vector.multi_reduction <add>, %165, %cst_74 [1] : vector<16x16xf32> to vector<16xf32>
    %167 = vector.shape_cast %166 : vector<16xf32> to vector<16x1xf32>
    %cst_75 = arith.constant 1.000000e-30 : f32
    %168 = vector.broadcast %cst_75 : f32 to vector<16x1xf32>
    %169 = arith.addf %167, %168 : vector<16x1xf32>
    %170 = tpu.reciprocal %169 {approx = true} : vector<16x1xf32> -> vector<16x1xf32>
    %171 = vector.broadcast %170 : vector<16x1xf32> to vector<16x16xf32>
    %172 = arith.mulf %165, %171 : vector<16x16xf32>
    %173 = arith.truncf %172 : vector<16x16xf32> to vector<16x16xbf16>
    %174 = vector.extract_strided_slice %139 {offsets = [0, 64], sizes = [16, 32], strides = [1, 1]} : vector<16x128xbf16> to vector<16x32xbf16>
    %175 = vector.extract_strided_slice %143 {offsets = [0, 64], sizes = [16, 32], strides = [1, 1]} : vector<16x128xbf16> to vector<16x32xbf16>
    %cst_76 = arith.constant dense<0.000000e+00> : vector<16x16xf32>
    %176 = tpu.matmul %174, %175, %cst_76 {dimension_numbers = #tpu.dot_dimension_numbers<[1], [1], [0], [0], [0, 0, 1, 0], [], []>} : vector<16x32xbf16>, vector<16x32xbf16>, vector<16x16xf32> -> vector<16x16xf32>
    %cst_77 = arith.constant 0.176776692 : f32
    %177 = vector.broadcast %cst_77 : f32 to vector<16x16xf32>
    %178 = arith.mulf %176, %177 : vector<16x16xf32>
    %179 = arith.addf %178, %3 : vector<16x16xf32>
    %180 = math.exp %179 : vector<16x16xf32>
    %cst_78 = arith.constant dense<0.000000e+00> : vector<16xf32>
    %181 = vector.multi_reduction <add>, %180, %cst_78 [1] : vector<16x16xf32> to vector<16xf32>
    %182 = vector.shape_cast %181 : vector<16xf32> to vector<16x1xf32>
    %cst_79 = arith.constant 1.000000e-30 : f32
    %183 = vector.broadcast %cst_79 : f32 to vector<16x1xf32>
    %184 = arith.addf %182, %183 : vector<16x1xf32>
    %185 = tpu.reciprocal %184 {approx = true} : vector<16x1xf32> -> vector<16x1xf32>
    %186 = vector.broadcast %185 : vector<16x1xf32> to vector<16x16xf32>
    %187 = arith.mulf %180, %186 : vector<16x16xf32>
    %188 = arith.truncf %187 : vector<16x16xf32> to vector<16x16xbf16>
    %189 = vector.extract_strided_slice %139 {offsets = [0, 96], sizes = [16, 32], strides = [1, 1]} : vector<16x128xbf16> to vector<16x32xbf16>
    %190 = vector.extract_strided_slice %143 {offsets = [0, 96], sizes = [16, 32], strides = [1, 1]} : vector<16x128xbf16> to vector<16x32xbf16>
    %cst_80 = arith.constant dense<0.000000e+00> : vector<16x16xf32>
    %191 = tpu.matmul %189, %190, %cst_80 {dimension_numbers = #tpu.dot_dimension_numbers<[1], [1], [0], [0], [0, 0, 1, 0], [], []>} : vector<16x32xbf16>, vector<16x32xbf16>, vector<16x16xf32> -> vector<16x16xf32>
    %cst_81 = arith.constant 0.176776692 : f32
    %192 = vector.broadcast %cst_81 : f32 to vector<16x16xf32>
    %193 = arith.mulf %191, %192 : vector<16x16xf32>
    %194 = arith.addf %193, %3 : vector<16x16xf32>
    %195 = math.exp %194 : vector<16x16xf32>
    %cst_82 = arith.constant dense<0.000000e+00> : vector<16xf32>
    %196 = vector.multi_reduction <add>, %195, %cst_82 [1] : vector<16x16xf32> to vector<16xf32>
    %197 = vector.shape_cast %196 : vector<16xf32> to vector<16x1xf32>
    %cst_83 = arith.constant 1.000000e-30 : f32
    %198 = vector.broadcast %cst_83 : f32 to vector<16x1xf32>
    %199 = arith.addf %197, %198 : vector<16x1xf32>
    %200 = tpu.reciprocal %199 {approx = true} : vector<16x1xf32> -> vector<16x1xf32>
    %201 = vector.broadcast %200 : vector<16x1xf32> to vector<16x16xf32>
    %202 = arith.mulf %195, %201 : vector<16x16xf32>
    %203 = arith.truncf %202 : vector<16x16xf32> to vector<16x16xbf16>
    %204 = tpu.concatenate %158, %173, %188, %203 in 1 : vector<16x16xbf16>, vector<16x16xbf16>, vector<16x16xbf16>, vector<16x16xbf16> -> vector<16x64xbf16>
    %205 = vector.extract_strided_slice %140 {offsets = [0, 128], sizes = [16, 128], strides = [1, 1]} : vector<16x640xbf16> to vector<16x128xbf16>
    %206 = vector.extract_strided_slice %140 {offsets = [0, 256], sizes = [16, 128], strides = [1, 1]} : vector<16x640xbf16> to vector<16x128xbf16>
    %207 = vector.extract_strided_slice %140 {offsets = [0, 384], sizes = [16, 128], strides = [1, 1]} : vector<16x640xbf16> to vector<16x128xbf16>
    %208 = vector.extract_strided_slice %140 {offsets = [0, 512], sizes = [16, 128], strides = [1, 1]} : vector<16x640xbf16> to vector<16x128xbf16>
    %209 = tpu.concatenate %205, %206, %207, %208 in 0 : vector<16x128xbf16>, vector<16x128xbf16>, vector<16x128xbf16>, vector<16x128xbf16> -> vector<64x128xbf16>
    %cst_84 = arith.constant dense<0.000000e+00> : vector<16x128xf32>
    %210 = tpu.matmul %204, %209, %cst_84 {dimension_numbers = #tpu.dot_dimension_numbers<[1], [0], [0], [1], [0, 0, 1, 1], [], []>} : vector<16x64xbf16>, vector<64x128xbf16>, vector<16x128xf32> -> vector<16x128xf32>
    %211 = vector.broadcast %142 : vector<1x128xf32> to vector<16x128xf32>
    %212 = arith.addf %210, %211 : vector<16x128xf32>
    %213 = arith.addf %114, %212 : vector<16x128xf32>
    %cst_85 = arith.constant dense<0.000000e+00> : vector<16xf32>
    %214 = vector.multi_reduction <add>, %213, %cst_85 [1] : vector<16x128xf32> to vector<16xf32>
    %215 = vector.shape_cast %214 : vector<16xf32> to vector<16x1xf32>
    %cst_86 = arith.constant 1.280000e+02 : f32
    %216 = vector.broadcast %cst_86 : f32 to vector<16x1xf32>
    %217 = arith.divf %215, %216 : vector<16x1xf32>
    %218 = vector.broadcast %217 : vector<16x1xf32> to vector<16x128xf32>
    %219 = arith.subf %213, %218 : vector<16x128xf32>
    %220 = arith.mulf %219, %219 : vector<16x128xf32>
    %cst_87 = arith.constant dense<0.000000e+00> : vector<16xf32>
    %221 = vector.multi_reduction <add>, %220, %cst_87 [1] : vector<16x128xf32> to vector<16xf32>
    %222 = vector.shape_cast %221 : vector<16xf32> to vector<16x1xf32>
    %cst_88 = arith.constant 1.280000e+02 : f32
    %223 = vector.broadcast %cst_88 : f32 to vector<16x1xf32>
    %224 = arith.divf %222, %223 : vector<16x1xf32>
    %cst_89 = arith.constant 9.99999996E-13 : f32
    %225 = vector.broadcast %cst_89 : f32 to vector<16x1xf32>
    %226 = arith.addf %224, %225 : vector<16x1xf32>
    %227 = math.rsqrt %226 : vector<16x1xf32>
    %228 = vector.broadcast %227 : vector<16x1xf32> to vector<16x128xf32>
    %229 = arith.mulf %219, %228 : vector<16x128xf32>
    %230 = arith.truncf %229 : vector<16x128xf32> to vector<16x128xbf16>
    %c0_90 = arith.constant 0 : index
    %c0_91 = arith.constant 0 : index
    %c0_92 = arith.constant 0 : index
    %c0_93 = arith.constant 0 : index
    %231 = vector.load %arg13[%c0_90, %c0_91, %c0_92, %c0_93] : memref<1x1x128x256xbf16, #tpu.memory_space<vmem>>, vector<1x1x128x256xbf16>
    %232 = vector.shape_cast %231 : vector<1x1x128x256xbf16> to vector<128x256xbf16>
    %cst_94 = arith.constant dense<0.000000e+00> : vector<16x256xf32>
    %233 = tpu.matmul %230, %232, %cst_94 {dimension_numbers = #tpu.dot_dimension_numbers<[1], [0], [0], [1], [0, 0, 1, 1], [], []>} : vector<16x128xbf16>, vector<128x256xbf16>, vector<16x256xf32> -> vector<16x256xf32>
    %c0_95 = arith.constant 0 : index
    %c0_96 = arith.constant 0 : index
    %c0_97 = arith.constant 0 : index
    %c0_98 = arith.constant 0 : index
    %234 = vector.load %arg14[%c0_95, %c0_96, %c0_97, %c0_98] : memref<1x1x1x256xf32, #tpu.memory_space<vmem>>, vector<1x1x1x256xf32>
    %235 = vector.shape_cast %234 : vector<1x1x1x256xf32> to vector<1x256xf32>
    %236 = vector.broadcast %235 : vector<1x256xf32> to vector<16x256xf32>
    %237 = arith.addf %233, %236 : vector<16x256xf32>
    %cst_99 = arith.constant 0.000000e+00 : f32
    %238 = vector.broadcast %cst_99 : f32 to vector<16x256xf32>
    %239 = arith.maximumf %237, %238 : vector<16x256xf32>
    %240 = arith.truncf %239 : vector<16x256xf32> to vector<16x256xbf16>
    %c0_100 = arith.constant 0 : index
    %c0_101 = arith.constant 0 : index
    %c0_102 = arith.constant 0 : index
    %c0_103 = arith.constant 0 : index
    %241 = vector.load %arg15[%c0_100, %c0_101, %c0_102, %c0_103] : memref<1x1x256x128xbf16, #tpu.memory_space<vmem>>, vector<1x1x256x128xbf16>
    %242 = vector.shape_cast %241 : vector<1x1x256x128xbf16> to vector<256x128xbf16>
    %cst_104 = arith.constant dense<0.000000e+00> : vector<16x128xf32>
    %243 = tpu.matmul %240, %242, %cst_104 {dimension_numbers = #tpu.dot_dimension_numbers<[1], [0], [0], [1], [0, 0, 1, 1], [], []>} : vector<16x256xbf16>, vector<256x128xbf16>, vector<16x128xf32> -> vector<16x128xf32>
    %c0_105 = arith.constant 0 : index
    %c0_106 = arith.constant 0 : index
    %c0_107 = arith.constant 0 : index
    %c0_108 = arith.constant 0 : index
    %244 = vector.load %arg16[%c0_105, %c0_106, %c0_107, %c0_108] : memref<1x1x1x128xf32, #tpu.memory_space<vmem>>, vector<1x1x1x128xf32>
    %245 = vector.shape_cast %244 : vector<1x1x1x128xf32> to vector<1x128xf32>
    %246 = vector.broadcast %245 : vector<1x128xf32> to vector<16x128xf32>
    %247 = arith.addf %243, %246 : vector<16x128xf32>
    %248 = arith.addf %213, %247 : vector<16x128xf32>
    %cst_109 = arith.constant dense<0.000000e+00> : vector<16xf32>
    %249 = vector.multi_reduction <add>, %248, %cst_109 [1] : vector<16x128xf32> to vector<16xf32>
    %250 = vector.shape_cast %249 : vector<16xf32> to vector<16x1xf32>
    %cst_110 = arith.constant 1.280000e+02 : f32
    %251 = vector.broadcast %cst_110 : f32 to vector<16x1xf32>
    %252 = arith.divf %250, %251 : vector<16x1xf32>
    %253 = vector.broadcast %252 : vector<16x1xf32> to vector<16x128xf32>
    %254 = arith.subf %248, %253 : vector<16x128xf32>
    %255 = arith.mulf %254, %254 : vector<16x128xf32>
    %cst_111 = arith.constant dense<0.000000e+00> : vector<16xf32>
    %256 = vector.multi_reduction <add>, %255, %cst_111 [1] : vector<16x128xf32> to vector<16xf32>
    %257 = vector.shape_cast %256 : vector<16xf32> to vector<16x1xf32>
    %cst_112 = arith.constant 1.280000e+02 : f32
    %258 = vector.broadcast %cst_112 : f32 to vector<16x1xf32>
    %259 = arith.divf %257, %258 : vector<16x1xf32>
    %cst_113 = arith.constant 9.99999996E-13 : f32
    %260 = vector.broadcast %cst_113 : f32 to vector<16x1xf32>
    %261 = arith.addf %259, %260 : vector<16x1xf32>
    %262 = math.rsqrt %261 : vector<16x1xf32>
    %263 = vector.broadcast %262 : vector<16x1xf32> to vector<16x128xf32>
    %264 = arith.mulf %254, %263 : vector<16x128xf32>
    %265 = arith.truncf %264 : vector<16x128xf32> to vector<16x128xbf16>
    %c0_114 = arith.constant 0 : index
    %c1 = arith.constant 1 : index
    %c0_115 = arith.constant 0 : index
    %c0_116 = arith.constant 0 : index
    %266 = vector.load %arg5[%c0_114, %c1, %c0_115, %c0_116] : memref<1x2x128x768xbf16, #tpu.memory_space<vmem>>, vector<1x1x128x768xbf16>
    %267 = vector.shape_cast %266 : vector<1x1x128x768xbf16> to vector<128x768xbf16>
    %cst_117 = arith.constant dense<0.000000e+00> : vector<16x768xf32>
    %268 = tpu.matmul %265, %267, %cst_117 {dimension_numbers = #tpu.dot_dimension_numbers<[1], [0], [0], [1], [0, 0, 1, 1], [], []>} : vector<16x128xbf16>, vector<128x768xbf16>, vector<16x768xf32> -> vector<16x768xf32>
    %c0_118 = arith.constant 0 : index
    %c1_119 = arith.constant 1 : index
    %c0_120 = arith.constant 0 : index
    %c0_121 = arith.constant 0 : index
    %269 = vector.load %arg6[%c0_118, %c1_119, %c0_120, %c0_121] : memref<1x2x1x768xf32, #tpu.memory_space<vmem>>, vector<1x1x1x768xf32>
    %270 = vector.shape_cast %269 : vector<1x1x1x768xf32> to vector<1x768xf32>
    %271 = vector.broadcast %270 : vector<1x768xf32> to vector<16x768xf32>
    %272 = arith.addf %268, %271 : vector<16x768xf32>
    %273 = arith.truncf %272 : vector<16x768xf32> to vector<16x768xbf16>
    %274 = vector.extract_strided_slice %273 {offsets = [0, 0], sizes = [16, 128], strides = [1, 1]} : vector<16x768xbf16> to vector<16x128xbf16>
    %275 = vector.extract_strided_slice %273 {offsets = [0, 128], sizes = [16, 640], strides = [1, 1]} : vector<16x768xbf16> to vector<16x640xbf16>
    %c0_122 = arith.constant 0 : index
    %c1_123 = arith.constant 1 : index
    %c0_124 = arith.constant 0 : index
    %c0_125 = arith.constant 0 : index
    %276 = vector.load %arg7[%c0_122, %c1_123, %c0_124, %c0_125] : memref<1x2x1x128xf32, #tpu.memory_space<vmem>>, vector<1x1x1x128xf32>
    %277 = vector.shape_cast %276 : vector<1x1x1x128xf32> to vector<1x128xf32>
    %278 = vector.extract_strided_slice %275 {offsets = [0, 0], sizes = [16, 128], strides = [1, 1]} : vector<16x640xbf16> to vector<16x128xbf16>
    %279 = vector.extract_strided_slice %274 {offsets = [0, 0], sizes = [16, 32], strides = [1, 1]} : vector<16x128xbf16> to vector<16x32xbf16>
    %280 = vector.extract_strided_slice %278 {offsets = [0, 0], sizes = [16, 32], strides = [1, 1]} : vector<16x128xbf16> to vector<16x32xbf16>
    %cst_126 = arith.constant dense<0.000000e+00> : vector<16x16xf32>
    %281 = tpu.matmul %279, %280, %cst_126 {dimension_numbers = #tpu.dot_dimension_numbers<[1], [1], [0], [0], [0, 0, 1, 0], [], []>} : vector<16x32xbf16>, vector<16x32xbf16>, vector<16x16xf32> -> vector<16x16xf32>
    %cst_127 = arith.constant 0.176776692 : f32
    %282 = vector.broadcast %cst_127 : f32 to vector<16x16xf32>
    %283 = arith.mulf %281, %282 : vector<16x16xf32>
    %284 = arith.addf %283, %2 : vector<16x16xf32>
    %285 = math.exp %284 : vector<16x16xf32>
    %cst_128 = arith.constant dense<0.000000e+00> : vector<16xf32>
    %286 = vector.multi_reduction <add>, %285, %cst_128 [1] : vector<16x16xf32> to vector<16xf32>
    %287 = vector.shape_cast %286 : vector<16xf32> to vector<16x1xf32>
    %cst_129 = arith.constant 1.000000e-30 : f32
    %288 = vector.broadcast %cst_129 : f32 to vector<16x1xf32>
    %289 = arith.addf %287, %288 : vector<16x1xf32>
    %290 = tpu.reciprocal %289 {approx = true} : vector<16x1xf32> -> vector<16x1xf32>
    %291 = vector.broadcast %290 : vector<16x1xf32> to vector<16x16xf32>
    %292 = arith.mulf %285, %291 : vector<16x16xf32>
    %293 = arith.truncf %292 : vector<16x16xf32> to vector<16x16xbf16>
    %294 = vector.extract_strided_slice %274 {offsets = [0, 32], sizes = [16, 32], strides = [1, 1]} : vector<16x128xbf16> to vector<16x32xbf16>
    %295 = vector.extract_strided_slice %278 {offsets = [0, 32], sizes = [16, 32], strides = [1, 1]} : vector<16x128xbf16> to vector<16x32xbf16>
    %cst_130 = arith.constant dense<0.000000e+00> : vector<16x16xf32>
    %296 = tpu.matmul %294, %295, %cst_130 {dimension_numbers = #tpu.dot_dimension_numbers<[1], [1], [0], [0], [0, 0, 1, 0], [], []>} : vector<16x32xbf16>, vector<16x32xbf16>, vector<16x16xf32> -> vector<16x16xf32>
    %cst_131 = arith.constant 0.176776692 : f32
    %297 = vector.broadcast %cst_131 : f32 to vector<16x16xf32>
    %298 = arith.mulf %296, %297 : vector<16x16xf32>
    %299 = arith.addf %298, %2 : vector<16x16xf32>
    %300 = math.exp %299 : vector<16x16xf32>
    %cst_132 = arith.constant dense<0.000000e+00> : vector<16xf32>
    %301 = vector.multi_reduction <add>, %300, %cst_132 [1] : vector<16x16xf32> to vector<16xf32>
    %302 = vector.shape_cast %301 : vector<16xf32> to vector<16x1xf32>
    %cst_133 = arith.constant 1.000000e-30 : f32
    %303 = vector.broadcast %cst_133 : f32 to vector<16x1xf32>
    %304 = arith.addf %302, %303 : vector<16x1xf32>
    %305 = tpu.reciprocal %304 {approx = true} : vector<16x1xf32> -> vector<16x1xf32>
    %306 = vector.broadcast %305 : vector<16x1xf32> to vector<16x16xf32>
    %307 = arith.mulf %300, %306 : vector<16x16xf32>
    %308 = arith.truncf %307 : vector<16x16xf32> to vector<16x16xbf16>
    %309 = vector.extract_strided_slice %274 {offsets = [0, 64], sizes = [16, 32], strides = [1, 1]} : vector<16x128xbf16> to vector<16x32xbf16>
    %310 = vector.extract_strided_slice %278 {offsets = [0, 64], sizes = [16, 32], strides = [1, 1]} : vector<16x128xbf16> to vector<16x32xbf16>
    %cst_134 = arith.constant dense<0.000000e+00> : vector<16x16xf32>
    %311 = tpu.matmul %309, %310, %cst_134 {dimension_numbers = #tpu.dot_dimension_numbers<[1], [1], [0], [0], [0, 0, 1, 0], [], []>} : vector<16x32xbf16>, vector<16x32xbf16>, vector<16x16xf32> -> vector<16x16xf32>
    %cst_135 = arith.constant 0.176776692 : f32
    %312 = vector.broadcast %cst_135 : f32 to vector<16x16xf32>
    %313 = arith.mulf %311, %312 : vector<16x16xf32>
    %314 = arith.addf %313, %2 : vector<16x16xf32>
    %315 = math.exp %314 : vector<16x16xf32>
    %cst_136 = arith.constant dense<0.000000e+00> : vector<16xf32>
    %316 = vector.multi_reduction <add>, %315, %cst_136 [1] : vector<16x16xf32> to vector<16xf32>
    %317 = vector.shape_cast %316 : vector<16xf32> to vector<16x1xf32>
    %cst_137 = arith.constant 1.000000e-30 : f32
    %318 = vector.broadcast %cst_137 : f32 to vector<16x1xf32>
    %319 = arith.addf %317, %318 : vector<16x1xf32>
    %320 = tpu.reciprocal %319 {approx = true} : vector<16x1xf32> -> vector<16x1xf32>
    %321 = vector.broadcast %320 : vector<16x1xf32> to vector<16x16xf32>
    %322 = arith.mulf %315, %321 : vector<16x16xf32>
    %323 = arith.truncf %322 : vector<16x16xf32> to vector<16x16xbf16>
    %324 = vector.extract_strided_slice %274 {offsets = [0, 96], sizes = [16, 32], strides = [1, 1]} : vector<16x128xbf16> to vector<16x32xbf16>
    %325 = vector.extract_strided_slice %278 {offsets = [0, 96], sizes = [16, 32], strides = [1, 1]} : vector<16x128xbf16> to vector<16x32xbf16>
    %cst_138 = arith.constant dense<0.000000e+00> : vector<16x16xf32>
    %326 = tpu.matmul %324, %325, %cst_138 {dimension_numbers = #tpu.dot_dimension_numbers<[1], [1], [0], [0], [0, 0, 1, 0], [], []>} : vector<16x32xbf16>, vector<16x32xbf16>, vector<16x16xf32> -> vector<16x16xf32>
    %cst_139 = arith.constant 0.176776692 : f32
    %327 = vector.broadcast %cst_139 : f32 to vector<16x16xf32>
    %328 = arith.mulf %326, %327 : vector<16x16xf32>
    %329 = arith.addf %328, %2 : vector<16x16xf32>
    %330 = math.exp %329 : vector<16x16xf32>
    %cst_140 = arith.constant dense<0.000000e+00> : vector<16xf32>
    %331 = vector.multi_reduction <add>, %330, %cst_140 [1] : vector<16x16xf32> to vector<16xf32>
    %332 = vector.shape_cast %331 : vector<16xf32> to vector<16x1xf32>
    %cst_141 = arith.constant 1.000000e-30 : f32
    %333 = vector.broadcast %cst_141 : f32 to vector<16x1xf32>
    %334 = arith.addf %332, %333 : vector<16x1xf32>
    %335 = tpu.reciprocal %334 {approx = true} : vector<16x1xf32> -> vector<16x1xf32>
    %336 = vector.broadcast %335 : vector<16x1xf32> to vector<16x16xf32>
    %337 = arith.mulf %330, %336 : vector<16x16xf32>
    %338 = arith.truncf %337 : vector<16x16xf32> to vector<16x16xbf16>
    %339 = tpu.concatenate %293, %308, %323, %338 in 1 : vector<16x16xbf16>, vector<16x16xbf16>, vector<16x16xbf16>, vector<16x16xbf16> -> vector<16x64xbf16>
    %340 = vector.extract_strided_slice %275 {offsets = [0, 128], sizes = [16, 128], strides = [1, 1]} : vector<16x640xbf16> to vector<16x128xbf16>
    %341 = vector.extract_strided_slice %275 {offsets = [0, 256], sizes = [16, 128], strides = [1, 1]} : vector<16x640xbf16> to vector<16x128xbf16>
    %342 = vector.extract_strided_slice %275 {offsets = [0, 384], sizes = [16, 128], strides = [1, 1]} : vector<16x640xbf16> to vector<16x128xbf16>
    %343 = vector.extract_strided_slice %275 {offsets = [0, 512], sizes = [16, 128], strides = [1, 1]} : vector<16x640xbf16> to vector<16x128xbf16>
    %344 = tpu.concatenate %340, %341, %342, %343 in 0 : vector<16x128xbf16>, vector<16x128xbf16>, vector<16x128xbf16>, vector<16x128xbf16> -> vector<64x128xbf16>
    %cst_142 = arith.constant dense<0.000000e+00> : vector<16x128xf32>
    %345 = tpu.matmul %339, %344, %cst_142 {dimension_numbers = #tpu.dot_dimension_numbers<[1], [0], [0], [1], [0, 0, 1, 1], [], []>} : vector<16x64xbf16>, vector<64x128xbf16>, vector<16x128xf32> -> vector<16x128xf32>
    %346 = vector.broadcast %277 : vector<1x128xf32> to vector<16x128xf32>
    %347 = arith.addf %345, %346 : vector<16x128xf32>
    %348 = arith.addf %248, %347 : vector<16x128xf32>
    %cst_143 = arith.constant dense<0.000000e+00> : vector<16xf32>
    %349 = vector.multi_reduction <add>, %348, %cst_143 [1] : vector<16x128xf32> to vector<16xf32>
    %350 = vector.shape_cast %349 : vector<16xf32> to vector<16x1xf32>
    %cst_144 = arith.constant 1.280000e+02 : f32
    %351 = vector.broadcast %cst_144 : f32 to vector<16x1xf32>
    %352 = arith.divf %350, %351 : vector<16x1xf32>
    %353 = vector.broadcast %352 : vector<16x1xf32> to vector<16x128xf32>
    %354 = arith.subf %348, %353 : vector<16x128xf32>
    %355 = arith.mulf %354, %354 : vector<16x128xf32>
    %cst_145 = arith.constant dense<0.000000e+00> : vector<16xf32>
    %356 = vector.multi_reduction <add>, %355, %cst_145 [1] : vector<16x128xf32> to vector<16xf32>
    %357 = vector.shape_cast %356 : vector<16xf32> to vector<16x1xf32>
    %cst_146 = arith.constant 1.280000e+02 : f32
    %358 = vector.broadcast %cst_146 : f32 to vector<16x1xf32>
    %359 = arith.divf %357, %358 : vector<16x1xf32>
    %cst_147 = arith.constant 9.99999996E-13 : f32
    %360 = vector.broadcast %cst_147 : f32 to vector<16x1xf32>
    %361 = arith.addf %359, %360 : vector<16x1xf32>
    %362 = math.rsqrt %361 : vector<16x1xf32>
    %363 = vector.broadcast %362 : vector<16x1xf32> to vector<16x128xf32>
    %364 = arith.mulf %354, %363 : vector<16x128xf32>
    %365 = arith.truncf %364 : vector<16x128xf32> to vector<16x128xbf16>
    %c0_148 = arith.constant 0 : index
    %c1_149 = arith.constant 1 : index
    %c0_150 = arith.constant 0 : index
    %c0_151 = arith.constant 0 : index
    %366 = vector.load %arg8[%c0_148, %c1_149, %c0_150, %c0_151] : memref<1x2x128x128xbf16, #tpu.memory_space<vmem>>, vector<1x1x128x128xbf16>
    %367 = vector.shape_cast %366 : vector<1x1x128x128xbf16> to vector<128x128xbf16>
    %cst_152 = arith.constant dense<0.000000e+00> : vector<16x128xf32>
    %368 = tpu.matmul %365, %367, %cst_152 {dimension_numbers = #tpu.dot_dimension_numbers<[1], [0], [0], [1], [0, 0, 1, 1], [], []>} : vector<16x128xbf16>, vector<128x128xbf16>, vector<16x128xf32> -> vector<16x128xf32>
    %c0_153 = arith.constant 0 : index
    %c1_154 = arith.constant 1 : index
    %c0_155 = arith.constant 0 : index
    %c0_156 = arith.constant 0 : index
    %369 = vector.load %arg9[%c0_153, %c1_154, %c0_155, %c0_156] : memref<1x2x1x128xf32, #tpu.memory_space<vmem>>, vector<1x1x1x128xf32>
    %370 = vector.shape_cast %369 : vector<1x1x1x128xf32> to vector<1x128xf32>
    %371 = vector.broadcast %370 : vector<1x128xf32> to vector<16x128xf32>
    %372 = arith.addf %368, %371 : vector<16x128xf32>
    %373 = arith.truncf %372 : vector<16x128xf32> to vector<16x128xbf16>
    %374 = vector.extract_strided_slice %14 {offsets = [0, 640], sizes = [16, 640], strides = [1, 1]} : vector<16x1280xbf16> to vector<16x640xbf16>
    %c0_157 = arith.constant 0 : index
    %c1_158 = arith.constant 1 : index
    %c0_159 = arith.constant 0 : index
    %c0_160 = arith.constant 0 : index
    %375 = vector.load %arg12[%c0_157, %c1_158, %c0_159, %c0_160] : memref<1x2x1x128xf32, #tpu.memory_space<vmem>>, vector<1x1x1x128xf32>
    %376 = vector.shape_cast %375 : vector<1x1x1x128xf32> to vector<1x128xf32>
    %377 = vector.extract_strided_slice %374 {offsets = [0, 0], sizes = [16, 128], strides = [1, 1]} : vector<16x640xbf16> to vector<16x128xbf16>
    %378 = vector.extract_strided_slice %373 {offsets = [0, 0], sizes = [16, 32], strides = [1, 1]} : vector<16x128xbf16> to vector<16x32xbf16>
    %379 = vector.extract_strided_slice %377 {offsets = [0, 0], sizes = [16, 32], strides = [1, 1]} : vector<16x128xbf16> to vector<16x32xbf16>
    %cst_161 = arith.constant dense<0.000000e+00> : vector<16x16xf32>
    %380 = tpu.matmul %378, %379, %cst_161 {dimension_numbers = #tpu.dot_dimension_numbers<[1], [1], [0], [0], [0, 0, 1, 0], [], []>} : vector<16x32xbf16>, vector<16x32xbf16>, vector<16x16xf32> -> vector<16x16xf32>
    %cst_162 = arith.constant 0.176776692 : f32
    %381 = vector.broadcast %cst_162 : f32 to vector<16x16xf32>
    %382 = arith.mulf %380, %381 : vector<16x16xf32>
    %383 = arith.addf %382, %3 : vector<16x16xf32>
    %384 = math.exp %383 : vector<16x16xf32>
    %cst_163 = arith.constant dense<0.000000e+00> : vector<16xf32>
    %385 = vector.multi_reduction <add>, %384, %cst_163 [1] : vector<16x16xf32> to vector<16xf32>
    %386 = vector.shape_cast %385 : vector<16xf32> to vector<16x1xf32>
    %cst_164 = arith.constant 1.000000e-30 : f32
    %387 = vector.broadcast %cst_164 : f32 to vector<16x1xf32>
    %388 = arith.addf %386, %387 : vector<16x1xf32>
    %389 = tpu.reciprocal %388 {approx = true} : vector<16x1xf32> -> vector<16x1xf32>
    %390 = vector.broadcast %389 : vector<16x1xf32> to vector<16x16xf32>
    %391 = arith.mulf %384, %390 : vector<16x16xf32>
    %392 = arith.truncf %391 : vector<16x16xf32> to vector<16x16xbf16>
    %393 = vector.extract_strided_slice %373 {offsets = [0, 32], sizes = [16, 32], strides = [1, 1]} : vector<16x128xbf16> to vector<16x32xbf16>
    %394 = vector.extract_strided_slice %377 {offsets = [0, 32], sizes = [16, 32], strides = [1, 1]} : vector<16x128xbf16> to vector<16x32xbf16>
    %cst_165 = arith.constant dense<0.000000e+00> : vector<16x16xf32>
    %395 = tpu.matmul %393, %394, %cst_165 {dimension_numbers = #tpu.dot_dimension_numbers<[1], [1], [0], [0], [0, 0, 1, 0], [], []>} : vector<16x32xbf16>, vector<16x32xbf16>, vector<16x16xf32> -> vector<16x16xf32>
    %cst_166 = arith.constant 0.176776692 : f32
    %396 = vector.broadcast %cst_166 : f32 to vector<16x16xf32>
    %397 = arith.mulf %395, %396 : vector<16x16xf32>
    %398 = arith.addf %397, %3 : vector<16x16xf32>
    %399 = math.exp %398 : vector<16x16xf32>
    %cst_167 = arith.constant dense<0.000000e+00> : vector<16xf32>
    %400 = vector.multi_reduction <add>, %399, %cst_167 [1] : vector<16x16xf32> to vector<16xf32>
    %401 = vector.shape_cast %400 : vector<16xf32> to vector<16x1xf32>
    %cst_168 = arith.constant 1.000000e-30 : f32
    %402 = vector.broadcast %cst_168 : f32 to vector<16x1xf32>
    %403 = arith.addf %401, %402 : vector<16x1xf32>
    %404 = tpu.reciprocal %403 {approx = true} : vector<16x1xf32> -> vector<16x1xf32>
    %405 = vector.broadcast %404 : vector<16x1xf32> to vector<16x16xf32>
    %406 = arith.mulf %399, %405 : vector<16x16xf32>
    %407 = arith.truncf %406 : vector<16x16xf32> to vector<16x16xbf16>
    %408 = vector.extract_strided_slice %373 {offsets = [0, 64], sizes = [16, 32], strides = [1, 1]} : vector<16x128xbf16> to vector<16x32xbf16>
    %409 = vector.extract_strided_slice %377 {offsets = [0, 64], sizes = [16, 32], strides = [1, 1]} : vector<16x128xbf16> to vector<16x32xbf16>
    %cst_169 = arith.constant dense<0.000000e+00> : vector<16x16xf32>
    %410 = tpu.matmul %408, %409, %cst_169 {dimension_numbers = #tpu.dot_dimension_numbers<[1], [1], [0], [0], [0, 0, 1, 0], [], []>} : vector<16x32xbf16>, vector<16x32xbf16>, vector<16x16xf32> -> vector<16x16xf32>
    %cst_170 = arith.constant 0.176776692 : f32
    %411 = vector.broadcast %cst_170 : f32 to vector<16x16xf32>
    %412 = arith.mulf %410, %411 : vector<16x16xf32>
    %413 = arith.addf %412, %3 : vector<16x16xf32>
    %414 = math.exp %413 : vector<16x16xf32>
    %cst_171 = arith.constant dense<0.000000e+00> : vector<16xf32>
    %415 = vector.multi_reduction <add>, %414, %cst_171 [1] : vector<16x16xf32> to vector<16xf32>
    %416 = vector.shape_cast %415 : vector<16xf32> to vector<16x1xf32>
    %cst_172 = arith.constant 1.000000e-30 : f32
    %417 = vector.broadcast %cst_172 : f32 to vector<16x1xf32>
    %418 = arith.addf %416, %417 : vector<16x1xf32>
    %419 = tpu.reciprocal %418 {approx = true} : vector<16x1xf32> -> vector<16x1xf32>
    %420 = vector.broadcast %419 : vector<16x1xf32> to vector<16x16xf32>
    %421 = arith.mulf %414, %420 : vector<16x16xf32>
    %422 = arith.truncf %421 : vector<16x16xf32> to vector<16x16xbf16>
    %423 = vector.extract_strided_slice %373 {offsets = [0, 96], sizes = [16, 32], strides = [1, 1]} : vector<16x128xbf16> to vector<16x32xbf16>
    %424 = vector.extract_strided_slice %377 {offsets = [0, 96], sizes = [16, 32], strides = [1, 1]} : vector<16x128xbf16> to vector<16x32xbf16>
    %cst_173 = arith.constant dense<0.000000e+00> : vector<16x16xf32>
    %425 = tpu.matmul %423, %424, %cst_173 {dimension_numbers = #tpu.dot_dimension_numbers<[1], [1], [0], [0], [0, 0, 1, 0], [], []>} : vector<16x32xbf16>, vector<16x32xbf16>, vector<16x16xf32> -> vector<16x16xf32>
    %cst_174 = arith.constant 0.176776692 : f32
    %426 = vector.broadcast %cst_174 : f32 to vector<16x16xf32>
    %427 = arith.mulf %425, %426 : vector<16x16xf32>
    %428 = arith.addf %427, %3 : vector<16x16xf32>
    %429 = math.exp %428 : vector<16x16xf32>
    %cst_175 = arith.constant dense<0.000000e+00> : vector<16xf32>
    %430 = vector.multi_reduction <add>, %429, %cst_175 [1] : vector<16x16xf32> to vector<16xf32>
    %431 = vector.shape_cast %430 : vector<16xf32> to vector<16x1xf32>
    %cst_176 = arith.constant 1.000000e-30 : f32
    %432 = vector.broadcast %cst_176 : f32 to vector<16x1xf32>
    %433 = arith.addf %431, %432 : vector<16x1xf32>
    %434 = tpu.reciprocal %433 {approx = true} : vector<16x1xf32> -> vector<16x1xf32>
    %435 = vector.broadcast %434 : vector<16x1xf32> to vector<16x16xf32>
    %436 = arith.mulf %429, %435 : vector<16x16xf32>
    %437 = arith.truncf %436 : vector<16x16xf32> to vector<16x16xbf16>
    %438 = tpu.concatenate %392, %407, %422, %437 in 1 : vector<16x16xbf16>, vector<16x16xbf16>, vector<16x16xbf16>, vector<16x16xbf16> -> vector<16x64xbf16>
    %439 = vector.extract_strided_slice %374 {offsets = [0, 128], sizes = [16, 128], strides = [1, 1]} : vector<16x640xbf16> to vector<16x128xbf16>
    %440 = vector.extract_strided_slice %374 {offsets = [0, 256], sizes = [16, 128], strides = [1, 1]} : vector<16x640xbf16> to vector<16x128xbf16>
    %441 = vector.extract_strided_slice %374 {offsets = [0, 384], sizes = [16, 128], strides = [1, 1]} : vector<16x640xbf16> to vector<16x128xbf16>
    %442 = vector.extract_strided_slice %374 {offsets = [0, 512], sizes = [16, 128], strides = [1, 1]} : vector<16x640xbf16> to vector<16x128xbf16>
    %443 = tpu.concatenate %439, %440, %441, %442 in 0 : vector<16x128xbf16>, vector<16x128xbf16>, vector<16x128xbf16>, vector<16x128xbf16> -> vector<64x128xbf16>
    %cst_177 = arith.constant dense<0.000000e+00> : vector<16x128xf32>
    %444 = tpu.matmul %438, %443, %cst_177 {dimension_numbers = #tpu.dot_dimension_numbers<[1], [0], [0], [1], [0, 0, 1, 1], [], []>} : vector<16x64xbf16>, vector<64x128xbf16>, vector<16x128xf32> -> vector<16x128xf32>
    %445 = vector.broadcast %376 : vector<1x128xf32> to vector<16x128xf32>
    %446 = arith.addf %444, %445 : vector<16x128xf32>
    %447 = arith.addf %348, %446 : vector<16x128xf32>
    %c0_i32 = arith.constant 0 : i32
    %448 = arith.cmpi eq, %arg0, %c0_i32 : i32
    %449 = arith.extui %448 : i1 to i32
    %c0_i32_178 = arith.constant 0 : i32
    %450 = arith.cmpi ne, %449, %c0_i32_178 : i32
    scf.if %450 {
      %c0_180 = arith.constant 0 : index
      %c0_181 = arith.constant 0 : index
      %454 = vector.load %arg25[%c0_180, %c0_181] : memref<16x128xf32, #tpu.memory_space<vmem>>, vector<16x128xf32>
      tpu.vector_store %arg25[%c0_180, %c0_181], %447 {strides = array<i32>} : memref<16x128xf32, #tpu.memory_space<vmem>>, vector<16x128xf32>,
    } else {
    }
    %c1_i32 = arith.constant 1 : i32
    %451 = arith.cmpi eq, %arg0, %c1_i32 : i32
    %452 = arith.extui %451 : i1 to i32
    %c0_i32_179 = arith.constant 0 : i32
    %453 = arith.cmpi ne, %452, %c0_i32_179 : i32
    scf.if %453 {
      %c0_180 = arith.constant 0 : index
      %c0_181 = arith.constant 0 : index
      %454 = vector.load %arg25[%c0_180, %c0_181] : memref<16x128xf32, #tpu.memory_space<vmem>>, vector<16x128xf32>
      %455 = arith.addf %454, %447 : vector<16x128xf32>
      %cst_182 = arith.constant 5.000000e-01 : f32
      %456 = vector.broadcast %cst_182 : f32 to vector<16x128xf32>
      %457 = arith.mulf %456, %455 : vector<16x128xf32>
      %458 = tpu.concatenate %457, %454, %447 in 0 : vector<16x128xf32>, vector<16x128xf32>, vector<16x128xf32> -> vector<48x128xf32>
      %459 = arith.truncf %458 : vector<48x128xf32> to vector<48x128xbf16>
      %c0_183 = arith.constant 0 : index
      %c0_184 = arith.constant 0 : index
      %460 = vector.load %arg17[%c0_183, %c0_184] : memref<128x384xbf16, #tpu.memory_space<vmem>>, vector<128x384xbf16>
      %cst_185 = arith.constant dense<0.000000e+00> : vector<48x384xf32>
      %461 = tpu.matmul %459, %460, %cst_185 {dimension_numbers = #tpu.dot_dimension_numbers<[1], [0], [0], [1], [0, 0, 1, 1], [], []>} : vector<48x128xbf16>, vector<128x384xbf16>, vector<48x384xf32> -> vector<48x384xf32>
      %462 = vector.extract_strided_slice %461 {offsets = [0, 0], sizes = [16, 128], strides = [1, 1]} : vector<48x384xf32> to vector<16x128xf32>
      %463 = vector.extract_strided_slice %461 {offsets = [16, 128], sizes = [16, 256], strides = [1, 1]} : vector<48x384xf32> to vector<16x256xf32>
      %464 = vector.extract_strided_slice %461 {offsets = [32, 128], sizes = [16, 256], strides = [1, 1]} : vector<48x384xf32> to vector<16x256xf32>
      %465 = vector.extract_strided_slice %463 {offsets = [0, 0], sizes = [16, 128], strides = [1, 1]} : vector<16x256xf32> to vector<16x128xf32>
      %466 = arith.mulf %462, %465 : vector<16x128xf32>
      %cst_186 = arith.constant dense<0.000000e+00> : vector<16xf32>
      %467 = vector.multi_reduction <add>, %466, %cst_186 [1] : vector<16x128xf32> to vector<16xf32>
      %468 = vector.shape_cast %467 : vector<16xf32> to vector<16x1xf32>
      %cst_187 = arith.constant 0.0883883461 : f32
      %469 = vector.broadcast %cst_187 : f32 to vector<16x1xf32>
      %470 = arith.mulf %468, %469 : vector<16x1xf32>
      %471 = vector.extract_strided_slice %464 {offsets = [0, 0], sizes = [16, 128], strides = [1, 1]} : vector<16x256xf32> to vector<16x128xf32>
      %472 = arith.mulf %462, %471 : vector<16x128xf32>
      %cst_188 = arith.constant dense<0.000000e+00> : vector<16xf32>
      %473 = vector.multi_reduction <add>, %472, %cst_188 [1] : vector<16x128xf32> to vector<16xf32>
      %474 = vector.shape_cast %473 : vector<16xf32> to vector<16x1xf32>
      %cst_189 = arith.constant 0.0883883461 : f32
      %475 = vector.broadcast %cst_189 : f32 to vector<16x1xf32>
      %476 = arith.mulf %474, %475 : vector<16x1xf32>
      %477 = arith.subf %470, %476 : vector<16x1xf32>
      %cst_190 = arith.constant 5.000000e-01 : f32
      %478 = vector.broadcast %cst_190 : f32 to vector<16x1xf32>
      %479 = arith.mulf %478, %477 : vector<16x1xf32>
      %cst_191 = arith.constant 5.000000e-01 : f32
      %480 = vector.broadcast %cst_191 : f32 to vector<16x1xf32>
      %481 = arith.addf %479, %480 : vector<16x1xf32>
      %cst_192 = arith.constant 0.000000e+00 : f32
      %cst_193 = arith.constant 1.000000e+00 : f32
      %482 = vector.broadcast %cst_192 : f32 to vector<16x1xf32>
      %483 = arith.maximumf %482, %481 : vector<16x1xf32>
      %484 = vector.broadcast %cst_193 : f32 to vector<16x1xf32>
      %485 = arith.minimumf %484, %483 : vector<16x1xf32>
      %486 = vector.extract_strided_slice %463 {offsets = [0, 128], sizes = [16, 128], strides = [1, 1]} : vector<16x256xf32> to vector<16x128xf32>
      %487 = vector.broadcast %485 : vector<16x1xf32> to vector<16x128xf32>
      %488 = arith.mulf %487, %486 : vector<16x128xf32>
      %cst_194 = arith.constant 1.000000e+00 : f32
      %489 = vector.broadcast %cst_194 : f32 to vector<16x1xf32>
      %490 = arith.subf %489, %485 : vector<16x1xf32>
      %491 = vector.extract_strided_slice %464 {offsets = [0, 128], sizes = [16, 128], strides = [1, 1]} : vector<16x256xf32> to vector<16x128xf32>
      %492 = vector.broadcast %490 : vector<16x1xf32> to vector<16x128xf32>
      %493 = arith.mulf %492, %491 : vector<16x128xf32>
      %494 = arith.addf %488, %493 : vector<16x128xf32>
      %cst_195 = arith.constant dense<0.000000e+00> : vector<16xf32>
      %495 = vector.multi_reduction <add>, %494, %cst_195 [1] : vector<16x128xf32> to vector<16xf32>
      %496 = vector.shape_cast %495 : vector<16xf32> to vector<16x1xf32>
      %cst_196 = arith.constant 1.280000e+02 : f32
      %497 = vector.broadcast %cst_196 : f32 to vector<16x1xf32>
      %498 = arith.divf %496, %497 : vector<16x1xf32>
      %499 = vector.broadcast %498 : vector<16x1xf32> to vector<16x128xf32>
      %500 = arith.subf %494, %499 : vector<16x128xf32>
      %501 = arith.mulf %500, %500 : vector<16x128xf32>
      %cst_197 = arith.constant dense<0.000000e+00> : vector<16xf32>
      %502 = vector.multi_reduction <add>, %501, %cst_197 [1] : vector<16x128xf32> to vector<16xf32>
      %503 = vector.shape_cast %502 : vector<16xf32> to vector<16x1xf32>
      %cst_198 = arith.constant 1.280000e+02 : f32
      %504 = vector.broadcast %cst_198 : f32 to vector<16x1xf32>
      %505 = arith.divf %503, %504 : vector<16x1xf32>
      %cst_199 = arith.constant 9.99999996E-13 : f32
      %506 = vector.broadcast %cst_199 : f32 to vector<16x1xf32>
      %507 = arith.addf %505, %506 : vector<16x1xf32>
      %508 = math.rsqrt %507 : vector<16x1xf32>
      %509 = vector.broadcast %508 : vector<16x1xf32> to vector<16x128xf32>
      %510 = arith.mulf %500, %509 : vector<16x128xf32>
      %511 = arith.truncf %510 : vector<16x128xf32> to vector<16x128xbf16>
      %c0_200 = arith.constant 0 : index
      %c0_201 = arith.constant 0 : index
      %512 = vector.load %arg18[%c0_200, %c0_201] : memref<128x256xbf16, #tpu.memory_space<vmem>>, vector<128x256xbf16>
      %cst_202 = arith.constant dense<0.000000e+00> : vector<16x256xf32>
      %513 = tpu.matmul %511, %512, %cst_202 {dimension_numbers = #tpu.dot_dimension_numbers<[1], [0], [0], [1], [0, 0, 1, 1], [], []>} : vector<16x128xbf16>, vector<128x256xbf16>, vector<16x256xf32> -> vector<16x256xf32>
      %c0_203 = arith.constant 0 : index
      %c0_204 = arith.constant 0 : index
      %514 = vector.load %arg19[%c0_203, %c0_204] : memref<1x256xf32, #tpu.memory_space<vmem>>, vector<1x256xf32>
      %515 = vector.broadcast %514 : vector<1x256xf32> to vector<16x256xf32>
      %516 = arith.addf %513, %515 : vector<16x256xf32>
      %cst_205 = arith.constant 0.000000e+00 : f32
      %517 = vector.broadcast %cst_205 : f32 to vector<16x256xf32>
      %518 = arith.maximumf %516, %517 : vector<16x256xf32>
      %519 = arith.truncf %518 : vector<16x256xf32> to vector<16x256xbf16>
      %c0_206 = arith.constant 0 : index
      %c0_207 = arith.constant 0 : index
      %520 = vector.load %arg20[%c0_206, %c0_207] : memref<256x128xbf16, #tpu.memory_space<vmem>>, vector<256x128xbf16>
      %cst_208 = arith.constant dense<0.000000e+00> : vector<16x128xf32>
      %521 = tpu.matmul %519, %520, %cst_208 {dimension_numbers = #tpu.dot_dimension_numbers<[1], [0], [0], [1], [0, 0, 1, 1], [], []>} : vector<16x256xbf16>, vector<256x128xbf16>, vector<16x128xf32> -> vector<16x128xf32>
      %c0_209 = arith.constant 0 : index
      %c0_210 = arith.constant 0 : index
      %522 = vector.load %arg21[%c0_209, %c0_210] : memref<1x128xf32, #tpu.memory_space<vmem>>, vector<1x128xf32>
      %523 = vector.broadcast %522 : vector<1x128xf32> to vector<16x128xf32>
      %524 = arith.addf %521, %523 : vector<16x128xf32>
      %525 = arith.addf %494, %524 : vector<16x128xf32>
      %cst_211 = arith.constant dense<0.000000e+00> : vector<16xf32>
      %526 = vector.multi_reduction <add>, %525, %cst_211 [1] : vector<16x128xf32> to vector<16xf32>
      %527 = vector.shape_cast %526 : vector<16xf32> to vector<16x1xf32>
      %cst_212 = arith.constant 1.280000e+02 : f32
      %528 = vector.broadcast %cst_212 : f32 to vector<16x1xf32>
      %529 = arith.divf %527, %528 : vector<16x1xf32>
      %530 = vector.broadcast %529 : vector<16x1xf32> to vector<16x128xf32>
      %531 = arith.subf %525, %530 : vector<16x128xf32>
      %532 = arith.mulf %531, %531 : vector<16x128xf32>
      %cst_213 = arith.constant dense<0.000000e+00> : vector<16xf32>
      %533 = vector.multi_reduction <add>, %532, %cst_213 [1] : vector<16x128xf32> to vector<16xf32>
      %534 = vector.shape_cast %533 : vector<16xf32> to vector<16x1xf32>
      %cst_214 = arith.constant 1.280000e+02 : f32
      %535 = vector.broadcast %cst_214 : f32 to vector<16x1xf32>
      %536 = arith.divf %534, %535 : vector<16x1xf32>
      %cst_215 = arith.constant 9.99999996E-13 : f32
      %537 = vector.broadcast %cst_215 : f32 to vector<16x1xf32>
      %538 = arith.addf %536, %537 : vector<16x1xf32>
      %539 = math.rsqrt %538 : vector<16x1xf32>
      %540 = vector.broadcast %539 : vector<16x1xf32> to vector<16x128xf32>
      %541 = arith.mulf %531, %540 : vector<16x128xf32>
      %542 = arith.truncf %541 : vector<16x128xf32> to vector<16x128xbf16>
      %c0_216 = arith.constant 0 : index
      %c0_217 = arith.constant 0 : index
      %543 = vector.load %arg22[%c0_216, %c0_217] : memref<128x128xbf16, #tpu.memory_space<vmem>>, vector<128x128xbf16>
      %cst_218 = arith.constant dense<0.000000e+00> : vector<16x128xf32>
      %544 = tpu.matmul %542, %543, %cst_218 {dimension_numbers = #tpu.dot_dimension_numbers<[1], [0], [0], [1], [0, 0, 1, 1], [], []>} : vector<16x128xbf16>, vector<128x128xbf16>, vector<16x128xf32> -> vector<16x128xf32>
      %c0_219 = arith.constant 0 : index
      %c0_220 = arith.constant 0 : index
      %545 = vector.load %arg23[%c0_219, %c0_220] : memref<1x128xf32, #tpu.memory_space<vmem>>, vector<1x128xf32>
      %546 = vector.broadcast %545 : vector<1x128xf32> to vector<16x128xf32>
      %547 = arith.addf %544, %546 : vector<16x128xf32>
      %c0_221 = arith.constant 0 : index
      %c0_222 = arith.constant 0 : index
      %548 = vector.load %arg24[%c0_221, %c0_222] : memref<16x128xf32, #tpu.memory_space<vmem>>, vector<16x128xf32>
      tpu.vector_store %arg24[%c0_221, %c0_222], %547 {strides = array<i32>} : memref<16x128xf32, #tpu.memory_space<vmem>>, vector<16x128xf32>,
    } else {
    }
    return
  }
  func.func @transform_0(%arg0: i32) -> (i32, i32, i32) {
    %c0_i32 = arith.constant 0 : i32
    %c0_i32_0 = arith.constant 0 : i32
    %c0_i32_1 = arith.constant 0 : i32
    return %arg0, %c0_i32, %c0_i32_0 : i32, i32, i32
  }
  func.func @transform_1(%arg0: i32) -> (i32, i32, i32) {
    %c0_i32 = arith.constant 0 : i32
    %c0_i32_0 = arith.constant 0 : i32
    %c0_i32_1 = arith.constant 0 : i32
    return %arg0, %c0_i32, %c0_i32_0 : i32, i32, i32
  }
  func.func @transform_2(%arg0: i32) -> (i32, i32) {
    %c0_i32 = arith.constant 0 : i32
    %c0_i32_0 = arith.constant 0 : i32
    %c0_i32_1 = arith.constant 0 : i32
    return %c0_i32, %c0_i32_0 : i32, i32
  }
  func.func @transform_3(%arg0: i32) -> (i32, i32) {
    %c0_i32 = arith.constant 0 : i32
    %c0_i32_0 = arith.constant 0 : i32
    %c0_i32_1 = arith.constant 0 : i32
    return %c0_i32, %c0_i32_0 : i32, i32
  }
  func.func @transform_4(%arg0: i32) -> (i32, i32, i32, i32) {
    %c0_i32 = arith.constant 0 : i32
    %c0_i32_0 = arith.constant 0 : i32
    %c0_i32_1 = arith.constant 0 : i32
    %c0_i32_2 = arith.constant 0 : i32
    return %arg0, %c0_i32, %c0_i32_0, %c0_i32_1 : i32, i32, i32, i32
  }
  func.func @transform_5(%arg0: i32) -> (i32, i32, i32, i32) {
    %c0_i32 = arith.constant 0 : i32
    %c0_i32_0 = arith.constant 0 : i32
    %c0_i32_1 = arith.constant 0 : i32
    %c0_i32_2 = arith.constant 0 : i32
    return %arg0, %c0_i32, %c0_i32_0, %c0_i32_1 : i32, i32, i32, i32
  }
  func.func @transform_6(%arg0: i32) -> (i32, i32, i32, i32) {
    %c0_i32 = arith.constant 0 : i32
    %c0_i32_0 = arith.constant 0 : i32
    %c0_i32_1 = arith.constant 0 : i32
    %c0_i32_2 = arith.constant 0 : i32
    return %arg0, %c0_i32, %c0_i32_0, %c0_i32_1 : i32, i32, i32, i32
  }
  func.func @transform_7(%arg0: i32) -> (i32, i32, i32, i32) {
    %c0_i32 = arith.constant 0 : i32
    %c0_i32_0 = arith.constant 0 : i32
    %c0_i32_1 = arith.constant 0 : i32
    %c0_i32_2 = arith.constant 0 : i32
    return %arg0, %c0_i32, %c0_i32_0, %c0_i32_1 : i32, i32, i32, i32
  }
  func.func @transform_8(%arg0: i32) -> (i32, i32, i32, i32) {
    %c0_i32 = arith.constant 0 : i32
    %c0_i32_0 = arith.constant 0 : i32
    %c0_i32_1 = arith.constant 0 : i32
    %c0_i32_2 = arith.constant 0 : i32
    return %arg0, %c0_i32, %c0_i32_0, %c0_i32_1 : i32, i32, i32, i32
  }
  func.func @transform_9(%arg0: i32) -> (i32, i32, i32) {
    %c0_i32 = arith.constant 0 : i32
    %c0_i32_0 = arith.constant 0 : i32
    %c0_i32_1 = arith.constant 0 : i32
    return %arg0, %c0_i32, %c0_i32_0 : i32, i32, i32
  }
  func.func @transform_10(%arg0: i32) -> (i32, i32, i32) {
    %c0_i32 = arith.constant 0 : i32
    %c0_i32_0 = arith.constant 0 : i32
    %c0_i32_1 = arith.constant 0 : i32
    return %arg0, %c0_i32, %c0_i32_0 : i32, i32, i32
  }
  func.func @transform_11(%arg0: i32) -> (i32, i32, i32, i32) {
    %c0_i32 = arith.constant 0 : i32
    %c0_i32_0 = arith.constant 0 : i32
    %c0_i32_1 = arith.constant 0 : i32
    %c0_i32_2 = arith.constant 0 : i32
    return %arg0, %c0_i32, %c0_i32_0, %c0_i32_1 : i32, i32, i32, i32
  }
  func.func @transform_12(%arg0: i32) -> (i32, i32, i32, i32) {
    %c0_i32 = arith.constant 0 : i32
    %c0_i32_0 = arith.constant 0 : i32
    %c0_i32_1 = arith.constant 0 : i32
    %c0_i32_2 = arith.constant 0 : i32
    return %arg0, %c0_i32, %c0_i32_0, %c0_i32_1 : i32, i32, i32, i32
  }
  func.func @transform_13(%arg0: i32) -> (i32, i32, i32, i32) {
    %c0_i32 = arith.constant 0 : i32
    %c0_i32_0 = arith.constant 0 : i32
    %c0_i32_1 = arith.constant 0 : i32
    %c0_i32_2 = arith.constant 0 : i32
    return %arg0, %c0_i32, %c0_i32_0, %c0_i32_1 : i32, i32, i32, i32
  }
  func.func @transform_14(%arg0: i32) -> (i32, i32, i32, i32) {
    %c0_i32 = arith.constant 0 : i32
    %c0_i32_0 = arith.constant 0 : i32
    %c0_i32_1 = arith.constant 0 : i32
    %c0_i32_2 = arith.constant 0 : i32
    return %arg0, %c0_i32, %c0_i32_0, %c0_i32_1 : i32, i32, i32, i32
  }
  func.func @transform_15(%arg0: i32) -> (i32, i32, i32, i32) {
    %c0_i32 = arith.constant 0 : i32
    %c0_i32_0 = arith.constant 0 : i32
    %c0_i32_1 = arith.constant 0 : i32
    %c0_i32_2 = arith.constant 0 : i32
    return %arg0, %c0_i32, %c0_i32_0, %c0_i32_1 : i32, i32, i32, i32
  }
  func.func @transform_16(%arg0: i32) -> (i32, i32) {
    %c0_i32 = arith.constant 0 : i32
    %c0_i32_0 = arith.constant 0 : i32
    %c0_i32_1 = arith.constant 0 : i32
    return %c0_i32, %c0_i32_0 : i32, i32
  }
  func.func @transform_17(%arg0: i32) -> (i32, i32) {
    %c0_i32 = arith.constant 0 : i32
    %c0_i32_0 = arith.constant 0 : i32
    %c0_i32_1 = arith.constant 0 : i32
    return %c0_i32, %c0_i32_0 : i32, i32
  }
  func.func @transform_18(%arg0: i32) -> (i32, i32) {
    %c0_i32 = arith.constant 0 : i32
    %c0_i32_0 = arith.constant 0 : i32
    %c0_i32_1 = arith.constant 0 : i32
    return %c0_i32, %c0_i32_0 : i32, i32
  }
  func.func @transform_19(%arg0: i32) -> (i32, i32) {
    %c0_i32 = arith.constant 0 : i32
    %c0_i32_0 = arith.constant 0 : i32
    %c0_i32_1 = arith.constant 0 : i32
    return %c0_i32, %c0_i32_0 : i32, i32
  }
  func.func @transform_20(%arg0: i32) -> (i32, i32) {
    %c0_i32 = arith.constant 0 : i32
    %c0_i32_0 = arith.constant 0 : i32
    %c0_i32_1 = arith.constant 0 : i32
    return %c0_i32, %c0_i32_0 : i32, i32
  }
  func.func @transform_21(%arg0: i32) -> (i32, i32) {
    %c0_i32 = arith.constant 0 : i32
    %c0_i32_0 = arith.constant 0 : i32
    %c0_i32_1 = arith.constant 0 : i32
    return %c0_i32, %c0_i32_0 : i32, i32
  }
  func.func @transform_22(%arg0: i32) -> (i32, i32) {
    %c0_i32 = arith.constant 0 : i32
    %c0_i32_0 = arith.constant 0 : i32
    %c0_i32_1 = arith.constant 0 : i32
    return %c0_i32, %c0_i32_0 : i32, i32
  }
  func.func @transform_23(%arg0: i32) -> (i32, i32) {
    %c0_i32 = arith.constant 0 : i32
    %c0_i32_0 = arith.constant 0 : i32
    %c0_i32_1 = arith.constant 0 : i32
    return %c0_i32, %c0_i32_0 : i32, i32
  }
}

</mosaic_0001>

<bundles_post_ra>
// kernel: double_decoder_forward.1
= control target key start
LH: loop header
LB: loop body
LE: loop exit
PB: predicated region body
PF: predicated region fallthrough
CT: control target
= control target key end

     0   :  { %s8544_s0 = inlined_call_operand.vmem [shape: f32[2,16,128], index: 0, kind: input, shape index: {}]   ;;  %s8545_s1 = inlined_call_operand.vmem [shape: f32[2,16,128], index: 1, kind: input, shape index: {}]   ;;  %s8546_s2 = inlined_call_operand.vmem [shape: f32[16,16], index: 2, kind: input, shape index: {}]   ;;  %s8547_s3 = inlined_call_operand.vmem [shape: f32[16,16], index: 3, kind: input, shape index: {}]   ;;  %s8548_s4 = inlined_call_operand.hbm [shape: bf16[2,2,128,768], index: 4, kind: input, shape index: {}]   ;;  %s8549_s5 = inlined_call_operand.vmem [shape: f32[2,2,1,768], index: 5, kind: input, shape index: {}]   ;;  %s8550_s6 = inlined_call_operand.vmem [shape: f32[2,2,1,128], index: 6, kind: input, shape index: {}]   ;;  %s8551_s7 = inlined_call_operand.vmem [shape: bf16[2,2,128,128], index: 7, kind: input, shape index: {}]   ;;  %s8552_s8 = inlined_call_operand.vmem [shape: f32[2,2,1,128], index: 8, kind: input, shape index: {}]   ;;  %s8553_s9 = inlined_call_operand.hbm [shape: bf16[2,128,1280], index: 9, kind: input, shape index: {}]   ;;  %s8554_s10 = inlined_call_operand.vmem [shape: f32[2,1,1280], index: 10, kind: input, shape index: {}]   ;;  %s8555_s11 = inlined_call_operand.vmem [shape: f32[2,2,1,128], index: 11, kind: input, shape index: {}]   ;;  %s8556_s12 = inlined_call_operand.vmem [shape: bf16[2,1,128,256], index: 12, kind: input, shape index: {}]   ;;  %s8557_s13 = inlined_call_operand.vmem [shape: f32[2,1,1,256], index: 13, kind: input, shape index: {}]   ;;  %s8558_s14 = inlined_call_operand.vmem [shape: bf16[2,1,256,128], index: 14, kind: input, shape index: {}]   ;;  %s8559_s15 = inlined_call_operand.vmem [shape: f32[2,1,1,128], index: 15, kind: input, shape index: {}]   ;;  %s8560_s16 = inlined_call_operand.vmem [shape: bf16[128,384], index: 16, kind: input, shape index: {}]   ;;  %s8561_s17 = inlined_call_operand.vmem [shape: bf16[128,256], index: 17, kind: input, shape index: {}]   ;;  %s8562_s18 = inlined_call_operand.vmem [shape: f32[1,256], index: 18, kind: input, shape index: {}]   ;;  %s8563_s19 = inlined_call_operand.hbm [shape: bf16[256,128], index: 19, kind: input, shape index: {}]   ;;  %s8564_s20 = inlined_call_operand.vmem [shape: f32[1,128], index: 20, kind: input, shape index: {}]   ;;  %s8565_s21 = inlined_call_operand.vmem [shape: bf16[128,128], index: 21, kind: input, shape index: {}]   ;;  %s8566_s22 = inlined_call_operand.vmem [shape: f32[1,128], index: 22, kind: input, shape index: {}]   ;;  %s8567_s23 = inlined_call_operand.vmem [shape: f32[16,128], index: 23, kind: output, shape index: {}]  }
   0x1   :  { %8579 = sst [smem:[#allocation14_spill]] %s8544_s0 }
   0x2   :  { %8580 = sst [smem:[#allocation15_spill]] %s8545_s1 }
   0x3   :  { %8581 = sst [smem:[#allocation16_spill]] %s8546_s2 }
   0x4   :  { %8582 = sst [smem:[#allocation17_spill]] %s8547_s3 }
   0x5   :  { %8583 = sst [smem:[#allocation18_spill]] %s8548_s4 }
   0x6   :  { %8584 = sst [smem:[#allocation19_spill]] %s8549_s5 }
   0x7   :  { %8585 = sst [smem:[#allocation20_spill]] %s8550_s6 }
   0x8   :  { %8586 = sst [smem:[#allocation21_spill]] %s8551_s7 }
   0x9   :  { %8587 = sst [smem:[#allocation22_spill]] %s8557_s13 }
   0xa   :  { %8588 = sst [smem:[#allocation23_spill]] %s8560_s16 }
   0xb   :  { %8589 = sst [smem:[#allocation24_spill]] %s8561_s17 }
   0xc   :  { %8590 = sst [smem:[#allocation25_spill]] %s8562_s18 }
   0xd   :  { %8591 = sst [smem:[#allocation26_spill]] %s8563_s19 }
   0xe   :  { %8592 = sst [smem:[#allocation27_spill]] %s8564_s20 }
   0xf   :  { %8593 = sst [smem:[#allocation28_spill]] %s8565_s21 }
  0x10   :  { %8594 = sst [smem:[#allocation29_spill]] %s8566_s22 }
  0x11   :  { %8595 = sst [smem:[#allocation30_spill]] %s8567_s23 }
  0x12   :  { %28 = vsyncpa [#allocation4], 0 }
  0x13   :  { %30 = vsyncpa [#allocation4 + $0x1], 0 }
  0x14   :  { %31 = vsyncpa [#allocation6], 0 }
  0x15   :  { %33 = vsyncpa [#allocation6 + $0x1], 0  ;;  %s7209_s4 = smov 0   ;;  %s7211_s30 = smov 0  }
  0x16   :  { %s7213_s24 = smov 0   ;;  %s7215_s25 = smov 0  }
  0x17 LB: > { %8596 = sst [smem:[#allocation11_spill]] %s7070_s24  ;;  %s7228_s5 = sadd.s32 4294967295, %s7074_s25   ;;  %s7074_s25 = sphi %s7215_s25, %s8620_s25   ;;  %s7070_s24 = sphi %s7213_s24, %s8622_s24   ;;  %s7066_s30 = sphi %s7211_s30, %s8624_s30   ;;  %s7062_s4 = sphi %s7209_s4, %s8623_s4  }
  0x18   : > { %p153_p0 = scmp.ne.s32.totalorder %s7066_s30, %s7062_s4  ;;  %p154_p1 = scmp.eq.s32.totalorder %s7228_s5, 0 }
  0x19   : > { %p5136_p2 = scmp.ge.s32.totalorder %s7074_s25, 1  ;;  %p618_p3 = scmp.lt.s32.totalorder %s7074_s25, 3 }
  0x1a   : > { %p5137_p4 = scmp.ne.s32.totalorder %s7228_s5, 0  ;;  %p7237_p5 = por %p154_p1, %p153_p0 }
  0x1b   : > { %s8598_s19 = sld [smem:[#allocation26_spill]]  ;;  %p7244_p6 = pnand %p5136_p2, %p618_p3 }
  0x1c   : > { %s7076_s7 = smov [#allocation7]   ;;  %s7253_s29 = sadd.s32 1, %s7074_s25  }
  0x1d   : > { %p6710_p7 = pneg %p7244_p6  ;;  %s646_s28 = sshll.u32 %s7076_s7, 4  ;;  %s647_s28 = int_to_ptr.vmem [resolvable:$true] %s646_s28 }
  0x1e   : > { %8600 = sst [smem:[#allocation12_spill]] %s7253_s29  ;;  %s7077_s3 = smov 64  }
  0x1f   : > { %p6711_p8 = pnand %p6710_p7, %p154_p1  ;;  %s7078_s0 = smov 4  }
  0x20   : > { %s137_s4 = ssub.s32 %s7074_s25, %s7253_s29  ;;  %s140_s26 = sadd.s32 1, %s7070_s24 }
  0x21   : > { %s644_s6 = sshll.u32 %s8598_s19, 4  ;;  %p138_p9 = scmp.eq.s32.totalorder %s137_s4, 0  ;;  %s645_s6 = int_to_ptr.hbm [resolvable:$true] %s644_s6 }
  0x22   : > { %6713 = dma.hbm_to_vmem [thread:$0]  (!%p6711_p8), %s645_s6, 2048, %s647_s28, [#allocation6], %s7077_s3, %s7077_s3, %s7078_s0  }
  0x23   : > { %p147_p10 = scmp.ne.s32.totalorder %s7070_s24, %s7066_s30  ;;  %p148_p11 = scmp.eq.s32.totalorder %s7074_s25, 0 }
  0x24   : > { %p6722_p12 = scmp.lt.s32.totalorder %s7074_s25, 2  ;;  %s7266_s7 = sand.u32 1, %s7070_s24  }
  0x25   : > { %s7263_s2 = scalar_select %p138_p9, %s7070_s24, %s140_s26  }
  0x26   : > { %p149_p13 = por %p148_p11, %p147_p10  ;;  %s6694_s19 = smul.u32 768, %s7266_s7 }
  0x27   : > { %8601 = sst [smem:[#allocation13_spill]] %s7263_s2  ;;  %s6695_s23 = smul.u32 768, %s7074_s25 }
  0x28   : > { %p7270_p0 = pnand %p6722_p12, %p149_p13  ;;  %s8603_s3 = sld [smem:[#allocation18_spill]] }
  0x29   : > { %s689_s4 = scalar_lea.vmem [#allocation3], %s6694_s19  ;;  %s736_s24 = sand.u32 1, %s7074_s25  }
  0x2a   : > { %s697_s26 = sshll.u32 %s689_s4, 4  ;;  %s686_s29 = scalar_lea.sflag [#allocation4], %s7266_s7  ;;  %s698_s26 = int_to_ptr.vmem [resolvable:$true] %s697_s26 }
  0x2b   : > { %p6976_p3 = pneg %p7270_p0 }
  0x2e   : > { %s694_s0 = scalar_lea.hbm %s8603_s3, %s6695_s23  ;;  %s6979_s19 = scalar_lea.hbm %s8603_s3, 1536 }
  0x2f   : > { %s695_s2 = sshll.u32 %s694_s0, 4  ;;  %s696_s2 = int_to_ptr.hbm [resolvable:$true] %s695_s2 }
  0x30   : > { %s6972_s21 = sshra.s32 %s696_s2, 4  ;;  %s6973_s21 = int_to_ptr.hbm [resolvable:$true] %s6972_s21 }
  0x31   : > { %s6974_s20 = scalar_lea.hbm %s6973_s21, 768  ;;  %p6980_p9 = scmp.lt.s32.totalorder %s6973_s21, %s8603_s3 }
  0x32   : > { %p6975_p2 = scmp.ne.s32.totalorder %s6973_s21, %s6974_s20  ;;  %p6981_p10 = scmp.lt.s32.totalorder %s6979_s19, %s6974_s20 }
  0x34   : > { %p6977_p7 = pnand %p6976_p3, %p6975_p2  ;;  %p6982_p11 = por %p6981_p10, %p6980_p9 }
  0x36   : > { %p6978_p8 = pneg %p6977_p7 }
  0x38   : > { %p6983_p12 = pnand %p6982_p11, %p6978_p8 }
  0x3a   : > { %6986 = shalt.err (!%p6983_p12)
}
  0x3b   : > { %s7079_s4 = smov 384   ;;  %s7080_s18 = smov 24  }
  0x3c   : > { %6717 = dma.hbm_to_vmem [thread:$0]  (!%p7270_p0), %s696_s2, 12288, %s698_s26, %s686_s29, %s7079_s4, %s7079_s4, %s7080_s18  }
  0x3d   : > { %s6696_s17 = smul.u32 640, %s7266_s7  ;;  %s737_s19 = scalar_lea.sflag [#allocation6], %s736_s24 }
  0x3e   : > { %s6697_s16 = smul.u32 640, %s7074_s25  ;;  %s7009_s29 = scalar_lea.hbm %s8553_s9, 1280 }
  0x3f   : > { %s740_s23 = scalar_lea.vmem [#allocation5], %s6696_s17 }
  0x40   : > { %s745_s13 = scalar_lea.hbm %s8553_s9, %s6697_s16  ;;  %s748_s21 = sshll.u32 %s740_s23, 4  ;;  %s749_s21 = int_to_ptr.vmem [resolvable:$true] %s748_s21 }
  0x41   : > { %s746_s20 = sshll.u32 %s745_s13, 4  ;;  %s747_s20 = int_to_ptr.hbm [resolvable:$true] %s746_s20 }
  0x42   : > { %s7002_s0 = sshra.s32 %s747_s20, 4  ;;  %s7003_s0 = int_to_ptr.hbm [resolvable:$true] %s7002_s0 }
  0x43   : > { %s7004_s3 = scalar_lea.hbm %s7003_s0, 640  ;;  %p7010_p8 = scmp.lt.s32.totalorder %s7003_s0, %s8553_s9 }
  0x44   : > { %p7005_p13 = scmp.ne.s32.totalorder %s7003_s0, %s7004_s3  ;;  %p7011_p9 = scmp.lt.s32.totalorder %s7009_s29, %s7004_s3 }
  0x46   : > { %p7007_p2 = pnand %p7005_p13, %p6976_p3  ;;  %p7012_p10 = por %p7011_p9, %p7010_p8 }
  0x48   : > { %p7008_p7 = pneg %p7007_p2 }
  0x4a   : > { %p7013_p11 = pnand %p7012_p10, %p7008_p7 }
  0x4c   : > { %7016 = shalt.err (!%p7013_p11)
}
  0x4d   : > { %s7081_s13 = smov 640   ;;  %s7082_s17 = smov 40  }
  0x4e   : > { %6720 = dma.hbm_to_vmem [thread:$0]  (!%p7270_p0), %s747_s20, 10240, %s749_s21, %s737_s19, %s7081_s13, %s7081_s13, %s7082_s17  }
  0x4f   : > { %803 = sbr.rel (%p7244_p6) target bundleno = 6284 (0x188c), region = 112  ;;  %s805_s24 = sand.u32 (!%p7244_p6), 1, %s7066_s30  }
  0x50   : > { %s6698_s7 = smul.u32 (!%p7244_p6), 768, %s805_s24  ;;  %s806_s26 = scalar_lea.sflag (!%p7244_p6), [#allocation4], %s805_s24 }
  0x52   : > { %s7311_s4 = scalar_lea.vmem (!%p7244_p6), [#allocation3], %s6698_s7 }
  0x54   : > { %7049 = dma.done.wait (%p7237_p5), %s806_s26, 12288  }
  0x55   : > { %7051 = vsyncadd (%p7237_p5), %s806_s26, 4294955008  ;;  %s815_s3 = sand.u32 1, %s7228_s5   ;;  %s6699_s22 = smul.u32 640, %s805_s24 }
  0x56   : > { %s816_s6 = scalar_lea.sflag [#allocation6], %s815_s3 }
  0x57   : > { %s7318_s28 = scalar_lea.vmem [#allocation5], %s6699_s22 }
  0x58   : > { %7053 = dma.done.wait (%p7237_p5), %s816_s6, 10240  }
  0x59   : > { %7055 = vsyncadd (%p7237_p5), %s816_s6, 4294957056 }
  0x5a   : > { %7057 = dma.done.wait (%p154_p1), [#allocation6], 2048  }
  0x5b   : > { %7059 = vsyncadd (%p154_p1), [#allocation6], 4294965248  ;;  %p940_p6 = scmp.lt.s32.totalorder %s7228_s5, 1  ;;  %s8604_s20 = sld [smem:[#allocation14_spill]]  ;;  %v7083_v2 = vmov 128.0   ;;  %vm2105_vm7 = vcmask 261120  }
  0x5c   : > { %6776 = vrcp.f32 %v7083_v2  ;;  %v5439_v5 = vld [vmem:[%s7318_s28 + $0x230] sm:$0xf]  ;;  %v6481_v6 = vld [vmem:[%s7318_s28 + $0x254] sm:$0xf0]  ;;  %v6476_v7 = vld [vmem:[%s7318_s28 + $0x234] sm:$0xf] }
  0x5d   : > { %s7330_s27 = scalar_select %p940_p6, %s7228_s5, 1  ;;  %v5440_v8 = vor.u32 %v6481_v6, %v5439_v5  ;;  %v5441_v9 = vld [vmem:[%s7318_s28 + $0x258] sm:$0xf0]  ;;  %v5399_v10 = vld [vmem:[%s7318_s28 + $0x1e0] sm:$0xf]  ;;  %vm2134_vm8 = vcmask 130048  }
  0x5e   : > { %v6471_v11 = vld [vmem:[%s7318_s28 + $0x204] sm:$0xf0]  ;;  %v5444_v12 = vor.u32 %v6476_v7, %v5441_v9  ;;  %v6466_v13 = vld [vmem:[%s7318_s28 + $0x1e4] sm:$0xf]  ;;  %v5401_v14 = vld [vmem:[%s7318_s28 + $0x208] sm:$0xf0] }
  0x5f   : > { %s6401_s1 = sshll.u32 %s7330_s27, 4  ;;  %1506 = vmatpush.bf16.msra.mxu0 %v5440_v8  ;;  %v5400_v16 = vor.u32 %v6471_v11, %v5399_v10  ;;  %v5404_v17 = vor.u32 %v6466_v13, %v5401_v14  ;;  %v5359_v18 = vld [vmem:[%s7318_s28 + $0x190] sm:$0xf]  ;;  %v6461_v19 = vld [vmem:[%s7318_s28 + $0x1b4] sm:$0xf0]  ;;  %s8605_s25 = sld [smem:[#allocation15_spill]] }
  0x60   : > { %1520 = vmatpush.bf16.msra.mxu1 %v5444_v12  ;;  %v6456_v20 = vld [vmem:[%s7318_s28 + $0x194] sm:$0xf]  ;;  %v5361_v21 = vld [vmem:[%s7318_s28 + $0x1b8] sm:$0xf0]  ;;  %v5447_v22 = vld [vmem:[%s7318_s28 + $0x238] sm:$0xf]  ;;  %v5360_v24 = vor.u32 %v6461_v19, %v5359_v18 }
  0x61   : > { %s7338_s19 = scalar_lea.vmem %s8604_s20, %s6401_s1  ;;  %v6482_v25 = vld [vmem:[%s7318_s28 + $0x25c] sm:$0xf0]  ;;  %v6477_v26 = vld [vmem:[%s7318_s28 + $0x23c] sm:$0xf]  ;;  %v5449_v27 = vld [vmem:[%s7318_s28 + $0x260] sm:$0xf0]  ;;  %v5364_v28 = vor.u32 %v6456_v20, %v5361_v21 }
  0x62   : > { %v7341_v0 = vld [vmem:[%s7338_s19] sm:$0xff]  ;;  %v7345_v1 = vld [vmem:[%s7338_s19 + $0x8] sm:$0xff]  ;;  %v7348_v3 = vpop.eup %6776  ;;  %v5319_v29 = vld [vmem:[%s7318_s28 + $0x140] sm:$0xf]  ;;  %v5448_v32 = vor.u32 %v6482_v25, %v5447_v22  ;;  %v5452_v33 = vor.u32 %v6477_v26, %v5449_v27  ;;  %s6701_s2 = smul.u32 10, %s7330_s27  ;;  %s8606_s3 = sld [smem:[#allocation19_spill]] }
  0x63   : > { %1656 = vadd.xlane.f32.xlu0 %v7341_v0  ;;  %v1661_v4 = vmul.f32 128.0, %v7348_v3  ;;  %1507 = vmatpush.bf16.msra.mxu0 %v5400_v16  ;;  %v6451_v30 = vld [vmem:[%s7318_s28 + $0x164] sm:$0xf0]  ;;  %v6446_v31 = vld [vmem:[%s7318_s28 + $0x144] sm:$0xf]  ;;  %vm1665_vm0 = vweird.f32 %v7348_v3  ;;  %s6700_s24 = smul.u32 12, %s7330_s27 }
  0x64   : > { %1521 = vmatpush.bf16.msra.mxu1 %v5404_v17  ;;  %v5321_v34 = vld [vmem:[%s7318_s28 + $0x168] sm:$0xf0]  ;;  %v5407_v35 = vld [vmem:[%s7318_s28 + $0x1e8] sm:$0xf]  ;;  %v6472_v36 = vld [vmem:[%s7318_s28 + $0x20c] sm:$0xf0]  ;;  %1534 = vmatpush.bf16.msra.mxu2 %v5448_v32  ;;  %v5320_v41 = vor.u32 %v6451_v30, %v5319_v29  ;;  %s7648_s17 = scalar_lea.vmem %s8554_s10, %s6701_s2  ;;  %s991_s2 = scalar_lea.vmem %s8559_s15, %s7330_s27 }
  0x65   : > { %v1662_v15 = vsub.f32 1.0, %v1661_v4  ;;  %1548 = vmatpush.bf16.msra.mxu3 %v5452_v33  ;;  %v5408_v37 = vor.u32 %v6472_v36, %v5407_v35  ;;  %v6467_v38 = vld [vmem:[%s7318_s28 + $0x1ec] sm:$0xf]  ;;  %v5409_v39 = vld [vmem:[%s7318_s28 + $0x210] sm:$0xf0]  ;;  %v5324_v45 = vor.u32 %v6446_v31, %v5321_v34  ;;  %s949_s29 = scalar_lea.vmem %s8605_s25, %s6401_s1  ;;  %s7084_s6 = smov 96  }
  0x66   : > { %v5279_v42 = vld [vmem:[%s7318_s28 + $0xf0] sm:$0xf]  ;;  %v6441_v43 = vld [vmem:[%s7318_s28 + $0x114] sm:$0xf0]  ;;  %v5412_v44 = vor.u32 %v6467_v38, %v5409_v39  ;;  %v6462_v47 = vld [vmem:[%s7318_s28 + $0x1bc] sm:$0xf0] }
  0x67   : > { %v1663_v23 = vmul.f32 %v7348_v3, %v1662_v15  ;;  %1508 = vmatpush.bf16.msra.mxu0 %v5360_v24  ;;  %v5367_v46 = vld [vmem:[%s7318_s28 + $0x198] sm:$0xf]  ;;  %v6457_v48 = vld [vmem:[%s7318_s28 + $0x19c] sm:$0xf]  ;;  %v6436_v49 = vld [vmem:[%s7318_s28 + $0xf4] sm:$0xf]  ;;  %v5280_v56 = vor.u32 %v6441_v43, %v5279_v42 }
  0x68   : > { %1522 = vmatpush.bf16.msra.mxu1 %v5364_v28  ;;  %v5281_v50 = vld [vmem:[%s7318_s28 + $0x118] sm:$0xf0]  ;;  %v5369_v51 = vld [vmem:[%s7318_s28 + $0x1c0] sm:$0xf0]  ;;  %1535 = vmatpush.bf16.msra.mxu2 %v5408_v37  ;;  %v5368_v52 = vor.u32 %v6462_v47, %v5367_v46  ;;  %v5327_v54 = vld [vmem:[%s7318_s28 + $0x148] sm:$0xf]  ;;  %s7696_s22 = scalar_lea.vmem %s8606_s3, %s6700_s24 }
  0x69   : > { %v1664_v40 = vadd.f32 %v7348_v3, %v1663_v23  ;;  %1549 = vmatpush.bf16.msra.mxu3 %v5412_v44  ;;  %v5372_v53 = vor.u32 %v6457_v48, %v5369_v51  ;;  %v6452_v57 = vld [vmem:[%s7318_s28 + $0x16c] sm:$0xf0]  ;;  %v6447_v58 = vld [vmem:[%s7318_s28 + $0x14c] sm:$0xf]  ;;  %v5329_v59 = vld [vmem:[%s7318_s28 + $0x170] sm:$0xf0]  ;;  %v5284_v60 = vor.u32 %v6436_v49, %v5281_v50 }
  0x6a   : > { %v5239_v61 = vld [vmem:[%s7318_s28 + $0xa0] sm:$0xf]  ;;  %v6431_v62 = vld [vmem:[%s7318_s28 + $0xc4] sm:$0xf0]  ;;  %v6426_v2 = vld [vmem:[%s7318_s28 + $0xa4] sm:$0xf]  ;;  %v5328_v5 = vor.u32 %v6452_v57, %v5327_v54  ;;  %v5332_v6 = vor.u32 %v6447_v58, %v5329_v59 }
  0x6b   : > { %1658 = vadd.xlane.f32.xlu0 %v7345_v1  ;;  %v7388_v55 = vsel %vm1665_vm0, %v7348_v3, %v1664_v40  ;;  %1509 = vmatpush.bf16.msra.mxu0 %v5320_v41  ;;  %v5241_v4 = vld [vmem:[%s7318_s28 + $0xc8] sm:$0xf0]  ;;  %v5287_v7 = vld [vmem:[%s7318_s28 + $0xf8] sm:$0xf]  ;;  %v5240_v8 = vor.u32 %v6431_v62, %v5239_v61  ;;  %v6442_v9 = vld [vmem:[%s7318_s28 + $0x11c] sm:$0xf0] }
  0x6c   : > { %1523 = vmatpush.bf16.msra.mxu1 %v5324_v45  ;;  %1536 = vmatpush.bf16.msra.mxu2 %v5368_v52  ;;  %v6437_v10 = vld [vmem:[%s7318_s28 + $0xfc] sm:$0xf]  ;;  %v5289_v11 = vld [vmem:[%s7318_s28 + $0x120] sm:$0xf0]  ;;  %v5244_v13 = vor.u32 %v6426_v2, %v5241_v4  ;;  %v5199_v14 = vld [vmem:[%s7318_s28 + $0x50] sm:$0xf]  ;;  %v5288_v19 = vor.u32 %v6442_v9, %v5287_v7 }
  0x6d   : > { %1550 = vmatpush.bf16.msra.mxu3 %v5372_v53  ;;  %v6421_v15 = vld [vmem:[%s7318_s28 + $0x74] sm:$0xf0]  ;;  %v6416_v16 = vld [vmem:[%s7318_s28 + $0x54] sm:$0xf]  ;;  %v5201_v17 = vld [vmem:[%s7318_s28 + $0x78] sm:$0xf0] }
  0x6e   : > { %v5247_v20 = vld [vmem:[%s7318_s28 + $0xa8] sm:$0xf]  ;;  %v5200_v21 = vor.u32 %v6421_v15, %v5199_v14  ;;  %v6432_v22 = vld [vmem:[%s7318_s28 + $0xcc] sm:$0xf0]  ;;  %v6427_v23 = vld [vmem:[%s7318_s28 + $0xac] sm:$0xf]  ;;  %v5204_v25 = vor.u32 %v6416_v16, %v5201_v17 }
  0x6f   : > { %1510 = vmatpush.bf16.msra.mxu0 %v5280_v56  ;;  %v5249_v24 = vld [vmem:[%s7318_s28 + $0xd0] sm:$0xf0]  ;;  %v5159_v26 = vld [vmem:[%s7318_s28] sm:$0xf]  ;;  %v6411_v27 = vld [vmem:[%s7318_s28 + $0x24] sm:$0xf0]  ;;  %v5248_v36 = vor.u32 %v6432_v22, %v5247_v20 }
  0x70   : > { %1524 = vmatpush.bf16.msra.mxu1 %v5284_v60  ;;  %1537 = vmatpush.bf16.msra.mxu2 %v5328_v5  ;;  %v6406_v28 = vld [vmem:[%s7318_s28 + $0x4] sm:$0xf]  ;;  %v5161_v30 = vld [vmem:[%s7318_s28 + $0x28] sm:$0xf0]  ;;  %v5455_v31 = vld [vmem:[%s7318_s28 + $0x240] sm:$0xf]  ;;  %v5252_v37 = vor.u32 %v6427_v23, %v5249_v24  ;;  %v5160_v39 = vor.u32 %v6411_v27, %v5159_v26 }
  0x71   : > { %1551 = vmatpush.bf16.msra.mxu3 %v5332_v6  ;;  %v6483_v32 = vld [vmem:[%s7318_s28 + $0x264] sm:$0xf0]  ;;  %v6478_v34 = vld [vmem:[%s7318_s28 + $0x244] sm:$0xf]  ;;  %v5457_v35 = vld [vmem:[%s7318_s28 + $0x268] sm:$0xf0]  ;;  %v5164_v46 = vor.u32 %v6406_v28, %v5161_v30 }
  0x72   : > { %v5207_v38 = vld [vmem:[%s7318_s28 + $0x58] sm:$0xf]  ;;  %v6422_v40 = vld [vmem:[%s7318_s28 + $0x7c] sm:$0xf0]  ;;  %v6417_v41 = vld [vmem:[%s7318_s28 + $0x5c] sm:$0xf]  ;;  %v5456_v47 = vor.u32 %v6483_v32, %v5455_v31  ;;  %v5460_v48 = vor.u32 %v6478_v34, %v5457_v35 }
  0x73   : > { %1511 = vmatpush.bf16.msra.mxu0 %v5240_v8  ;;  %v5209_v42 = vld [vmem:[%s7318_s28 + $0x80] sm:$0xf0]  ;;  %v999_v43 = vld [vmem:[%s949_s29] sm:$0xff]  ;;  %v1000_v44 = vld [vmem:[%s949_s29 + $0x8] sm:$0xff]  ;;  %s7086_s1 = smov 32   ;;  %s8607_s20 = sld [smem:[#allocation16_spill]] }
  0x74   : > { %1525 = vmatpush.bf16.msra.mxu1 %v5244_v13  ;;  %1538 = vmatpush.bf16.msra.mxu2 %v5288_v19  ;;  %v5415_v49 = vld [vmem:[%s7318_s28 + $0x1f0] sm:$0xf]  ;;  %v6473_v50 = vld [vmem:[%s7318_s28 + $0x214] sm:$0xf0]  ;;  %v6468_v51 = vld [vmem:[%s7318_s28 + $0x1f4] sm:$0xf]  ;;  %v5212_v54 = vor.u32 %v6417_v41, %v5209_v42  ;;  %v7444_v58 = vpack.c.bf16 %v1000_v44, %v999_v43 }
  0x75   : > { %v5417_v53 = vld [vmem:[%s7318_s28 + $0x218] sm:$0xf0]  ;;  %v5167_v56 = vld [vmem:[%s7318_s28 + $0x8] sm:$0xf]  ;;  %v6412_v57 = vld [vmem:[%s7318_s28 + $0x2c] sm:$0xf0]  ;;  %v5416_v4 = vor.u32 %v6473_v50, %v5415_v49 }
  0x76   : > { %v6407_v59 = vld [vmem:[%s7318_s28 + $0xc] sm:$0xf]  ;;  %v5169_v60 = vld [vmem:[%s7318_s28 + $0x30] sm:$0xf0]  ;;  %v5463_v61 = vld [vmem:[%s7318_s28 + $0x248] sm:$0xf]  ;;  %v5168_v9 = vor.u32 %v6412_v57, %v5167_v56 }
  0x77   : > { %1512 = vmatpush.bf16.msra.mxu0 %v5200_v21  ;;  %v6484_v62 = vld [vmem:[%s7318_s28 + $0x26c] sm:$0xf0]  ;;  %v5465_v2 = vld [vmem:[%s7318_s28 + $0x270] sm:$0xf0]  ;;  %v5375_v5 = vld [vmem:[%s7318_s28 + $0x1a0] sm:$0xf] }
  0x78   : > { %1526 = vmatpush.bf16.msra.mxu1 %v5204_v25  ;;  %1539 = vmatpush.bf16.msra.mxu2 %v5248_v36  ;;  %v6463_v6 = vld [vmem:[%s7318_s28 + $0x1c4] sm:$0xf0]  ;;  %v6458_v7 = vld [vmem:[%s7318_s28 + $0x1a4] sm:$0xf]  ;;  %v5377_v8 = vld [vmem:[%s7318_s28 + $0x1c8] sm:$0xf0] }
  0x79   : > { %v5423_v14 = vld [vmem:[%s7318_s28 + $0x1f8] sm:$0xf]  ;;  %v6474_v15 = vld [vmem:[%s7318_s28 + $0x21c] sm:$0xf0]  ;;  %v6469_v16 = vld [vmem:[%s7318_s28 + $0x1fc] sm:$0xf]  ;;  %v5380_v19 = vor.u32 %v6458_v7, %v5377_v8 }
  0x7a   : > { %v5425_v17 = vld [vmem:[%s7318_s28 + $0x220] sm:$0xf0]  ;;  %v6453_v20 = vld [vmem:[%s7318_s28 + $0x174] sm:$0xf0]  ;;  %v6448_v21 = vld [vmem:[%s7318_s28 + $0x154] sm:$0xf]  ;;  %v5424_v23 = vor.u32 %v6474_v15, %v5423_v14 }
  0x7b   : > { %1513 = vmatpush.bf16.msra.mxu0 %v5160_v39  ;;  %v5337_v22 = vld [vmem:[%s7318_s28 + $0x178] sm:$0xf0]  ;;  %v5428_v24 = vor.u32 %v6469_v16, %v5425_v17  ;;  %v5383_v25 = vld [vmem:[%s7318_s28 + $0x1a8] sm:$0xf]  ;;  %v6464_v26 = vld [vmem:[%s7318_s28 + $0x1cc] sm:$0xf0] }
  0x7c   : > { %1527 = vmatpush.bf16.msra.mxu1 %v5164_v46  ;;  %v6459_v27 = vld [vmem:[%s7318_s28 + $0x1ac] sm:$0xf]  ;;  %v5385_v28 = vld [vmem:[%s7318_s28 + $0x1d0] sm:$0xf0]  ;;  %v5340_v30 = vor.u32 %v6448_v21, %v5337_v22  ;;  %v5295_v31 = vld [vmem:[%s7318_s28 + $0x100] sm:$0xf]  ;;  %v5384_v35 = vor.u32 %v6464_v26, %v5383_v25 }
  0x7d   : > { %v6443_v32 = vld [vmem:[%s7318_s28 + $0x124] sm:$0xf0]  ;;  %v5297_v34 = vld [vmem:[%s7318_s28 + $0x128] sm:$0xf0]  ;;  %v5388_v36 = vor.u32 %v6459_v27, %v5385_v28  ;;  %v6449_v39 = vld [vmem:[%s7318_s28 + $0x15c] sm:$0xf] }
  0x7e   : > { %1514 = vmatmul.bf16.vlgmr.msra.gmra.mxu0 %v7444_v58  ;;  %v5296_v41 = vor.u32 %v6443_v32, %v5295_v31  ;;  %v5255_v43 = vld [vmem:[%s7318_s28 + $0xb0] sm:$0xf]  ;;  %v6433_v44 = vld [vmem:[%s7318_s28 + $0xd4] sm:$0xf0]  ;;  %v6428_v46 = vld [vmem:[%s7318_s28 + $0xb4] sm:$0xf] }
  0x7f   : > { %1562 = vmatpush.bf16.msrb.mxu0 %v5456_v47  ;;  %1528 = vmatmul.bf16.vlgmr.msra.gmra.mxu1 %v7444_v58  ;;  %v5257_v47 = vld [vmem:[%s7318_s28 + $0xd8] sm:$0xf0]  ;;  %v5303_v50 = vld [vmem:[%s7318_s28 + $0x108] sm:$0xf]  ;;  %v5215_v56 = vld [vmem:[%s7318_s28 + $0x60] sm:$0xf] }
  0x80   : > { %1576 = vmatpush.bf16.msrb.mxu1 %v5460_v48  ;;  %v6423_v57 = vld [vmem:[%s7318_s28 + $0x84] sm:$0xf0]  ;;  %v5175_v7 = vld [vmem:[%s7318_s28 + $0x10] sm:$0xf]  ;;  %v6413_v8 = vld [vmem:[%s7318_s28 + $0x34] sm:$0xf0] }
  0x81   : > { %v6480_v14 = vld [vmem:[%s7318_s28 + $0x254] sm:$0xf]  ;;  %v5473_v15 = vld [vmem:[%s7318_s28 + $0x278] sm:$0xf0]  ;;  %v5176_v21 = vor.u32 %v6413_v8, %v5175_v7  ;;  %v5431_v25 = vld [vmem:[%s7318_s28 + $0x200] sm:$0xf] }
  0x82   : > { %v6475_v26 = vld [vmem:[%s7318_s28 + $0x224] sm:$0xf0]  ;;  %v6470_v27 = vld [vmem:[%s7318_s28 + $0x204] sm:$0xf]  ;;  %v5433_v28 = vld [vmem:[%s7318_s28 + $0x228] sm:$0xf0] }
  0x83   : > { %1563 = vmatpush.bf16.msrb.mxu0 %v5416_v4  ;;  %v6429_v4 = vld [vmem:[%s7318_s28 + $0xbc] sm:$0xf]  ;;  %v5183_v31 = vld [vmem:[%s7318_s28 + $0x18] sm:$0xf]  ;;  %v6414_v32 = vld [vmem:[%s7318_s28 + $0x3c] sm:$0xf0] }
  0x84   : > { %v5311_v7 = vld [vmem:[%s7318_s28 + $0x110] sm:$0xf]  ;;  %v6445_v8 = vld [vmem:[%s7318_s28 + $0x134] sm:$0xf0]  ;;  %s7744_s25 = sshll.u32 %s7330_s27, 1  ;;  %s8608_s16 = sld [smem:[#allocation20_spill]] }
  0x85   : > { %s7088_s24 = smov 48   ;;  %vm2318_vm9 = vcmask 392192   ;;  %vm2344_vm10 = vcmask 523264   ;;  %s7789_s26 = scalar_lea.vmem %s8552_s8, %s7744_s25 }
  0x86   : > { %s7800_s3 = sshll.u32 %s7330_s27, 7  ;;  %s8609_s0 = sld [smem:[#allocation21_spill]] }
  0x87   : > { %s7924_s21 = scalar_lea.vmem %s8558_s14, %s7800_s3  ;;  %s8611_s23 = sld [smem:[#allocation22_spill]] }
  0x8a   : > { %s7750_s13 = scalar_lea.vmem %s8608_s16, %s7744_s25  ;;  %s8610_s16 = sld [smem:[#allocation17_spill]] }
  0x8c   : > { %s7806_s18 = scalar_lea.vmem %s8609_s0, %s7800_s3  ;;  %s7851_s0 = scalar_lea.vmem %s8555_s11, %s7744_s25 }
  0xd6   : > { %v1657_v63 = vpop.xlane.xlu0 %1656 }
  0xd7   : > { %v1667_v3 = vmul.f32 %v7388_v55, %v1657_v63  ;;  %v6479_v63 = vld [vmem:[%s7318_s28 + $0x24c] sm:$0xf] }
  0xd8   : > { %v5468_v13 = vor.u32 %v6479_v63, %v5465_v2  ;;  %v5263_v63 = vld [vmem:[%s7318_s28 + $0xb8] sm:$0xf]  ;;  %v6434_v2 = vld [vmem:[%s7318_s28 + $0xdc] sm:$0xf0] }
  0xd9   : > { %v7403_v12 = vsub.f32 %v7341_v0, %v1667_v3  ;;  %v5292_v0 = vor.u32 %v6437_v10, %v5289_v11  ;;  %v5420_v3 = vor.u32 %v6468_v51, %v5417_v53  ;;  %v5172_v10 = vor.u32 %v6407_v59, %v5169_v60  ;;  %v6444_v51 = vld [vmem:[%s7318_s28 + $0x12c] sm:$0xf0]  ;;  %v5305_v53 = vld [vmem:[%s7318_s28 + $0x130] sm:$0xf0]  ;;  %v6418_v59 = vld [vmem:[%s7318_s28 + $0x64] sm:$0xf] }
  0xda   : > { %v5464_v11 = vor.u32 %v6484_v62, %v5463_v61  ;;  %v5217_v60 = vld [vmem:[%s7318_s28 + $0x88] sm:$0xf0]  ;;  %v5304_v61 = vor.u32 %v6444_v51, %v5303_v50  ;;  %v5264_v16 = vor.u32 %v6434_v2, %v5263_v63  ;;  %v5623_v50 = vld [vmem:[%s7311_s4 + $0x120] sm:$0xf]  ;;  %v6525_v51 = vld [vmem:[%s7311_s4 + $0x134] sm:$0xf0] }
  0xdb   : > { %v1671_v18 = vmul.f32 %v7403_v12, %v7403_v12  ;;  %1552 = vmatpush.bf16.msra.mxu3 %v5292_v0  ;;  %1577 = vmatpush.bf16.msrb.mxu1 %v5420_v3  ;;  %v5335_v0 = vld [vmem:[%s7318_s28 + $0x150] sm:$0xf]  ;;  %v5265_v3 = vld [vmem:[%s7318_s28 + $0xe0] sm:$0xf0]  ;;  %v6519_v2 = vld [vmem:[%s7311_s4 + $0x104] sm:$0xf0] }
  0xdc   : > { %v5268_v17 = vor.u32 %v6429_v4, %v5265_v3  ;;  %v5599_v63 = vld [vmem:[%s7311_s4 + $0xf0] sm:$0xf]  ;;  %v6516_v4 = vld [vmem:[%s7311_s4 + $0xf4] sm:$0xf]  ;;  %v5601_v3 = vld [vmem:[%s7311_s4 + $0x108] sm:$0xf0] }
  0xdd   : > { %1673 = vadd.xlane.f32.xlu1 %v1671_v18  ;;  %v5376_v18 = vor.u32 %v6463_v6, %v5375_v5  ;;  %v5216_v5 = vor.u32 %v6423_v57, %v5215_v56  ;;  %v5220_v6 = vor.u32 %v6418_v59, %v5217_v60  ;;  %v5351_v56 = vld [vmem:[%s7318_s28 + $0x160] sm:$0xf]  ;;  %v6455_v57 = vld [vmem:[%s7318_s28 + $0x184] sm:$0xf0]  ;;  %v6450_v59 = vld [vmem:[%s7318_s28 + $0x164] sm:$0xf] }
  0xde   : > { %v1659_v29 = vpop.xlane.xlu0 %1658  ;;  %v5353_v60 = vld [vmem:[%s7318_s28 + $0x188] sm:$0xf0] }
  0xdf   : > { %v1668_v33 = vmul.f32 %v7388_v55, %v1659_v29  ;;  %1553 = vmatpush.bf16.msra.mxu3 %v5252_v37  ;;  %1564 = vmatpush.bf16.msrb.mxu0 %v5376_v18  ;;  %v5336_v29 = vor.u32 %v6453_v20, %v5335_v0  ;;  %v5343_v37 = vld [vmem:[%s7318_s28 + $0x158] sm:$0xf]  ;;  %v5223_v18 = vld [vmem:[%s7318_s28 + $0x68] sm:$0xf]  ;;  %v6419_v0 = vld [vmem:[%s7318_s28 + $0x6c] sm:$0xf] }
  0xe0   : > { %1578 = vmatpush.bf16.msrb.mxu1 %v5380_v19  ;;  %v6424_v19 = vld [vmem:[%s7318_s28 + $0x8c] sm:$0xf0]  ;;  %v5225_v20 = vld [vmem:[%s7318_s28 + $0x90] sm:$0xf0] }
  0xe1   : > { %v7434_v45 = vsub.f32 %v7345_v1, %v1668_v33  ;;  %v5208_v1 = vor.u32 %v6422_v40, %v5207_v38  ;;  %v6438_v33 = vld [vmem:[%s7318_s28 + $0x104] sm:$0xf]  ;;  %v6454_v38 = vld [vmem:[%s7318_s28 + $0x17c] sm:$0xf0] }
  0xe2   : > { %v5345_v40 = vld [vmem:[%s7318_s28 + $0x180] sm:$0xf0]  ;;  %v5300_v42 = vor.u32 %v6438_v33, %v5297_v34  ;;  %v5344_v48 = vor.u32 %v6454_v38, %v5343_v37  ;;  %v6409_v33 = vld [vmem:[%s7318_s28 + $0x1c] sm:$0xf]  ;;  %v6528_v37 = vld [vmem:[%s7311_s4 + $0x154] sm:$0xf] }
  0xe3   : > { %v1672_v52 = vmul.f32 %v7434_v45, %v7434_v45  ;;  %1540 = vmatpush.bf16.msra.mxu2 %v5208_v1  ;;  %1554 = vmatpush.bf16.msra.mxu3 %v5212_v54  ;;  %v5348_v49 = vor.u32 %v6449_v39, %v5345_v40  ;;  %v5256_v1 = vor.u32 %v6433_v44, %v5255_v43  ;;  %v5185_v34 = vld [vmem:[%s7318_s28 + $0x40] sm:$0xf0]  ;;  %v5649_v38 = vld [vmem:[%s7311_s4 + $0x168] sm:$0xf0]  ;;  %v6460_v43 = vld [vmem:[%s7318_s28 + $0x1b4] sm:$0xf] }
  0xe4   : > { %1565 = vmatpush.bf16.msrb.mxu0 %v5336_v29  ;;  %1579 = vmatpush.bf16.msrb.mxu1 %v5340_v30  ;;  %v5260_v54 = vor.u32 %v6428_v46, %v5257_v47  ;;  %v5224_v29 = vor.u32 %v6424_v19, %v5223_v18  ;;  %v5228_v30 = vor.u32 %v6419_v0, %v5225_v20  ;;  %v5393_v44 = vld [vmem:[%s7318_s28 + $0x1d8] sm:$0xf0]  ;;  %v6430_v18 = vld [vmem:[%s7318_s28 + $0xc4] sm:$0xf]  ;;  %v5273_v19 = vld [vmem:[%s7318_s28 + $0xe8] sm:$0xf0] }
  0xe5   : > { %1675 = vadd.xlane.f32.xlu1 %v1672_v52  ;;  %v6439_v52 = vld [vmem:[%s7318_s28 + $0x10c] sm:$0xf]  ;;  %v5432_v39 = vor.u32 %v6475_v26, %v5431_v25  ;;  %v5436_v40 = vor.u32 %v6470_v27, %v5433_v28  ;;  %v5184_v46 = vor.u32 %v6414_v32, %v5183_v31  ;;  %v5188_v47 = vor.u32 %v6409_v33, %v5185_v34  ;;  %v5191_v27 = vld [vmem:[%s7318_s28 + $0x20] sm:$0xf]  ;;  %v6415_v28 = vld [vmem:[%s7318_s28 + $0x44] sm:$0xf0] }
  0xe6   : > { %v5308_v62 = vor.u32 %v6439_v52, %v5305_v53  ;;  %v6522_v52 = vld [vmem:[%s7311_s4 + $0x124] sm:$0xf]  ;;  %v5625_v53 = vld [vmem:[%s7311_s4 + $0x138] sm:$0xf0]  ;;  %v5276_v20 = vor.u32 %v6430_v18, %v5273_v19  ;;  %v5193_v31 = vld [vmem:[%s7318_s28 + $0x48] sm:$0xf0] }
  0xe7   : > { %1541 = vmatpush.bf16.msra.mxu2 %v5168_v9  ;;  %1555 = vmatpush.bf16.msra.mxu3 %v5172_v10  ;;  %v6408_v9 = vld [vmem:[%s7318_s28 + $0x14] sm:$0xf]  ;;  %v5177_v10 = vld [vmem:[%s7318_s28 + $0x38] sm:$0xf0]  ;;  %v5575_v32 = vld [vmem:[%s7311_s4 + $0xc0] sm:$0xf] }
  0xe8   : > { %1566 = vmatpush.bf16.msrb.mxu0 %v5296_v41  ;;  %1580 = vmatpush.bf16.msrb.mxu1 %v5300_v42  ;;  %v5180_v22 = vor.u32 %v6408_v9, %v5177_v10  ;;  %v5391_v41 = vld [vmem:[%s7318_s28 + $0x1b0] sm:$0xf]  ;;  %v6465_v42 = vld [vmem:[%s7318_s28 + $0x1d4] sm:$0xf0]  ;;  %v6440_v9 = vld [vmem:[%s7318_s28 + $0x114] sm:$0xf] }
  0xe9   : > { %v5313_v10 = vld [vmem:[%s7318_s28 + $0x138] sm:$0xf0]  ;;  %v6513_v33 = vld [vmem:[%s7311_s4 + $0xd4] sm:$0xf0]  ;;  %v6511_v18 = vld [vmem:[%s7311_s4 + $0xcc] sm:$0xf] }
  0xea   : > { %1542 = vmatmul.bf16.vlgmr.msra.gmra.mxu2 %v7444_v58  ;;  %1556 = vmatmul.bf16.vlgmr.msra.gmra.mxu3 %v7444_v58  ;;  %v5585_v19 = vld [vmem:[%s7311_s4 + $0xe0] sm:$0xf0] }
  0xeb   : > { %1590 = vmatpush.bf16.msrb.mxu2 %v5464_v11  ;;  %1604 = vmatpush.bf16.msrb.mxu3 %v5468_v13  ;;  %v5471_v11 = vld [vmem:[%s7318_s28 + $0x250] sm:$0xf]  ;;  %v6485_v13 = vld [vmem:[%s7318_s28 + $0x274] sm:$0xf0] }
  0xec   : > { %1567 = vmatpush.bf16.msrb.mxu0 %v5256_v1  ;;  %1581 = vmatpush.bf16.msrb.mxu1 %v5260_v54  ;;  %v5392_v1 = vor.u32 %v6465_v42, %v5391_v41  ;;  %v5396_v54 = vor.u32 %v6460_v43, %v5393_v44  ;;  %v6529_v41 = vld [vmem:[%s7311_s4 + $0x15c] sm:$0xf]  ;;  %v5657_v42 = vld [vmem:[%s7311_s4 + $0x170] sm:$0xf0] }
  0xed   : > { %v5660_v44 = vor.u32 %v6529_v41, %v5657_v42  ;;  %v5537_v42 = vld [vmem:[%s7311_s4 + $0x80] sm:$0xf0] }
  0xef   : > { %1591 = vmatpush.bf16.msrb.mxu2 %v5424_v23  ;;  %1605 = vmatpush.bf16.msrb.mxu3 %v5428_v24  ;;  %v5472_v23 = vor.u32 %v6485_v13, %v5471_v11  ;;  %v5476_v24 = vor.u32 %v6480_v14, %v5473_v15  ;;  %v5600_v11 = vor.u32 %v6519_v2, %v5599_v63  ;;  %v5529_v63 = vld [vmem:[%s7311_s4 + $0x78] sm:$0xf0]  ;;  %v5607_v2 = vld [vmem:[%s7311_s4 + $0xf8] sm:$0xf] }
  0xf0   : > { %1568 = vmatpush.bf16.msrb.mxu0 %v5216_v5  ;;  %1582 = vmatpush.bf16.msrb.mxu1 %v5220_v6  ;;  %v5352_v5 = vor.u32 %v6455_v57, %v5351_v56  ;;  %v5356_v6 = vor.u32 %v6450_v59, %v5353_v60  ;;  %v5604_v13 = vor.u32 %v6516_v4, %v5601_v3  ;;  %v5633_v56 = vld [vmem:[%s7311_s4 + $0x140] sm:$0xf0]  ;;  %v5527_v59 = vld [vmem:[%s7311_s4 + $0x60] sm:$0xf]  ;;  %v6501_v60 = vld [vmem:[%s7311_s4 + $0x74] sm:$0xf0] }
  0xf1   : > { %v5312_v14 = vor.u32 %v6445_v8, %v5311_v7  ;;  %v5316_v15 = vor.u32 %v6440_v9, %v5313_v10  ;;  %v6520_v4 = vld [vmem:[%s7311_s4 + $0x10c] sm:$0xf0]  ;;  %v6495_v9 = vld [vmem:[%s7311_s4 + $0x44] sm:$0xf0]  ;;  %v6492_v10 = vld [vmem:[%s7311_s4 + $0x34] sm:$0xf] }
  0xf2   : > { %v5503_v8 = vld [vmem:[%s7311_s4 + $0x30] sm:$0xf] }
  0xf3   : > { %1592 = vmatpush.bf16.msrb.mxu2 %v5384_v35  ;;  %1606 = vmatpush.bf16.msrb.mxu3 %v5388_v36  ;;  %v5647_v35 = vld [vmem:[%s7311_s4 + $0x150] sm:$0xf]  ;;  %v6531_v36 = vld [vmem:[%s7311_s4 + $0x164] sm:$0xf0] }
  0xf4   : > { %1569 = vmatpush.bf16.msrb.mxu0 %v5176_v21  ;;  %1583 = vmatpush.bf16.msrb.mxu1 %v5180_v22  ;;  %v5231_v21 = vld [vmem:[%s7318_s28 + $0x70] sm:$0xf]  ;;  %v6425_v22 = vld [vmem:[%s7318_s28 + $0x94] sm:$0xf0] }
  0xf5   : > { %v5232_v25 = vor.u32 %v6425_v22, %v5231_v21  ;;  %v6489_v21 = vld [vmem:[%s7311_s4 + $0x14] sm:$0xf0]  ;;  %v6486_v22 = vld [vmem:[%s7311_s4 + $0x4] sm:$0xf] }
  0xf7   : > { %1593 = vmatpush.bf16.msrb.mxu2 %v5344_v48  ;;  %1607 = vmatpush.bf16.msrb.mxu3 %v5348_v49  ;;  %v5648_v48 = vor.u32 %v6531_v36, %v5647_v35  ;;  %v5652_v49 = vor.u32 %v6528_v37, %v5649_v38  ;;  %v5576_v35 = vor.u32 %v6513_v33, %v5575_v32  ;;  %v6510_v36 = vld [vmem:[%s7311_s4 + $0xc4] sm:$0xf]  ;;  %v5577_v37 = vld [vmem:[%s7311_s4 + $0xd8] sm:$0xf0]  ;;  %v5655_v38 = vld [vmem:[%s7311_s4 + $0x158] sm:$0xf] }
  0xf8   : > { %1618 = vmatpush.bf16.msra.mxu0 %v5472_v23  ;;  %1632 = vmatpush.bf16.msra.mxu1 %v5476_v24  ;;  %v6420_v23 = vld [vmem:[%s7318_s28 + $0x74] sm:$0xf]  ;;  %v5233_v24 = vld [vmem:[%s7318_s28 + $0x98] sm:$0xf0]  ;;  %v6533_v33 = vld [vmem:[%s7311_s4 + $0x174] sm:$0xf0] }
  0xf9   : > { %1570 = vmatmul.bf16.vlgmr.msrb.gmra.mxu0 %v7444_v58  ;;  %1584 = vmatmul.bf16.vlgmr.msrb.gmra.mxu1 %v7444_v58  ;;  %v5236_v26 = vor.u32 %v6420_v23, %v5233_v24  ;;  %v5481_v24 = vld [vmem:[%s7311_s4 + $0x18] sm:$0xf0] }
  0xfb   : > { %1594 = vmatpush.bf16.msrb.mxu2 %v5304_v61  ;;  %1608 = vmatpush.bf16.msrb.mxu3 %v5308_v62  ;;  %v5624_v61 = vor.u32 %v6525_v51, %v5623_v50  ;;  %v5628_v62 = vor.u32 %v6522_v52, %v5625_v53  ;;  %v5553_v50 = vld [vmem:[%s7311_s4 + $0xa8] sm:$0xf0]  ;;  %v5631_v51 = vld [vmem:[%s7311_s4 + $0x128] sm:$0xf]  ;;  %v6526_v52 = vld [vmem:[%s7311_s4 + $0x13c] sm:$0xf0] }
  0xfc   : > { %1619 = vmatpush.bf16.msra.mxu0 %v5432_v39  ;;  %1633 = vmatpush.bf16.msra.mxu1 %v5436_v40  ;;  %v5580_v39 = vor.u32 %v6510_v36, %v5577_v37  ;;  %v6532_v40 = vld [vmem:[%s7311_s4 + $0x16c] sm:$0xf0] }
  0xfd   : > { %v5656_v43 = vor.u32 %v6532_v40, %v5655_v38  ;;  %v5535_v38 = vld [vmem:[%s7311_s4 + $0x68] sm:$0xf]  ;;  %v6499_v40 = vld [vmem:[%s7311_s4 + $0x6c] sm:$0xf] }
  0xff   : > { %1595 = vmatpush.bf16.msrb.mxu2 %v5264_v16  ;;  %1609 = vmatpush.bf16.msrb.mxu3 %v5268_v17  ;;  %v5271_v16 = vld [vmem:[%s7318_s28 + $0xc0] sm:$0xf]  ;;  %v6435_v17 = vld [vmem:[%s7318_s28 + $0xe4] sm:$0xf0] }
 0x100   : > { %1620 = vmatpush.bf16.msra.mxu0 %v5392_v1  ;;  %1634 = vmatpush.bf16.msra.mxu1 %v5396_v54  ;;  %v5272_v0 = vor.u32 %v6435_v17, %v5271_v16  ;;  %v5632_v1 = vor.u32 %v6526_v52, %v5631_v51  ;;  %v6523_v54 = vld [vmem:[%s7311_s4 + $0x12c] sm:$0xf]  ;;  %v5511_v51 = vld [vmem:[%s7311_s4 + $0x38] sm:$0xf]  ;;  %v6496_v52 = vld [vmem:[%s7311_s4 + $0x4c] sm:$0xf0] }
 0x101   : > { %v5636_v57 = vor.u32 %v6523_v54, %v5633_v56  ;;  %v5513_v54 = vld [vmem:[%s7311_s4 + $0x50] sm:$0xf0]  ;;  %v5615_v56 = vld [vmem:[%s7311_s4 + $0x100] sm:$0xf] }
 0x103   : > { %1596 = vmatpush.bf16.msrb.mxu2 %v5224_v29  ;;  %1610 = vmatpush.bf16.msrb.mxu3 %v5228_v30  ;;  %v6410_v29 = vld [vmem:[%s7318_s28 + $0x24] sm:$0xf]  ;;  %v5192_v30 = vor.u32 %v6415_v28, %v5191_v27  ;;  %v5484_v27 = vor.u32 %v6486_v22, %v5481_v24  ;;  %v5543_v22 = vld [vmem:[%s7311_s4 + $0x70] sm:$0xf]  ;;  %v6500_v24 = vld [vmem:[%s7311_s4 + $0x74] sm:$0xf] }
 0x104   : > { %1621 = vmatpush.bf16.msra.mxu0 %v5352_v5  ;;  %1635 = vmatpush.bf16.msra.mxu1 %v5356_v6  ;;  %v5196_v34 = vor.u32 %v6410_v29, %v5193_v31  ;;  %v5608_v5 = vor.u32 %v6520_v4, %v5607_v2  ;;  %v5609_v6 = vld [vmem:[%s7311_s4 + $0x110] sm:$0xf0]  ;;  %v6505_v29 = vld [vmem:[%s7311_s4 + $0x9c] sm:$0xf]  ;;  %v5663_v31 = vld [vmem:[%s7311_s4 + $0x160] sm:$0xf] }
 0x105   : > { %v5664_v36 = vor.u32 %v6533_v33, %v5663_v31  ;;  %v5487_v2 = vld [vmem:[%s7311_s4 + $0x8] sm:$0xf]  ;;  %v6490_v4 = vld [vmem:[%s7311_s4 + $0x1c] sm:$0xf0]  ;;  %v6494_v31 = vld [vmem:[%s7311_s4 + $0x44] sm:$0xf] }
 0x106   : > { %s7085_s28 = smov 64  }
 0x107   : > { %1597 = vmatpush.bf16.msrb.mxu2 %v5184_v46  ;;  %1611 = vmatpush.bf16.msrb.mxu3 %v5188_v47  ;;  %v5551_v46 = vld [vmem:[%s7311_s4 + $0x90] sm:$0xf]  ;;  %v6507_v47 = vld [vmem:[%s7311_s4 + $0xa4] sm:$0xf0] }
 0x108   : > { %1622 = vmatpush.bf16.msra.mxu0 %v5312_v14  ;;  %1636 = vmatpush.bf16.msra.mxu1 %v5316_v15  ;;  %v5583_v14 = vld [vmem:[%s7311_s4 + $0xc8] sm:$0xf]  ;;  %v6514_v15 = vld [vmem:[%s7311_s4 + $0xdc] sm:$0xf0] }
 0x109   : > { %v5584_v17 = vor.u32 %v6514_v15, %v5583_v14 }
 0x10a   : > { %1598 = vmatmul.bf16.vlgmr.msrb.gmra.mxu2 %v7444_v58  ;;  %1612 = vmatmul.bf16.vlgmr.msrb.gmra.mxu3 %v7444_v58 }
 0x10b   : > { %2006 = vmatpush.bf16.msra.mxu2 %v5648_v48  ;;  %2020 = vmatpush.bf16.msra.mxu3 %v5652_v49  ;;  %v6504_v48 = vld [vmem:[%s7311_s4 + $0x94] sm:$0xf]  ;;  %v5552_v49 = vor.u32 %v6507_v47, %v5551_v46  ;;  %v5540_v46 = vor.u32 %v6499_v40, %v5537_v42  ;;  %v6491_v40 = vld [vmem:[%s7311_s4 + $0x24] sm:$0xf0]  ;;  %v5497_v42 = vld [vmem:[%s7311_s4 + $0x28] sm:$0xf0] }
 0x10c   : > { %1623 = vmatpush.bf16.msra.mxu0 %v5272_v0  ;;  %1637 = vmatpush.bf16.msra.mxu1 %v5276_v20  ;;  %v5556_v53 = vor.u32 %v6504_v48, %v5553_v50  ;;  %v5588_v0 = vor.u32 %v6511_v18, %v5585_v19  ;;  %v5479_v20 = vld [vmem:[%s7311_s4] sm:$0xf]  ;;  %v6524_v48 = vld [vmem:[%s7311_s4 + $0x134] sm:$0xf]  ;;  %v6506_v18 = vld [vmem:[%s7311_s4 + $0xa4] sm:$0xf] }
 0x10d   : > { %v5480_v23 = vor.u32 %v6489_v21, %v5479_v20  ;;  %v5569_v20 = vld [vmem:[%s7311_s4 + $0xb8] sm:$0xf0] }
 0x10e   : > { %v5572_v21 = vor.u32 %v6506_v18, %v5569_v20 }
 0x10f   : > { %2007 = vmatpush.bf16.msra.mxu2 %v5624_v61  ;;  %2021 = vmatpush.bf16.msra.mxu3 %v5628_v62  ;;  %v6498_v61 = vld [vmem:[%s7311_s4 + $0x64] sm:$0xf]  ;;  %v5528_v62 = vor.u32 %v6501_v60, %v5527_v59 }
 0x110   : > { %1624 = vmatpush.bf16.msra.mxu0 %v5232_v25  ;;  %1638 = vmatpush.bf16.msra.mxu1 %v5236_v26  ;;  %v5532_v3 = vor.u32 %v6498_v61, %v5529_v63  ;;  %v5559_v25 = vld [vmem:[%s7311_s4 + $0x98] sm:$0xf]  ;;  %v6508_v26 = vld [vmem:[%s7311_s4 + $0xac] sm:$0xf0]  ;;  %v6518_v61 = vld [vmem:[%s7311_s4 + $0x104] sm:$0xf] }
 0x111   : > { %v5560_v28 = vor.u32 %v6508_v26, %v5559_v25  ;;  %v5545_v25 = vld [vmem:[%s7311_s4 + $0x88] sm:$0xf0] }
 0x113   : > { %2008 = vmatpush.bf16.msra.mxu2 %v5600_v11  ;;  %2022 = vmatpush.bf16.msra.mxu3 %v5604_v13  ;;  %v5504_v11 = vor.u32 %v6495_v9, %v5503_v8  ;;  %v5505_v13 = vld [vmem:[%s7311_s4 + $0x48] sm:$0xf0] }
 0x114   : > { %1625 = vmatpush.bf16.msra.mxu0 %v5192_v30  ;;  %1639 = vmatpush.bf16.msra.mxu1 %v5196_v34  ;;  %v5508_v16 = vor.u32 %v6492_v10, %v5505_v13  ;;  %v5561_v30 = vld [vmem:[%s7311_s4 + $0xb0] sm:$0xf0]  ;;  %v6530_v34 = vld [vmem:[%s7311_s4 + $0x164] sm:$0xf] }
 0x115   : > { %v5564_v32 = vor.u32 %v6505_v29, %v5561_v30  ;;  %v6512_v10 = vld [vmem:[%s7311_s4 + $0xd4] sm:$0xf]  ;;  %v6497_v30 = vld [vmem:[%s7311_s4 + $0x54] sm:$0xf0] }
 0x117   : > { %2009 = vmatpush.bf16.msra.mxu2 %v5576_v35  ;;  %2023 = vmatpush.bf16.msra.mxu3 %v5580_v39  ;;  %v5665_v35 = vld [vmem:[%s7311_s4 + $0x178] sm:$0xf0]  ;;  %v6502_v39 = vld [vmem:[%s7311_s4 + $0x7c] sm:$0xf0] }
 0x118   : > { %2034 = vmatpush.bf16.msrb.mxu0 %v5656_v43  ;;  %2048 = vmatpush.bf16.msrb.mxu1 %v5660_v44  ;;  %v5668_v37 = vor.u32 %v6530_v34, %v5665_v35  ;;  %v5536_v41 = vor.u32 %v6502_v39, %v5535_v38  ;;  %v5639_v43 = vld [vmem:[%s7311_s4 + $0x130] sm:$0xf]  ;;  %v6527_v44 = vld [vmem:[%s7311_s4 + $0x144] sm:$0xf0] }
 0x119   : > { %1626 = vmatmul.bf16.vlgmr.msra.gmra.mxu0 %v7444_v58  ;;  %1640 = vmatmul.bf16.vlgmr.msra.gmra.mxu1 %v7444_v58  ;;  %v6517_v58 = vld [vmem:[%s7311_s4 + $0xfc] sm:$0xf]  ;;  %v5640_v47 = vor.u32 %v6527_v44, %v5639_v43  ;;  %v5495_v38 = vld [vmem:[%s7311_s4 + $0x10] sm:$0xf] }
 0x11a   : > { %v5612_v7 = vor.u32 %v6517_v58, %v5609_v6  ;;  %v5489_v58 = vld [vmem:[%s7311_s4 + $0x20] sm:$0xf0]  ;;  %v5591_v6 = vld [vmem:[%s7311_s4 + $0xd0] sm:$0xf]  ;;  %v5496_v44 = vor.u32 %v6491_v40, %v5495_v38 }
 0x11b   : > { %2010 = vmatpush.bf16.msra.mxu2 %v5552_v49  ;;  %2024 = vmatpush.bf16.msra.mxu3 %v5556_v53  ;;  %v5641_v49 = vld [vmem:[%s7311_s4 + $0x148] sm:$0xf0]  ;;  %v6493_v53 = vld [vmem:[%s7311_s4 + $0x3c] sm:$0xf] }
 0x11c   : > { %2035 = vmatpush.bf16.msrb.mxu0 %v5632_v1  ;;  %2049 = vmatpush.bf16.msrb.mxu1 %v5636_v57  ;;  %v5644_v50 = vor.u32 %v6524_v48, %v5641_v49  ;;  %v5512_v1 = vor.u32 %v6496_v52, %v5511_v51  ;;  %v6521_v57 = vld [vmem:[%s7311_s4 + $0x114] sm:$0xf0]  ;;  %v5516_v59 = vor.u32 %v6493_v53, %v5513_v54  ;;  %v7651_v49 = vld [vmem:[%s7648_s17] sm:$0xff]  ;;  %v1515_v53 = vpop.f32.mrf.mxu0  ;;  %v1529_v54 = vpop.f32.mrf.mxu1 }
 0x11d   : > { %v5616_v60 = vor.u32 %v6521_v57, %v5615_v56  ;;  %v1086_v52 = vperm.slane %v7651_v49, 0  ;;  %v1090_v20 = vperm.slane %v7651_v49, 4 }
 0x11f   : > { %2011 = vmatpush.bf16.msra.mxu2 %v5528_v62  ;;  %2025 = vmatpush.bf16.msra.mxu3 %v5532_v3  ;;  %v5617_v62 = vld [vmem:[%s7311_s4 + $0x118] sm:$0xf0]  ;;  %v6487_v3 = vld [vmem:[%s7311_s4 + $0xc] sm:$0xf]  ;;  %v1516_v57 = vadd.f32 %v1515_v53, %v1086_v52 }
 0x120   : > { %2036 = vmatpush.bf16.msrb.mxu0 %v5608_v5  ;;  %2050 = vmatpush.bf16.msrb.mxu1 %v5612_v7  ;;  %v5620_v63 = vor.u32 %v6518_v61, %v5617_v62  ;;  %v5488_v5 = vor.u32 %v6490_v4, %v5487_v2  ;;  %v6515_v7 = vld [vmem:[%s7311_s4 + $0xe4] sm:$0xf0]  ;;  %v5492_v8 = vor.u32 %v6487_v3, %v5489_v58 }
 0x121   : > { %v5592_v9 = vor.u32 %v6515_v7, %v5591_v6 }
 0x123   : > { %2012 = vmatpush.bf16.msra.mxu2 %v5504_v11  ;;  %2026 = vmatpush.bf16.msra.mxu3 %v5508_v16  ;;  %v5593_v11 = vld [vmem:[%s7311_s4 + $0xe8] sm:$0xf0]  ;;  %v5567_v16 = vld [vmem:[%s7311_s4 + $0xa0] sm:$0xf] }
 0x124   : > { %2037 = vmatpush.bf16.msrb.mxu0 %v5584_v17  ;;  %2051 = vmatpush.bf16.msrb.mxu1 %v5588_v0  ;;  %v5596_v14 = vor.u32 %v6512_v10, %v5593_v11  ;;  %v6509_v17 = vld [vmem:[%s7311_s4 + $0xb4] sm:$0xf0]  ;;  %v1517_v3 = vpop.f32.mrf.mxu0  ;;  %v1088_v10 = vperm.slane %v7651_v49, 2  ;;  %v1089_v11 = vperm.slane %v7651_v49, 3 }
 0x125   : > { %v5568_v0 = vor.u32 %v6509_v17, %v5567_v16  ;;  %v1518_v6 = vadd.f32 %v1517_v3, %v1086_v52 }
 0x127   : > { %2013 = vmatpush.bf16.msra.mxu2 %v5480_v23  ;;  %2027 = vmatpush.bf16.msra.mxu3 %v5484_v27  ;;  %v6503_v23 = vld [vmem:[%s7311_s4 + $0x84] sm:$0xf0]  ;;  %v5548_v27 = vor.u32 %v6500_v24, %v5545_v25 }
 0x128   : > { %2038 = vmatpush.bf16.msrb.mxu0 %v5560_v28  ;;  %2052 = vmatpush.bf16.msrb.mxu1 %v5564_v32  ;;  %v5544_v26 = vor.u32 %v6503_v23, %v5543_v22  ;;  %v5519_v28 = vld [vmem:[%s7311_s4 + $0x40] sm:$0xf]  ;;  %v5521_v32 = vld [vmem:[%s7311_s4 + $0x58] sm:$0xf0] }
 0x12b   : > { %2062 = vmatpush.bf16.msrb.mxu2 %v5664_v36  ;;  %2076 = vmatpush.bf16.msrb.mxu3 %v5668_v37  ;;  %v5520_v36 = vor.u32 %v6497_v30, %v5519_v28  ;;  %v5524_v37 = vor.u32 %v6494_v31, %v5521_v32 }
 0x12c   : > { %2039 = vmatpush.bf16.msrb.mxu0 %v5536_v41  ;;  %2053 = vmatpush.bf16.msrb.mxu1 %v5540_v46  ;;  %v6488_v41 = vld [vmem:[%s7311_s4 + $0x14] sm:$0xf] }
 0x12d   : > { %v5500_v46 = vor.u32 %v6488_v41, %v5497_v42 }
 0x12f   : > { %2063 = vmatpush.bf16.msrb.mxu2 %v5640_v47  ;;  %2077 = vmatpush.bf16.msrb.mxu3 %v5644_v50 }
 0x130   : > { %2040 = vmatpush.bf16.msrb.mxu0 %v5512_v1  ;;  %2054 = vmatpush.bf16.msrb.mxu1 %v5516_v59  ;;  %v1087_v1 = vperm.slane %v7651_v49, 1 }
 0x132   : > { %v1530_v59 = vadd.f32 %v1529_v54, %v1087_v1 }
 0x133   : > { %2064 = vmatpush.bf16.msrb.mxu2 %v5616_v60  ;;  %2078 = vmatpush.bf16.msrb.mxu3 %v5620_v63 }
 0x134   : > { %2041 = vmatpush.bf16.msrb.mxu0 %v5488_v5  ;;  %2055 = vmatpush.bf16.msrb.mxu1 %v5492_v8  ;;  %v7655_v62 = vpack.c.bf16 %v1530_v59, %v1516_v57  ;;  %v1531_v5 = vpop.f32.mrf.mxu1 }
 0x135   : > { %v1532_v7 = vadd.f32 %v1531_v5, %v1087_v1 }
 0x137   : > { %2065 = vmatpush.bf16.msrb.mxu2 %v5592_v9  ;;  %2079 = vmatpush.bf16.msrb.mxu3 %v5596_v14  ;;  %v7662_v14 = vpack.c.bf16 %v1532_v7, %v1518_v6 }
 0x139   : > { %v2497_v16 = vunpack.c.l.b16 %v7662_v14 }
 0x13b   : > { %2066 = vmatpush.bf16.msrb.mxu2 %v5568_v0  ;;  %2080 = vmatpush.bf16.msrb.mxu3 %v5572_v21  ;;  %v1091_v21 = vperm.slane %v7651_v49, 5 }
 0x13f   : > { %2067 = vmatpush.bf16.msrb.mxu2 %v5544_v26  ;;  %2081 = vmatpush.bf16.msrb.mxu3 %v5548_v27 }
 0x143   : > { %2068 = vmatpush.bf16.msrb.mxu2 %v5520_v36  ;;  %2082 = vmatpush.bf16.msrb.mxu3 %v5524_v37 }
 0x147   : > { %2069 = vmatpush.bf16.msrb.mxu2 %v5496_v44  ;;  %2083 = vmatpush.bf16.msrb.mxu3 %v5500_v46 }
 0x150   : > { %v1674_v13 = vpop.xlane.xlu1 %1673 }
 0x151   : > { %v1677_v15 = vmul.f32 %v1674_v13, %v7388_v55  ;;  %v2496_v13 = vunpack.c.l.b16 %v7655_v62 }
 0x153   : > { %v1679_v19 = vadd.f32 1e-12, %v1677_v15 }
 0x155   : > { %6778 = vrsqrt.f32 %v1679_v19  ;;  %vm1687_vm2 = vweird.f32 %v1679_v19 }
 0x158   : > { %v1676_v29 = vpop.xlane.xlu1 %1675 }
 0x159   : > { %v1678_v33 = vmul.f32 %v1676_v29, %v7388_v55 }
 0x15b   : > { %v6779_v34 = vpop.eup %6778  ;;  %v1680_v35 = vadd.f32 1e-12, %v1678_v33  ;;  %v1092_v33 = vperm.slane %v7651_v49, 6 }
 0x15c   : > { %v1682_v39 = vmul.f32 %v6779_v34, %v1679_v19  ;;  %vm1688_vm1 = vweird.f32 %v6779_v34 }
 0x15d   : > { %6780 = vrsqrt.f32 %v1680_v35  ;;  %vm1689_vm4 = vmor %vm1687_vm2, %vm1688_vm1  ;;  %vm1697_vm5 = vweird.f32 %v1680_v35 }
 0x15e   : > { %v1683_v43 = vmul.f32 %v6779_v34, %v1682_v39 }
 0x160   : > { %v1684_v47 = vmul.f32 0.5, %v1683_v43 }
 0x162   : > { %v1685_v50 = vsub.f32 1.5, %v1684_v47 }
 0x163   : > { %v6781_v48 = vpop.eup %6780 }
 0x164   : > { %v1692_v51 = vmul.f32 %v6781_v48, %v1680_v35  ;;  %v1686_v60 = vmul.f32 %v6779_v34, %v1685_v50  ;;  %vm1698_vm3 = vweird.f32 %v6781_v48 }
 0x165   : > { %vm1699_vm6 = vmor %vm1697_vm5, %vm1698_vm3 }
 0x166   : > { %v1693_v56 = vmul.f32 %v6781_v48, %v1692_v51  ;;  %v1690_v2 = vsel %vm1689_vm4, %v6779_v34, %v1686_v60  ;;  %v1093_v34 = vperm.slane %v7651_v49, 7 }
 0x167   : > { %v1701_v8 = vmul.f32 %v1690_v2, %v7403_v12  ;;  %v7665_v12 = vpack.c.b16 %v2497_v16, %v2496_v13 }
 0x168   : > { %v1694_v61 = vmul.f32 0.5, %v1693_v56 }
 0x16a   : > { %v1695_v63 = vsub.f32 1.5, %v1694_v61 }
 0x16c   : > { %v1696_v4 = vmul.f32 %v6781_v48, %v1695_v63 }
 0x16d   : > { %v1543_v17 = vpop.f32.mrf.mxu2  ;;  %v1557_v18 = vpop.f32.mrf.mxu3 }
 0x16e   : > { %v1700_v58 = vsel %vm1699_vm6, %v6781_v48, %v1696_v4  ;;  %v1544_v19 = vadd.f32 %v1543_v17, %v1088_v10  ;;  %v1558_v0 = vadd.f32 %v1557_v18, %v1089_v11  ;;  %v1083_v48 = vld [vmem:[%s7648_s17 + $0x8] sm:$0x3]  ;;  %s7087_s17 = smov 16  }
 0x16f   : > { %v1702_v9 = vmul.f32 %v1700_v58, %v7434_v45  ;;  %v1094_v50 = vperm.slane %v1083_v48, 0  ;;  %v1095_v51 = vperm.slane %v1083_v48, 1 }
 0x170   : > { %v1647_v45 = vpack.c.bf16 %v1558_v0, %v1544_v19 }
 0x171   : > { %v1703_v15 = vpack.c.bf16 %v1702_v9, %v1701_v8 }
 0x172   : > { %v2718_v60 = vunpack.c.l.b16 %v1647_v45  ;;  %v2722_v61 = vunpack.c.h.b16 %v1647_v45 }
 0x173   : > { %2014 = vmatmul.bf16.vlgmr.msra.gmra.mxu2 %v1703_v15  ;;  %2028 = vmatmul.bf16.vlgmr.msra.gmra.mxu3 %v1703_v15 }
 0x174   : > { %2042 = vmatmul.bf16.vlgmr.msrb.gmra.mxu0 %v1703_v15  ;;  %2056 = vmatmul.bf16.vlgmr.msrb.gmra.mxu1 %v1703_v15 }
 0x175   : > { %v1545_v27 = vpop.f32.mrf.mxu2  ;;  %v1559_v28 = vpop.f32.mrf.mxu3 }
 0x176   : > { %v1571_v22 = vpop.f32.mrf.mxu0  ;;  %v1585_v23 = vpop.f32.mrf.mxu1  ;;  %v1546_v52 = vadd.f32 %v1545_v27, %v1088_v10  ;;  %v1560_v53 = vadd.f32 %v1559_v28, %v1089_v11 }
 0x177   : > { %v1572_v24 = vadd.f32 %v1571_v22, %v1090_v20  ;;  %v1586_v25 = vadd.f32 %v1585_v23, %v1091_v21  ;;  %v1752_v23 = vld [vmem:[%s7696_s22] sm:$0x3f] }
 0x178   : > { %v1652_v57 = vpack.c.bf16 %v1560_v53, %v1546_v52  ;;  %v1755_v27 = vperm.slane %v1752_v23, 1 }
 0x179   : > { %v1648_v26 = vpack.c.bf16 %v1586_v25, %v1572_v24 }
 0x17a   : > { %v2719_v63 = vunpack.c.l.b16 %v1652_v57  ;;  %v2723_v2 = vunpack.c.h.b16 %v1652_v57 }
 0x17b   : > { %v2728_v35 = vunpack.c.l.b16 %v1648_v26  ;;  %v3925_v36 = vunpack.c.h.b16 %v1648_v26  ;;  %v1754_v26 = vperm.slane %v1752_v23, 0 }
 0x17c   : > { %v7678_v6 = vpack.c.b16 %v2723_v2, %v2722_v61  ;;  %v7680_v7 = vpack.c.b16 %v2719_v63, %v2718_v60  ;;  %v1757_v61 = vperm.slane %v1752_v23, 3 }
 0x17e   : > { %v1573_v29 = vpop.f32.mrf.mxu0  ;;  %v1587_v30 = vpop.f32.mrf.mxu1 }
 0x17f   : > { %v1574_v31 = vadd.f32 %v1573_v29, %v1090_v20  ;;  %v1588_v32 = vadd.f32 %v1587_v30, %v1091_v21 }
 0x181   : > { %v1653_v37 = vpack.c.bf16 %v1588_v32, %v1574_v31 }
 0x183   : > { %2070 = vmatmul.bf16.vlgmr.msrb.gmra.mxu2 %v1703_v15  ;;  %2084 = vmatmul.bf16.vlgmr.msrb.gmra.mxu3 %v1703_v15  ;;  %v2729_v38 = vunpack.c.l.b16 %v1653_v37  ;;  %v3926_v39 = vunpack.c.h.b16 %v1653_v37 }
 0x185   : > { %v7671_v44 = vpack.c.b16 %v2729_v38, %v2728_v35  ;;  %v7673_v46 = vpack.c.b16 %v3926_v39, %v3925_v36 }
 0x18d   : > { %v1599_v40 = vpop.f32.mrf.mxu2  ;;  %v1613_v41 = vpop.f32.mrf.mxu3 }
 0x18e   : > { %v1600_v42 = vadd.f32 %v1599_v40, %v1092_v33  ;;  %v1614_v43 = vadd.f32 %v1613_v41, %v1093_v34 }
 0x190   : > { %v1649_v47 = vpack.c.bf16 %v1614_v43, %v1600_v42 }
 0x192   : > { %v4143_v19 = vunpack.c.l.b16 %v1649_v47  ;;  %v4147_v0 = vunpack.c.h.b16 %v1649_v47 }
 0x195   : > { %v1601_v10 = vpop.f32.mrf.mxu2  ;;  %v1615_v11 = vpop.f32.mrf.mxu3 }
 0x196   : > { %v1627_v49 = vpop.f32.mrf.mxu0  ;;  %v1641_v1 = vpop.f32.mrf.mxu1  ;;  %v1602_v16 = vadd.f32 %v1601_v10, %v1092_v33  ;;  %v1616_v17 = vadd.f32 %v1615_v11, %v1093_v34 }
 0x197   : > { %v1628_v54 = vadd.f32 %v1627_v49, %v1094_v50  ;;  %v1642_v56 = vadd.f32 %v1641_v1, %v1095_v51 }
 0x198   : > { %v1654_v18 = vpack.c.bf16 %v1616_v17, %v1602_v16 }
 0x199   : > { %v7676_v59 = vpack.c.bf16 %v1642_v56, %v1628_v54  ;;  %v1756_v56 = vperm.slane %v1752_v23, 2 }
 0x19a   : > { %v4144_v45 = vunpack.c.l.b16 %v1654_v18  ;;  %v4148_v20 = vunpack.c.h.b16 %v1654_v18 }
 0x19b   : > { %v4157_v8 = vunpack.c.h.b16 %v7676_v59 }
 0x19c   : > { %v7688_v21 = vpack.c.b16 %v4148_v20, %v4147_v0  ;;  %v7690_v22 = vpack.c.b16 %v4144_v45, %v4143_v19 }
 0x19e   : > { %v1629_v4 = vpop.f32.mrf.mxu0  ;;  %v1643_v3 = vpop.f32.mrf.mxu1 }
 0x19f   : > { %v1630_v5 = vadd.f32 %v1629_v4, %v1094_v50  ;;  %v1644_v58 = vadd.f32 %v1643_v3, %v1095_v51  ;;  %v1758_v50 = vperm.slane %v1752_v23, 4  ;;  %v1759_v51 = vperm.slane %v1752_v23, 5 }
 0x1a1   : > { %v7683_v9 = vpack.c.bf16 %v1644_v58, %v1630_v5 }
 0x1a3   : > { %v4158_v13 = vunpack.c.h.b16 %v7683_v9 }
 0x1a5   : > { %v7686_v15 = vpack.c.b16 %v4158_v13, %v4157_v8 }
 0x1f1   : > { %v2043_v36 = vpop.f32.mrf.mxu0  ;;  %v2057_v37 = vpop.f32.mrf.mxu1 }
 0x1f2   : > { %v2044_v8 = vadd.f32 %v2043_v36, %v1756_v56  ;;  %v2058_v10 = vadd.f32 %v2057_v37, %v1757_v61  ;;  %v2503_v36 = vsel %vm2105_vm7, %v7665_v12, 0 }
 0x1f4   : > { %v2091_v19 = vpack.c.bf16 %v2058_v10, %v2044_v8 }
 0x1f6   : > { %v2015_v24 = vpop.f32.mrf.mxu2  ;;  %v2029_v25 = vpop.f32.mrf.mxu3  ;;  %v2327_v23 = vunpack.c.h.b16 %v2091_v19 }
 0x1f7   : > { %v2016_v28 = vadd.f32 %v2015_v24, %v1754_v26  ;;  %v2030_v29 = vadd.f32 %v2029_v25, %v1755_v27 }
 0x1f9   : > { %v2090_v32 = vpack.c.bf16 %v2030_v29, %v2016_v28  ;;  %v2045_v1 = vpop.f32.mrf.mxu0  ;;  %v2059_v54 = vpop.f32.mrf.mxu1 }
 0x1fa   : > { %v2046_v3 = vadd.f32 %v2045_v1, %v1756_v56  ;;  %v2060_v5 = vadd.f32 %v2059_v54, %v1757_v61 }
 0x1fb   : > { %v2099_v38 = vunpack.c.l.b16 %v2090_v32  ;;  %v2102_v39 = vunpack.c.h.b16 %v2090_v32 }
 0x1fc   : > { %v2094_v16 = vpack.c.bf16 %v2060_v5, %v2046_v3 }
 0x1fe   : > { %v2017_v30 = vpop.f32.mrf.mxu2  ;;  %v2031_v31 = vpop.f32.mrf.mxu3  ;;  %v2328_v45 = vunpack.c.h.b16 %v2094_v16  ;;  %v2324_v24 = vunpack.c.l.b16 %v2094_v16 }
 0x1ff   : > { %v2018_v33 = vadd.f32 %v2017_v30, %v1754_v26  ;;  %v2032_v34 = vadd.f32 %v2031_v31, %v1755_v27  ;;  %v2323_v26 = vunpack.c.l.b16 %v2091_v19 }
 0x200   : > { %v2329_v25 = vpack.c.b16 %v2328_v45, %v2327_v23 }
 0x201   : > { %v2093_v35 = vpack.c.bf16 %v2032_v34, %v2018_v33  ;;  %v2325_v27 = vpack.c.b16 %v2324_v24, %v2323_v26 }
 0x203   : > { %v2100_v40 = vunpack.c.l.b16 %v2093_v35  ;;  %v2103_v41 = vunpack.c.h.b16 %v2093_v35 }
 0x205   : > { %v2101_v42 = vpack.c.b16 %v2100_v40, %v2099_v38  ;;  %v2104_v43 = vpack.c.b16 %v2103_v41, %v2102_v39  ;;  %v2712_v38 = vunpack.c.h.b16 %v7655_v62  ;;  %v2713_v39 = vunpack.c.h.b16 %v7662_v14  ;;  %v995_v62 = vld [vmem:[%s8607_s20] sm:$0xff] }
 0x206   : > { %v2071_v47 = vpop.f32.mrf.mxu2  ;;  %v2085_v48 = vpop.f32.mrf.mxu3  ;;  %v4153_v41 = vunpack.c.l.b16 %v7676_v59 }
 0x207   : > { %2151 = vrot.lane.b32.xlu0 %v2104_v43, %s7084_s6  ;;  %2197 = vrot.lane.b32.xlu2 %v2104_v43, %s7085_s28  ;;  %v2110_v52 = vsel %vm2105_vm7, %v2104_v43, 0  ;;  %v2072_v53 = vadd.f32 %v2071_v47, %v1758_v50  ;;  %v2086_v49 = vadd.f32 %v2085_v48, %v1759_v51  ;;  %v7717_v40 = vpack.c.b16 %v2713_v39, %v2712_v38 }
 0x208   : > { %2195 = vrot.lane.b32.xlu1 %v2101_v42, %s7085_s28  ;;  %2119 = vmatpush.bf16.xpose.msra.mxu0 %v2110_v52 }
 0x209   : > { %v2092_v63 = vpack.c.bf16 %v2086_v49, %v2072_v53 }
 0x20b   : > { %v2337_v11 = vunpack.c.h.b16 %v2092_v63  ;;  %v2333_v0 = vunpack.c.l.b16 %v2092_v63 }
 0x20e   : > { %v2073_v57 = vpop.f32.mrf.mxu2  ;;  %v2087_v60 = vpop.f32.mrf.mxu3 }
 0x20f   : > { %v2074_v2 = vadd.f32 %v2073_v57, %v1758_v50  ;;  %v2088_v4 = vadd.f32 %v2087_v60, %v1759_v51  ;;  %2243 = vrot.lane.b32.xlu2 %v2104_v43, %s7086_s1  ;;  %5669 = vmatmul.msk.bf16.vlgmr.msra.gmra.mxu0 %vm2105_vm7, %v2101_v42 }
 0x211   : > { %v2095_v58 = vpack.c.bf16 %v2088_v4, %v2074_v2  ;;  %v996_v4 = vld [vmem:[%s8607_s20 + $0x8] sm:$0xff] }
 0x213   : > { %v2338_v13 = vunpack.c.h.b16 %v2095_v58  ;;  %v2334_v17 = vunpack.c.l.b16 %v2095_v58 }
 0x215   : > { %v2339_v18 = vpack.c.b16 %v2338_v13, %v2337_v11  ;;  %v2335_v20 = vpack.c.b16 %v2334_v17, %v2333_v0 }
 0x217   : > { %2351 = vmatpush.bf16.msrb.mxu0 %v2339_v18  ;;  %2241 = vrot.lane.b32.xlu2 %v2101_v42, %s7086_s1 }
 0x21b   : > { %2352 = vmatpush.bf16.msrb.mxu0 %v2335_v20 }
 0x21f   : > { %2353 = vmatpush.bf16.msrb.mxu0 %v2329_v25  ;;  %2149 = vrot.lane.b32.xlu2 %v2101_v42, %s7084_s6  ;;  %v4154_v42 = vunpack.c.l.b16 %v7683_v9 }
 0x221   : > { %v7721_v43 = vpack.c.b16 %v4154_v42, %v4153_v41 }
 0x223   : > { %2354 = vmatpush.bf16.msrb.mxu0 %v2325_v27 }
 0x261   : > { %v2198_v28 = vpop.permute.xlu2 %2197 }
 0x262   : > { %v2203_v29 = vsel %vm2105_vm7, %v2198_v28, 0 }
 0x263   : > { %2212 = vmatpush.bf16.xpose.msra.mxu2 %v2203_v29 }
 0x269   : > { %v2244_v30 = vpop.permute.xlu2 %2243 }
 0x26a   : > { %v2249_v31 = vsel %vm2105_vm7, %v2244_v30, 0 }
 0x26b   : > { %2258 = vmatpush.bf16.xpose.msra.mxu3 %v2249_v31  ;;  %2512 = vmatpush.bf16.xpose.msrb.mxu2 %v2503_v36 }
 0x271   : > { %v2242_v32 = vpop.permute.xlu2 %2241 }
 0x272   : > { %5672 = vmatmul.msk.bf16.vlgmr.msra.gmra.mxu3 %vm2105_vm7, %v2242_v32 }
 0x279   : > { %v2152_v33 = vpop.permute.xlu0 %2151  ;;  %v2150_v37 = vpop.permute.xlu2 %2149 }
 0x27a   : > { %v2157_v34 = vsel %vm2105_vm7, %v2152_v33, 0  ;;  %v2196_v35 = vpop.permute.xlu1 %2195 }
 0x27b   : > { %5671 = vmatmul.msk.bf16.vlgmr.msra.gmra.mxu2 %vm2105_vm7, %v2196_v35  ;;  %2166 = vmatpush.bf16.xpose.msra.mxu1 %v2157_v34 }
 0x282   : > { %5670 = vmatmul.msk.bf16.vlgmr.msra.gmra.mxu1 %vm2105_vm7, %v2150_v37 }
 0x28c   : > { %v2121_v48 = vpop.f32.mrf.mxu0 }
 0x28d   : > { %v2126_v51 = vmul.f32 0.17677669, %v2121_v48 }
 0x28f   : > { %v2128_v54 = vadd.f32 %v2126_v51, %v995_v62 }
 0x291   : > { %v2130_v60 = vmul.f32 1.442695, %v2128_v54 }
 0x294   : > { %v2123_v0 = vpop.f32.mrf.mxu0 }
 0x295   : > { %v2127_v23 = vmul.f32 0.17677669, %v2123_v0 }
 0x297   : > { %v2129_v28 = vadd.f32 %v2127_v23, %v996_v4 }
 0x299   : > { %v2132_v32 = vmul.f32 1.442695, %v2129_v28 }
 0x2f5   : > { %v2260_v47 = vpop.f32.mrf.mxu3 }
 0x2f6   : > { %v2265_v61 = vmul.f32 0.17677669, %v2260_v47 }
 0x2f8   : > { %v2267_v11 = vadd.f32 %v2265_v61, %v995_v62 }
 0x2fa   : > { %v2269_v20 = vmul.f32 1.442695, %v2267_v11 }
 0x2fd   : > { %v2262_v9 = vpop.f32.mrf.mxu3 }
 0x2fe   : > { %v2214_v50 = vpop.f32.mrf.mxu2  ;;  %v2266_v3 = vmul.f32 0.17677669, %v2262_v9 }
 0x2ff   : > { %v2219_v52 = vmul.f32 0.17677669, %v2214_v50  ;;  %v2168_v53 = vpop.f32.mrf.mxu1 }
 0x300   : > { %v2173_v49 = vmul.f32 0.17677669, %v2168_v53  ;;  %v2268_v17 = vadd.f32 %v2266_v3, %v996_v4 }
 0x301   : > { %v2221_v14 = vadd.f32 %v2219_v52, %v995_v62 }
 0x302   : > { %v2175_v1 = vadd.f32 %v2173_v49, %v995_v62  ;;  %v2271_v24 = vmul.f32 1.442695, %v2268_v17 }
 0x303   : > { %v2223_v56 = vmul.f32 1.442695, %v2221_v14 }
 0x304   : > { %v2177_v59 = vmul.f32 1.442695, %v2175_v1 }
 0x305   : > { %6782 = vpow2.f32 %v2223_v56 }
 0x306   : > { %6784 = vpow2.f32 %v2177_v59  ;;  %v2216_v57 = vpop.f32.mrf.mxu2 }
 0x307   : > { %v2220_v63 = vmul.f32 0.17677669, %v2216_v57  ;;  %v2170_v2 = vpop.f32.mrf.mxu1  ;;  %6786 = vpow2.f32 %v2130_v60 }
 0x308   : > { %v2174_v5 = vmul.f32 0.17677669, %v2170_v2 }
 0x309   : > { %v2222_v58 = vadd.f32 %v2220_v63, %v996_v4 }
 0x30a   : > { %v2176_v8 = vadd.f32 %v2174_v5, %v996_v4 }
 0x30b   : > { %v6783_v10 = vpop.eup %6782  ;;  %v2225_v13 = vmul.f32 1.442695, %v2222_v58 }
 0x30c   : > { %v6785_v16 = vpop.eup %6784  ;;  %v2179_v18 = vmul.f32 1.442695, %v2176_v8  ;;  %v2227_v19 = vsel %vm2134_vm8, %v6783_v10, 0.0 }
 0x30d   : > { %6788 = vpow2.f32 %v2225_v13  ;;  %2228 = vadd.xlane.f32.xlu1 %v2227_v19  ;;  %v2181_v45 = vsel %vm2134_vm8, %v6785_v16, 0.0  ;;  %v7731_v25 = vpop.eup %6786 }
 0x30e   : > { %6790 = vpow2.f32 %v2179_v18  ;;  %2182 = vadd.xlane.f32.xlu2 %v2181_v45  ;;  %v2135_v29 = vsel %vm2134_vm8, %v7731_v25, 0.0 }
 0x30f   : > { %6792 = vpow2.f32 %v2269_v20 }
 0x310   : > { %6794 = vpow2.f32 %v2271_v24 }
 0x311   : > { %6796 = vpow2.f32 %v2132_v32 }
 0x313   : > { %v6789_v26 = vpop.eup %6788 }
 0x314   : > { %v6791_v27 = vpop.eup %6790  ;;  %v2230_v31 = vsel %vm2134_vm8, %v6789_v26, 0.0 }
 0x315   : > { %2136 = vadd.xlane.f32.xlu1 %v2135_v29  ;;  %v2184_v30 = vsel %vm2134_vm8, %v6791_v27, 0.0  ;;  %v6793_v33 = vpop.eup %6792 }
 0x316   : > { %2185 = vadd.xlane.f32.xlu0 %v2184_v30  ;;  %2231 = vadd.xlane.f32.xlu2 %v2230_v31  ;;  %v6795_v34 = vpop.eup %6794  ;;  %v2273_v35 = vsel %vm2134_vm8, %v6793_v33, 0.0 }
 0x317   : > { %v2276_v36 = vsel %vm2134_vm8, %v6795_v34, 0.0  ;;  %v7739_v37 = vpop.eup %6796 }
 0x318   : > { %v2138_v38 = vsel %vm2134_vm8, %v7739_v37, 0.0 }
 0x31e   : > { %2274 = vadd.xlane.f32.xlu0 %v2273_v35  ;;  %2277 = vadd.xlane.f32.xlu2 %v2276_v36 }
 0x326   : > { %2139 = vadd.xlane.f32.xlu0 %v2138_v38 }
 0x380   : > { %v2229_v39 = vpop.xlane.xlu1 %2228 }
 0x381   : > { %v2183_v41 = vpop.xlane.xlu2 %2182  ;;  %v2233_v47 = vadd.f32 1e-30, %v2229_v39 }
 0x382   : > { %v2187_v42 = vadd.f32 1e-30, %v2183_v41 }
 0x384   : > { %6798 = vrcp.f32 %v2187_v42 }
 0x385   : > { %6800 = vrcp.f32 %v2233_v47 }
 0x389   : > { %v2186_v48 = vpop.xlane.xlu0 %2185  ;;  %v2232_v50 = vpop.xlane.xlu2 %2231 }
 0x38a   : > { %v2188_v51 = vadd.f32 1e-30, %v2186_v48  ;;  %v2234_v52 = vadd.f32 1e-30, %v2232_v50  ;;  %v6799_v53 = vpop.eup %6798 }
 0x38b   : > { %v6801_v62 = vpop.eup %6800  ;;  %v2191_v49 = vmul.f32 %v6799_v53, %v6785_v16  ;;  %v6926_v53 = vld [vmem:[%s7338_s19] sm:$0xff] }
 0x38c   : > { %6802 = vrcp.f32 %v2188_v51  ;;  %v2237_v14 = vmul.f32 %v6801_v62, %v6783_v10 }
 0x38d   : > { %6804 = vrcp.f32 %v2234_v52  ;;  %v2193_v61 = vpack.c.bf16 %v2191_v49, %v2191_v49 }
 0x38e   : > { %v2239_v2 = vpack.c.bf16 %v2237_v14, %v2237_v14 }
 0x38f   : > { %v2294_v5 = vunpack.c.l.b16 %v2193_v61 }
 0x390   : > { %v2301_v8 = vunpack.c.l.b16 %v2239_v2 }
 0x391   : > { %v2275_v1 = vpop.xlane.xlu0 %2274  ;;  %v2278_v54 = vpop.xlane.xlu2 %2277 }
 0x392   : > { %v6803_v56 = vpop.eup %6802  ;;  %v2279_v59 = vadd.f32 1e-30, %v2275_v1  ;;  %v2280_v9 = vadd.f32 1e-30, %v2278_v54  ;;  %v6927_v1 = vld [vmem:[%s7338_s19 + $0x8] sm:$0xff]  ;;  %s7886_s19 = scalar_lea.vmem %s8556_s12, %s7800_s3  ;;  %s983_s3 = scalar_lea.vmem %s8611_s23, %s7744_s25 }
 0x393   : > { %v6805_v57 = vpop.eup %6804  ;;  %v2192_v60 = vmul.f32 %v6803_v56, %v6791_v27  ;;  %v2137_v27 = vpop.xlane.xlu1 %2136 }
 0x394   : > { %6806 = vrcp.f32 %v2279_v59  ;;  %v2238_v63 = vmul.f32 %v6805_v57, %v6789_v26  ;;  %v2141_v29 = vadd.f32 1e-30, %v2137_v27 }
 0x395   : > { %6808 = vrcp.f32 %v2280_v9  ;;  %v2194_v4 = vpack.c.bf16 %v2192_v60, %v2192_v60 }
 0x396   : > { %v2240_v3 = vpack.c.bf16 %v2238_v63, %v2238_v63 }
 0x397   : > { %v2295_v58 = vunpack.c.l.b16 %v2194_v4 }
 0x398   : > { %v2302_v11 = vunpack.c.l.b16 %v2240_v3 }
 0x399   : > { %v2296_v10 = vpack.c.b16 %v2295_v58, %v2294_v5  ;;  %v2140_v26 = vpop.xlane.xlu0 %2139  ;;  %v6536_v5 = vld [vmem:[%s7806_s18 + $0x10] sm:$0xff]  ;;  %v6535_v58 = vld [vmem:[%s7806_s18 + $0x8] sm:$0xff] }
 0x39a   : > { %v6807_v13 = vpop.eup %6806  ;;  %v2303_v16 = vpack.c.b16 %v2302_v11, %v2301_v8  ;;  %v2142_v28 = vadd.f32 1e-30, %v2140_v26  ;;  %v6534_v8 = vld [vmem:[%s7806_s18] sm:$0xff] }
 0x39b   : > { %v6809_v17 = vpop.eup %6808  ;;  %2297 = vrot.lane.b32.xlu2 %v2296_v10, %s7087_s17  ;;  %v2283_v18 = vmul.f32 %v6807_v13, %v6793_v33 }
 0x39c   : > { %2304 = vrot.lane.b32.xlu1 %v2303_v16, %s7086_s1  ;;  %v2284_v19 = vmul.f32 %v6809_v17, %v6795_v34  ;;  %6810 = vrcp.f32 %v2142_v28 }
 0x39d   : > { %v2285_v0 = vpack.c.bf16 %v2283_v18, %v2283_v18  ;;  %6812 = vrcp.f32 %v2141_v29 }
 0x39e   : > { %v2286_v45 = vpack.c.bf16 %v2284_v19, %v2284_v19 }
 0x39f   : > { %v2308_v20 = vunpack.c.l.b16 %v2285_v0 }
 0x3a0   : > { %v2309_v23 = vunpack.c.l.b16 %v2286_v45 }
 0x3a2   : > { %v2310_v24 = vpack.c.b16 %v2309_v23, %v2308_v20  ;;  %v6811_v30 = vpop.eup %6810 }
 0x3a3   : > { %v6813_v31 = vpop.eup %6812  ;;  %v2146_v32 = vmul.f32 %v6811_v30, %v7739_v37 }
 0x3a4   : > { %2311 = vrot.lane.b32.xlu0 %v2310_v24, %s7088_s24  ;;  %v2145_v33 = vmul.f32 %v6813_v31, %v7731_v25  ;;  %v6769_v25 = vld [vmem:[%s7750_s13] ss:$0 sm:$0xff] }
 0x3a5   : > { %v2148_v34 = vpack.c.bf16 %v2146_v32, %v2146_v32 }
 0x3a6   : > { %v2147_v35 = vpack.c.bf16 %v2145_v33, %v2145_v33 }
 0x3a7   : > { %v2290_v36 = vunpack.c.l.b16 %v2148_v34 }
 0x3a8   : > { %v2289_v38 = vunpack.c.l.b16 %v2147_v35 }
 0x3aa   : > { %v2291_v41 = vpack.c.b16 %v2290_v36, %v2289_v38 }
 0x3f5   : > { %v2298_v39 = vpop.permute.xlu2 %2297 }
 0x3f6   : > { %v2315_v47 = vsel %vm2134_vm8, %v2291_v41, %v2298_v39 }
 0x40e   : > { %v2305_v42 = vpop.permute.xlu1 %2304 }
 0x40f   : > { %v2317_v48 = vsel %vm2105_vm7, %v2315_v47, %v2305_v42 }
 0x416   : > { %v2312_v50 = vpop.permute.xlu0 %2311 }
 0x417   : > { %v2320_v37 = vsel %vm2318_vm9, %v2317_v48, %v2312_v50  ;;  %v6770_v48 = vld [vmem:[%s7789_s26] ss:$0 sm:$0xff] }
 0x418   : > { %5673 = vmatmul.msk.bf16.vlgmr.msrb.gmra.mxu0 %vm2344_vm10, %v2320_v37 }
 0x495   : > { %v2356_v51 = vpop.f32.mrf.mxu0 }
 0x496   : > { %v2357_v52 = vadd.f32 %v6769_v25, %v2356_v51 }
 0x498   : > { %v7763_v62 = vadd.f32 %v6926_v53, %v2357_v52 }
 0x49a   : > { %2363 = vadd.xlane.f32.xlu2 %v7763_v62 }
 0x49d   : > { %v2358_v49 = vpop.f32.mrf.mxu0 }
 0x49e   : > { %v2359_v14 = vadd.f32 %v6769_v25, %v2358_v49 }
 0x4a0   : > { %v7767_v54 = vadd.f32 %v6927_v1, %v2359_v14 }
 0x4a2   : > { %2365 = vadd.xlane.f32.xlu0 %v7767_v54 }
 0x4b6   : > { %2543 = vrot.lane.b32.xlu0 %v7665_v12, %s7084_s6 }
 0x50d   : > { %v2364_v56 = vpop.xlane.xlu2 %2363 }
 0x50e   : > { %v2367_v59 = vmul.f32 %v2364_v56, %v7388_v55 }
 0x510   : > { %v7774_v9 = vsub.f32 %v7763_v62, %v2367_v59 }
 0x512   : > { %v2371_v57 = vmul.f32 %v7774_v9, %v7774_v9 }
 0x514   : > { %2373 = vadd.xlane.f32.xlu1 %v2371_v57 }
 0x515   : > { %v2366_v60 = vpop.xlane.xlu0 %2365 }
 0x516   : > { %v2368_v61 = vmul.f32 %v2366_v60, %v7388_v55 }
 0x518   : > { %v7780_v63 = vsub.f32 %v7767_v54, %v2368_v61 }
 0x51a   : > { %v2372_v2 = vmul.f32 %v7780_v63, %v7780_v63 }
 0x51c   : > { %2375 = vadd.xlane.f32.xlu2 %v2372_v2  ;;  %v997_v2 = vld [vmem:[%s8610_s16] sm:$0xff] }
 0x528   : > { %v2544_v4 = vpop.permute.xlu0 %2543 }
 0x529   : > { %v2549_v3 = vsel %vm2105_vm7, %v2544_v4, 0 }
 0x52a   : > { %2558 = vmatpush.bf16.xpose.msrb.mxu3 %v2549_v3 }
 0x52d   : > { %2635 = vrot.lane.b32.xlu1 %v7665_v12, %s7086_s1 }
 0x532   : > { %2741 = vmatpush.bf16.msra.mxu3 %v7671_v44  ;;  %v6541_v44 = vld [vmem:[%s7806_s18 + $0x38] sm:$0xff] }
 0x533   : > { %2472 = vmatpush.bf16.msrb.mxu1 %v6541_v44 }
 0x534   : > { %2589 = vrot.lane.b32.xlu2 %v7665_v12, %s7085_s28  ;;  %v6540_v12 = vld [vmem:[%s7806_s18 + $0x30] sm:$0xff] }
 0x536   : > { %2742 = vmatpush.bf16.msra.mxu3 %v7678_v6  ;;  %v6539_v6 = vld [vmem:[%s7806_s18 + $0x28] sm:$0xff] }
 0x537   : > { %2473 = vmatpush.bf16.msrb.mxu1 %v6540_v12 }
 0x53a   : > { %2743 = vmatpush.bf16.msra.mxu3 %v7680_v7  ;;  %v6538_v7 = vld [vmem:[%s7806_s18 + $0x20] sm:$0xff] }
 0x53b   : > { %2474 = vmatpush.bf16.msrb.mxu1 %v6539_v6 }
 0x53e   : > { %2744 = vmatpush.bf16.msra.mxu3 %v7717_v40  ;;  %v6537_v40 = vld [vmem:[%s7806_s18 + $0x18] sm:$0xff] }
 0x53f   : > { %2475 = vmatpush.bf16.msrb.mxu1 %v6538_v7 }
 0x543   : > { %2476 = vmatpush.bf16.msrb.mxu1 %v6537_v40 }
 0x547   : > { %2477 = vmatpush.bf16.msrb.mxu1 %v6536_v5 }
 0x54b   : > { %2478 = vmatpush.bf16.msrb.mxu1 %v6535_v58 }
 0x54f   : > { %2479 = vmatpush.bf16.msrb.mxu1 %v6534_v8 }
 0x587   : > { %v2374_v11 = vpop.xlane.xlu1 %2373 }
 0x588   : > { %v2377_v10 = vmul.f32 %v2374_v11, %v7388_v55 }
 0x58a   : > { %v2379_v13 = vadd.f32 1e-12, %v2377_v10  ;;  %v998_v10 = vld [vmem:[%s8610_s16 + $0x8] sm:$0xff] }
 0x58c   : > { %6814 = vrsqrt.f32 %v2379_v13  ;;  %vm2387_vm12 = vweird.f32 %v2379_v13 }
 0x58f   : > { %v2376_v16 = vpop.xlane.xlu2 %2375 }
 0x590   : > { %v2378_v17 = vmul.f32 %v2376_v16, %v7388_v55 }
 0x592   : > { %v6815_v18 = vpop.eup %6814  ;;  %v2380_v19 = vadd.f32 1e-12, %v2378_v17 }
 0x593   : > { %v2382_v0 = vmul.f32 %v6815_v18, %v2379_v13  ;;  %vm2388_vm11 = vweird.f32 %v6815_v18 }
 0x594   : > { %6816 = vrsqrt.f32 %v2380_v19  ;;  %vm2389_vm14 = vmor %vm2387_vm12, %vm2388_vm11  ;;  %vm2397_vm15 = vweird.f32 %v2380_v19 }
 0x595   : > { %v2383_v45 = vmul.f32 %v6815_v18, %v2382_v0 }
 0x597   : > { %v2384_v20 = vmul.f32 0.5, %v2383_v45  ;;  %v2590_v23 = vpop.permute.xlu2 %2589 }
 0x598   : > { %v2595_v24 = vsel %vm2105_vm7, %v2590_v23, 0 }
 0x599   : > { %2604 = vmatpush.bf16.xpose.msra.mxu0 %v2595_v24  ;;  %v2385_v27 = vsub.f32 1.5, %v2384_v20 }
 0x59a   : > { %v6817_v26 = vpop.eup %6816 }
 0x59b   : > { %v2392_v28 = vmul.f32 %v6817_v26, %v2380_v19  ;;  %v2386_v30 = vmul.f32 %v6815_v18, %v2385_v27  ;;  %vm2398_vm13 = vweird.f32 %v6817_v26 }
 0x59c   : > { %vm2399_vm0 = vmor %vm2397_vm15, %vm2398_vm13 }
 0x59d   : > { %v2393_v29 = vmul.f32 %v6817_v26, %v2392_v28  ;;  %v2390_v35 = vsel %vm2389_vm14, %v6815_v18, %v2386_v30 }
 0x59e   : > { %v2401_v39 = vmul.f32 %v2390_v35, %v7774_v9 }
 0x59f   : > { %v2394_v31 = vmul.f32 0.5, %v2393_v29  ;;  %v2636_v32 = vpop.permute.xlu1 %2635 }
 0x5a0   : > { %v2641_v33 = vsel %vm2105_vm7, %v2636_v32, 0 }
 0x5a1   : > { %v2395_v34 = vsub.f32 1.5, %v2394_v31  ;;  %2650 = vmatpush.bf16.xpose.msra.mxu2 %v2641_v33 }
 0x5a3   : > { %v2396_v36 = vmul.f32 %v6817_v26, %v2395_v34 }
 0x5a5   : > { %v2400_v38 = vsel %vm2399_vm0, %v6817_v26, %v2396_v36 }
 0x5a6   : > { %v2402_v41 = vmul.f32 %v2400_v38, %v7780_v63 }
 0x5a8   : > { %v2403_v42 = vpack.c.bf16 %v2402_v41, %v2401_v39 }
 0x5aa   : > { %2480 = vmatmul.bf16.vlgmr.msrb.gmra.mxu1 %v2403_v42 }
 0x627   : > { %v2481_v47 = vpop.f32.mrf.mxu1 }
 0x628   : > { %v2482_v50 = vadd.f32 %v6770_v48, %v2481_v47 }
 0x62a   : > { %v2486_v25 = vpack.c.bf16 %v2482_v50, %v2482_v50 }
 0x62c   : > { %v2491_v53 = vunpack.c.l.b16 %v2486_v25 }
 0x62f   : > { %v2483_v37 = vpop.f32.mrf.mxu1 }
 0x630   : > { %v2484_v51 = vadd.f32 %v6770_v48, %v2483_v37 }
 0x632   : > { %v2487_v52 = vpack.c.bf16 %v2484_v51, %v2484_v51 }
 0x634   : > { %v2492_v49 = vunpack.c.l.b16 %v2487_v52 }
 0x636   : > { %v2493_v14 = vpack.c.b16 %v2492_v49, %v2491_v53 }
 0x638   : > { %2633 = vrot.lane.b32.xlu1 %v2493_v14, %s7086_s1  ;;  %2541 = vrot.lane.b32.xlu0 %v2493_v14, %s7084_s6 }
 0x639   : > { %5706 = vmatmul.msk.bf16.vlgmr.msrb.gmra.mxu2 %vm2105_vm7, %v2493_v14 }
 0x640   : > { %2587 = vrot.lane.b32.xlu0 %v2493_v14, %s7085_s28 }
 0x6aa   : > { %v2634_v1 = vpop.permute.xlu1 %2633  ;;  %v2542_v56 = vpop.permute.xlu0 %2541 }
 0x6ab   : > { %5707 = vmatmul.msk.bf16.vlgmr.msrb.gmra.mxu3 %vm2105_vm7, %v2542_v56  ;;  %5709 = vmatmul.msk.bf16.vlgmr.msra.gmra.mxu2 %vm2105_vm7, %v2634_v1 }
 0x6b2   : > { %v2588_v59 = vpop.permute.xlu0 %2587 }
 0x6b3   : > { %5708 = vmatmul.msk.bf16.vlgmr.msra.gmra.mxu0 %vm2105_vm7, %v2588_v59 }
 0x6bc   : > { %v2514_v9 = vpop.f32.mrf.mxu2 }
 0x6bd   : > { %v2519_v16 = vmul.f32 0.17677669, %v2514_v9 }
 0x6bf   : > { %v2521_v28 = vadd.f32 %v2519_v16, %v997_v2 }
 0x6c1   : > { %v2523_v33 = vmul.f32 1.442695, %v2521_v28 }
 0x6c4   : > { %v2516_v57 = vpop.f32.mrf.mxu2 }
 0x6c5   : > { %v2520_v31 = vmul.f32 0.17677669, %v2516_v57 }
 0x6c7   : > { %v2522_v35 = vadd.f32 %v2520_v31, %v998_v10 }
 0x6c9   : > { %v2525_v47 = vmul.f32 1.442695, %v2522_v35 }
 0x72e   : > { %v2560_v60 = vpop.f32.mrf.mxu3  ;;  %v2652_v61 = vpop.f32.mrf.mxu2 }
 0x72f   : > { %v2565_v63 = vmul.f32 0.17677669, %v2560_v60  ;;  %v2657_v58 = vmul.f32 0.17677669, %v2652_v61 }
 0x730   : > { %v2606_v4 = vpop.f32.mrf.mxu0 }
 0x731   : > { %v2567_v3 = vadd.f32 %v2565_v63, %v997_v2  ;;  %v2611_v44 = vmul.f32 0.17677669, %v2606_v4  ;;  %v2659_v45 = vadd.f32 %v2657_v58, %v997_v2 }
 0x733   : > { %v2569_v12 = vmul.f32 1.442695, %v2567_v3  ;;  %v2613_v6 = vadd.f32 %v2611_v44, %v997_v2  ;;  %v2661_v32 = vmul.f32 1.442695, %v2659_v45 }
 0x735   : > { %6818 = vpow2.f32 %v2569_v12  ;;  %v2615_v7 = vmul.f32 1.442695, %v2613_v6 }
 0x736   : > { %v2562_v40 = vpop.f32.mrf.mxu3  ;;  %v2654_v5 = vpop.f32.mrf.mxu2 }
 0x737   : > { %6820 = vpow2.f32 %v2615_v7  ;;  %v2566_v8 = vmul.f32 0.17677669, %v2562_v40  ;;  %v2658_v11 = vmul.f32 0.17677669, %v2654_v5 }
 0x738   : > { %v2608_v13 = vpop.f32.mrf.mxu0 }
 0x739   : > { %v2568_v17 = vadd.f32 %v2566_v8, %v998_v10  ;;  %v2660_v18 = vadd.f32 %v2658_v11, %v998_v10  ;;  %v2612_v19 = vmul.f32 0.17677669, %v2608_v13 }
 0x73b   : > { %v6819_v0 = vpop.eup %6818  ;;  %v2571_v20 = vmul.f32 1.442695, %v2568_v17  ;;  %v2663_v23 = vmul.f32 1.442695, %v2660_v18  ;;  %v2614_v24 = vadd.f32 %v2612_v19, %v998_v10 }
 0x73c   : > { %v2573_v26 = vsel %vm2134_vm8, %v6819_v0, 0.0 }
 0x73d   : > { %v6821_v27 = vpop.eup %6820  ;;  %6822 = vpow2.f32 %v2571_v20  ;;  %v2617_v29 = vmul.f32 1.442695, %v2614_v24  ;;  %2574 = vadd.xlane.f32.xlu2 %v2573_v26 }
 0x73e   : > { %6824 = vpow2.f32 %v2663_v23  ;;  %v2619_v30 = vsel %vm2134_vm8, %v6821_v27, 0.0 }
 0x73f   : > { %6826 = vpow2.f32 %v2617_v29  ;;  %2620 = vadd.xlane.f32.xlu0 %v2619_v30 }
 0x740   : > { %6828 = vpow2.f32 %v2661_v32 }
 0x741   : > { %6830 = vpow2.f32 %v2523_v33 }
 0x742   : > { %6832 = vpow2.f32 %v2525_v47 }
 0x743   : > { %v6823_v34 = vpop.eup %6822 }
 0x744   : > { %v6825_v36 = vpop.eup %6824  ;;  %v2576_v38 = vsel %vm2134_vm8, %v6823_v34, 0.0 }
 0x745   : > { %v6827_v39 = vpop.eup %6826  ;;  %2577 = vadd.xlane.f32.xlu1 %v2576_v38  ;;  %v2668_v41 = vsel %vm2134_vm8, %v6825_v36, 0.0 }
 0x746   : > { %v2622_v42 = vsel %vm2134_vm8, %v6827_v39, 0.0  ;;  %v6829_v48 = vpop.eup %6828 }
 0x747   : > { %2669 = vadd.xlane.f32.xlu0 %v2668_v41  ;;  %2623 = vadd.xlane.f32.xlu2 %v2622_v42  ;;  %v7841_v50 = vpop.eup %6830  ;;  %v2665_v37 = vsel %vm2134_vm8, %v6829_v48, 0.0 }
 0x748   : > { %v2527_v25 = vsel %vm2134_vm8, %v7841_v50, 0.0  ;;  %v6833_v51 = vpop.eup %6832 }
 0x749   : > { %v2530_v52 = vsel %vm2134_vm8, %v6833_v51, 0.0 }
 0x74d   : > { %2666 = vadd.xlane.f32.xlu1 %v2665_v37 }
 0x74f   : > { %2528 = vadd.xlane.f32.xlu2 %v2527_v25 }
 0x755   : > { %2531 = vadd.xlane.f32.xlu1 %v2530_v52 }
 0x7b0   : > { %v2575_v53 = vpop.xlane.xlu2 %2574 }
 0x7b1   : > { %v2579_v49 = vadd.f32 1e-30, %v2575_v53 }
 0x7b2   : > { %v2621_v14 = vpop.xlane.xlu0 %2620 }
 0x7b3   : > { %v2625_v1 = vadd.f32 1e-30, %v2621_v14  ;;  %6834 = vrcp.f32 %v2579_v49 }
 0x7b5   : > { %6836 = vrcp.f32 %v2625_v1 }
 0x7b8   : > { %v2578_v56 = vpop.xlane.xlu1 %2577 }
 0x7b9   : > { %v2580_v59 = vadd.f32 1e-30, %v2578_v56  ;;  %v6835_v60 = vpop.eup %6834  ;;  %v6771_v56 = vld [vmem:[%s7851_s0] ss:$0 sm:$0xff] }
 0x7ba   : > { %v2670_v9 = vpop.xlane.xlu0 %2669  ;;  %v2624_v57 = vpop.xlane.xlu2 %2623  ;;  %v2583_v4 = vmul.f32 %v6835_v60, %v6819_v0 }
 0x7bb   : > { %6838 = vrcp.f32 %v2580_v59  ;;  %v2672_v61 = vadd.f32 1e-30, %v2670_v9  ;;  %v2626_v63 = vadd.f32 1e-30, %v2624_v57  ;;  %v6837_v2 = vpop.eup %6836 }
 0x7bc   : > { %v2629_v6 = vmul.f32 %v6837_v2, %v6821_v27  ;;  %v2585_v40 = vpack.c.bf16 %v2583_v4, %v2583_v4 }
 0x7bd   : > { %6840 = vrcp.f32 %v2672_v61 }
 0x7be   : > { %6842 = vrcp.f32 %v2626_v63  ;;  %v2631_v10 = vpack.c.bf16 %v2629_v6, %v2629_v6  ;;  %v2686_v13 = vunpack.c.l.b16 %v2585_v40  ;;  %v6557_v6 = vld [vmem:[%s7886_s19 + $0x74] sm:$0xf0] }
 0x7c0   : > { %v2667_v3 = vpop.xlane.xlu1 %2666  ;;  %v2693_v45 = vunpack.c.l.b16 %v2631_v10  ;;  %v6554_v10 = vld [vmem:[%s7886_s19 + $0x64] sm:$0xf] }
 0x7c1   : > { %v6839_v44 = vpop.eup %6838  ;;  %v2671_v12 = vadd.f32 1e-30, %v2667_v3 }
 0x7c2   : > { %v2584_v7 = vmul.f32 %v6839_v44, %v6823_v34  ;;  %v2529_v32 = vpop.xlane.xlu2 %2528 }
 0x7c3   : > { %v6841_v5 = vpop.eup %6840  ;;  %6844 = vrcp.f32 %v2671_v12  ;;  %v2533_v34 = vadd.f32 1e-30, %v2529_v32  ;;  %v5769_v12 = vld [vmem:[%s7886_s19 + $0x70] sm:$0xf]  ;;  %v6549_v32 = vld [vmem:[%s7886_s19 + $0x34] sm:$0xf0] }
 0x7c4   : > { %v6843_v58 = vpop.eup %6842  ;;  %v2586_v8 = vpack.c.bf16 %v2584_v7, %v2584_v7  ;;  %v2676_v17 = vmul.f32 %v6841_v5, %v6825_v36  ;;  %v6556_v7 = vld [vmem:[%s7886_s19 + $0x74] sm:$0xf]  ;;  %v5770_v40 = vor.u32 %v6557_v6, %v5769_v12  ;;  %v5771_v5 = vld [vmem:[%s7886_s19 + $0x78] sm:$0xf0] }
 0x7c5   : > { %v2630_v11 = vmul.f32 %v6843_v58, %v6827_v39  ;;  %v5774_v58 = vor.u32 %v6556_v7, %v5771_v5  ;;  %v6572_v12 = vld [vmem:[%s7924_s21 + $0x70] sm:$0xff]  ;;  %v6571_v5 = vld [vmem:[%s7924_s21 + $0x68] sm:$0xff] }
 0x7c6   : > { %v2687_v16 = vunpack.c.l.b16 %v2586_v8  ;;  %v2678_v24 = vpack.c.bf16 %v2676_v17, %v2676_v17  ;;  %2896 = vmatpush.bf16.msrb.mxu0 %v5770_v40  ;;  %v5761_v8 = vld [vmem:[%s7886_s19 + $0x60] sm:$0xf]  ;;  %v6563_v40 = vld [vmem:[%s7924_s21 + $0x28] sm:$0xff] }
 0x7c7   : > { %v2632_v18 = vpack.c.bf16 %v2630_v11, %v2630_v11  ;;  %2910 = vmatpush.bf16.msra.mxu1 %v5774_v58  ;;  %v6555_v11 = vld [vmem:[%s7886_s19 + $0x64] sm:$0xf0] }
 0x7c8   : > { %v2688_v19 = vpack.c.b16 %v2687_v16, %v2686_v13  ;;  %v2701_v29 = vunpack.c.l.b16 %v2678_v24  ;;  %v2532_v31 = vpop.xlane.xlu1 %2531  ;;  %v5762_v13 = vor.u32 %v6555_v11, %v5761_v8  ;;  %v5763_v16 = vld [vmem:[%s7886_s19 + $0x68] sm:$0xf0]  ;;  %v5745_v24 = vld [vmem:[%s7886_s19 + $0x40] sm:$0xf] }
 0x7c9   : > { %v6845_v0 = vpop.eup %6844  ;;  %v2694_v20 = vunpack.c.l.b16 %v2632_v18  ;;  %v2534_v33 = vadd.f32 1e-30, %v2532_v31  ;;  %v5766_v17 = vor.u32 %v6554_v10, %v5763_v16  ;;  %v5753_v18 = vld [vmem:[%s7886_s19 + $0x50] sm:$0xf]  ;;  %v6562_v10 = vld [vmem:[%s7924_s21 + $0x20] sm:$0xff] }
 0x7ca   : > { %2689 = vrot.lane.b32.xlu0 %v2688_v19, %s7087_s17  ;;  %v2675_v23 = vmul.f32 %v6845_v0, %v6829_v48  ;;  %2897 = vmatpush.bf16.msrb.mxu0 %v5762_v13  ;;  %v6553_v19 = vld [vmem:[%s7886_s19 + $0x54] sm:$0xf0]  ;;  %v6552_v0 = vld [vmem:[%s7886_s19 + $0x54] sm:$0xf]  ;;  %v5737_v31 = vld [vmem:[%s7886_s19 + $0x30] sm:$0xf] }
 0x7cb   : > { %v2695_v26 = vpack.c.b16 %v2694_v20, %v2693_v45  ;;  %6846 = vrcp.f32 %v2534_v33  ;;  %2911 = vmatpush.bf16.msra.mxu1 %v5766_v17  ;;  %v5754_v45 = vor.u32 %v6553_v19, %v5753_v18  ;;  %v5755_v20 = vld [vmem:[%s7886_s19 + $0x58] sm:$0xf0]  ;;  %v6548_v33 = vld [vmem:[%s7886_s19 + $0x34] sm:$0xf]  ;;  %v6570_v13 = vld [vmem:[%s7924_s21 + $0x60] sm:$0xff] }
 0x7cc   : > { %v2677_v27 = vpack.c.bf16 %v2675_v23, %v2675_v23  ;;  %6848 = vrcp.f32 %v2533_v34  ;;  %v5758_v23 = vor.u32 %v6552_v0, %v5755_v20  ;;  %v5738_v34 = vor.u32 %v6549_v32, %v5737_v31  ;;  %v6561_v32 = vld [vmem:[%s7924_s21 + $0x18] sm:$0xff] }
 0x7cd   : > { %2696 = vrot.lane.b32.xlu2 %v2695_v26, %s7086_s1  ;;  %v6551_v26 = vld [vmem:[%s7886_s19 + $0x44] sm:$0xf0] }
 0x7ce   : > { %v2700_v28 = vunpack.c.l.b16 %v2677_v27  ;;  %2898 = vmatpush.bf16.msrb.mxu0 %v5754_v45  ;;  %v6550_v27 = vld [vmem:[%s7886_s19 + $0x44] sm:$0xf] }
 0x7cf   : > { %2912 = vmatpush.bf16.msra.mxu1 %v5758_v23 }
 0x7d0   : > { %v2702_v30 = vpack.c.b16 %v2701_v29, %v2700_v28  ;;  %v5746_v28 = vor.u32 %v6551_v26, %v5745_v24  ;;  %v5747_v29 = vld [vmem:[%s7886_s19 + $0x48] sm:$0xf0] }
 0x7d1   : > { %v6847_v35 = vpop.eup %6846 }
 0x7d2   : > { %2703 = vrot.lane.b32.xlu1 %v2702_v30, %s7088_s24  ;;  %v6849_v36 = vpop.eup %6848  ;;  %v2538_v38 = vmul.f32 %v6847_v35, %v6833_v51  ;;  %v5750_v30 = vor.u32 %v6550_v27, %v5747_v29  ;;  %2899 = vmatpush.bf16.msrb.mxu0 %v5746_v28  ;;  %v5739_v35 = vld [vmem:[%s7886_s19 + $0x38] sm:$0xf0] }
 0x7d3   : > { %v2537_v39 = vmul.f32 %v6849_v36, %v7841_v50  ;;  %v5742_v36 = vor.u32 %v6548_v33, %v5739_v35  ;;  %v6569_v33 = vld [vmem:[%s7924_s21 + $0x58] sm:$0xff]  ;;  %v6568_v35 = vld [vmem:[%s7924_s21 + $0x50] sm:$0xff] }
 0x7d4   : > { %v2540_v41 = vpack.c.bf16 %v2538_v38, %v2538_v38  ;;  %2913 = vmatpush.bf16.msra.mxu1 %v5750_v30  ;;  %v5729_v38 = vld [vmem:[%s7886_s19 + $0x20] sm:$0xf] }
 0x7d5   : > { %v2539_v42 = vpack.c.bf16 %v2537_v39, %v2537_v39  ;;  %v6547_v39 = vld [vmem:[%s7886_s19 + $0x24] sm:$0xf0] }
 0x7d6   : > { %v2682_v47 = vunpack.c.l.b16 %v2540_v41  ;;  %2900 = vmatpush.bf16.msrb.mxu0 %v5738_v34  ;;  %v6546_v41 = vld [vmem:[%s7886_s19 + $0x24] sm:$0xf]  ;;  %v6560_v34 = vld [vmem:[%s7924_s21 + $0x10] sm:$0xff] }
 0x7d7   : > { %v2681_v48 = vunpack.c.l.b16 %v2539_v42  ;;  %v5730_v42 = vor.u32 %v6547_v39, %v5729_v38  ;;  %v6566_v38 = vld [vmem:[%s7924_s21 + $0x40] sm:$0xff] }
 0x7d8   : > { %2914 = vmatpush.bf16.msra.mxu1 %v5742_v36  ;;  %v6558_v36 = vld [vmem:[%s7924_s21] sm:$0xff] }
 0x7d9   : > { %v2683_v25 = vpack.c.b16 %v2682_v47, %v2681_v48  ;;  %v5731_v47 = vld [vmem:[%s7886_s19 + $0x28] sm:$0xf0]  ;;  %v2810_v39 = vld [vmem:[%s983_s3] sm:$0x3] }
 0x7da   : > { %v5734_v48 = vor.u32 %v6546_v41, %v5731_v47  ;;  %2901 = vmatpush.bf16.msrb.mxu0 %v5730_v42  ;;  %v2812_v47 = vperm.slane %v2810_v39, 0 }
 0x7dc   : > { %2915 = vmatpush.bf16.msra.mxu1 %v5734_v48  ;;  %v2813_v48 = vperm.slane %v2810_v39, 1  ;;  %v5988_v39 = vld [vmem:[%s7311_s4 + $0x258] sm:$0xf0] }
 0x827   : > { %v2697_v53 = vpop.permute.xlu2 %2696 }
 0x83c   : > { %v2690_v37 = vpop.permute.xlu0 %2689 }
 0x83d   : > { %v2707_v52 = vsel %vm2134_vm8, %v2683_v25, %v2690_v37  ;;  %v5721_v37 = vld [vmem:[%s7886_s19 + $0x10] sm:$0xf]  ;;  %v6545_v25 = vld [vmem:[%s7886_s19 + $0x14] sm:$0xf0] }
 0x83e   : > { %v2709_v14 = vsel %vm2105_vm7, %v2707_v52, %v2697_v53  ;;  %v6544_v52 = vld [vmem:[%s7886_s19 + $0x14] sm:$0xf]  ;;  %v5722_v53 = vor.u32 %v6545_v25, %v5721_v37 }
 0x840   : > { %2902 = vmatpush.bf16.msrb.mxu0 %v5722_v53 }
 0x844   : > { %v2704_v49 = vpop.permute.xlu1 %2703 }
 0x845   : > { %v2711_v1 = vsel %vm2318_vm9, %v2709_v14, %v2704_v49  ;;  %v5723_v49 = vld [vmem:[%s7886_s19 + $0x18] sm:$0xf0] }
 0x846   : > { %5710 = vmatmul.msk.bf16.vlgmr.msra.gmra.mxu3 %vm2344_vm10, %v2711_v1  ;;  %v5726_v14 = vor.u32 %v6544_v52, %v5723_v49  ;;  %v5713_v1 = vld [vmem:[%s7886_s19] sm:$0xf] }
 0x848   : > { %2916 = vmatpush.bf16.msra.mxu1 %v5726_v14 }
 0x8c9   : > { %v2746_v51 = vpop.f32.mrf.mxu3 }
 0x8ca   : > { %v2747_v59 = vadd.f32 %v6771_v56, %v2746_v51  ;;  %v6542_v51 = vld [vmem:[%s7886_s19 + $0x4] sm:$0xf] }
 0x8cc   : > { %v7863_v50 = vadd.f32 %v2747_v59, %v7763_v62 }
 0x8ce   : > { %2753 = vadd.xlane.f32.xlu0 %v7863_v50 }
 0x8d1   : > { %v2748_v9 = vpop.f32.mrf.mxu3 }
 0x8d2   : > { %v2749_v57 = vadd.f32 %v6771_v56, %v2748_v9  ;;  %v6543_v56 = vld [vmem:[%s7886_s19 + $0x4] sm:$0xf0]  ;;  %v5715_v9 = vld [vmem:[%s7886_s19 + $0x8] sm:$0xf0] }
 0x8d3   : > { %v5714_v59 = vor.u32 %v6543_v56, %v5713_v1 }
 0x8d4   : > { %v7867_v60 = vadd.f32 %v2749_v57, %v7767_v54 }
 0x8d5   : > { %2903 = vmatpush.bf16.msrb.mxu0 %v5714_v59 }
 0x8d6   : > { %2755 = vadd.xlane.f32.xlu2 %v7867_v60 }
 0x941   : > { %v2754_v61 = vpop.xlane.xlu0 %2753 }
 0x942   : > { %v2757_v63 = vmul.f32 %v2754_v61, %v7388_v55  ;;  %v5718_v61 = vor.u32 %v6542_v51, %v5715_v9 }
 0x944   : > { %v7872_v2 = vsub.f32 %v7863_v50, %v2757_v63  ;;  %2917 = vmatpush.bf16.msra.mxu1 %v5718_v61  ;;  %v6772_v61 = vld [vmem:[%s991_s2] ss:$0 sm:$0xff] }
 0x946   : > { %v2761_v62 = vmul.f32 %v7872_v2, %v7872_v2 }
 0x948   : > { %2763 = vadd.xlane.f32.xlu1 %v2761_v62 }
 0x949   : > { %v2756_v4 = vpop.xlane.xlu2 %2755 }
 0x94a   : > { %v2758_v3 = vmul.f32 %v2756_v4, %v7388_v55  ;;  %v6565_v4 = vld [vmem:[%s7924_s21 + $0x38] sm:$0xff] }
 0x94b   : > { %3062 = vmatpush.bf16.msrb.mxu2 %v6565_v4 }
 0x94c   : > { %v7878_v44 = vsub.f32 %v7867_v60, %v2758_v3  ;;  %v6573_v3 = vld [vmem:[%s7924_s21 + $0x78] sm:$0xff] }
 0x94d   : > { %3076 = vmatpush.bf16.msrb.mxu3 %v6573_v3 }
 0x94e   : > { %v2762_v54 = vmul.f32 %v7878_v44, %v7878_v44 }
 0x950   : > { %2765 = vadd.xlane.f32.xlu0 %v2762_v54  ;;  %v6564_v54 = vld [vmem:[%s7924_s21 + $0x30] sm:$0xff] }
 0x951   : > { %3063 = vmatpush.bf16.msrb.mxu2 %v6564_v54  ;;  %3077 = vmatpush.bf16.msrb.mxu3 %v6572_v12 }
 0x955   : > { %3064 = vmatpush.bf16.msrb.mxu2 %v6563_v40  ;;  %3078 = vmatpush.bf16.msrb.mxu3 %v6571_v5 }
 0x959   : > { %3065 = vmatpush.bf16.msrb.mxu2 %v6562_v10  ;;  %3079 = vmatpush.bf16.msrb.mxu3 %v6570_v13  ;;  %v6060_v10 = vld [vmem:[%s7311_s4 + $0x2e8] sm:$0xf0]  ;;  %v6034_v13 = vld [vmem:[%s7311_s4 + $0x2a0] sm:$0xf] }
 0x95d   : > { %3066 = vmatpush.bf16.msrb.mxu2 %v6561_v32  ;;  %3080 = vmatpush.bf16.msrb.mxu3 %v6569_v33 }
 0x961   : > { %3067 = vmatpush.bf16.msrb.mxu2 %v6560_v34  ;;  %3081 = vmatpush.bf16.msrb.mxu3 %v6568_v35 }
 0x9bb   : > { %v2764_v57 = vpop.xlane.xlu1 %2763 }
 0x9bc   : > { %v2767_v63 = vmul.f32 %v2764_v57, %v7388_v55 }
 0x9be   : > { %v2769_v62 = vadd.f32 1e-12, %v2767_v63 }
 0x9c0   : > { %6850 = vrsqrt.f32 %v2769_v62  ;;  %vm2777_vm2 = vweird.f32 %v2769_v62 }
 0x9c3   : > { %v2766_v6 = vpop.xlane.xlu0 %2765 }
 0x9c4   : > { %v2768_v7 = vmul.f32 %v2766_v6, %v7388_v55 }
 0x9c6   : > { %v6851_v58 = vpop.eup %6850  ;;  %v2770_v8 = vadd.f32 1e-12, %v2768_v7 }
 0x9c7   : > { %v2772_v11 = vmul.f32 %v6851_v58, %v2769_v62  ;;  %vm2778_vm1 = vweird.f32 %v6851_v58 }
 0x9c8   : > { %6852 = vrsqrt.f32 %v2770_v8  ;;  %vm2779_vm4 = vmor %vm2777_vm2, %vm2778_vm1  ;;  %vm2787_vm5 = vweird.f32 %v2770_v8 }
 0x9c9   : > { %v2773_v16 = vmul.f32 %v6851_v58, %v2772_v11 }
 0x9cb   : > { %v2774_v17 = vmul.f32 0.5, %v2773_v16  ;;  %v6613_v16 = vld [vmem:[%s7311_s4 + $0x2b4] sm:$0xf0] }
 0x9cd   : > { %v2775_v19 = vsub.f32 1.5, %v2774_v17 }
 0x9ce   : > { %v6853_v18 = vpop.eup %6852 }
 0x9cf   : > { %v2782_v0 = vmul.f32 %v6853_v18, %v2770_v8  ;;  %v2776_v20 = vmul.f32 %v6851_v58, %v2775_v19  ;;  %vm2788_vm3 = vweird.f32 %v6853_v18  ;;  %v6619_v8 = vld [vmem:[%s7311_s4 + $0x2e4] sm:$0xf0]  ;;  %v6036_v19 = vld [vmem:[%s7311_s4 + $0x2b8] sm:$0xf0] }
 0x9d0   : > { %vm2789_vm6 = vmor %vm2787_vm5, %vm2788_vm3 }
 0x9d1   : > { %v2783_v45 = vmul.f32 %v6853_v18, %v2782_v0  ;;  %v2780_v26 = vsel %vm2779_vm4, %v6851_v58, %v2776_v20  ;;  %v6058_v58 = vld [vmem:[%s7311_s4 + $0x2d0] sm:$0xf]  ;;  %v6035_v0 = vor.u32 %v6613_v16, %v6034_v13  ;;  %v6607_v20 = vld [vmem:[%s7311_s4 + $0x284] sm:$0xf0] }
 0x9d2   : > { %v2791_v29 = vmul.f32 %v2780_v26, %v7872_v2  ;;  %v6559_v2 = vld [vmem:[%s7924_s21 + $0x8] sm:$0xff]  ;;  %v6059_v11 = vor.u32 %v6619_v8, %v6058_v58  ;;  %v6608_v58 = vld [vmem:[%s7311_s4 + $0x28c] sm:$0xf0] }
 0x9d3   : > { %v2784_v23 = vmul.f32 0.5, %v2783_v45  ;;  %3068 = vmatpush.bf16.msrb.mxu2 %v6559_v2  ;;  %v6010_v45 = vld [vmem:[%s7311_s4 + $0x270] sm:$0xf]  ;;  %v5986_v2 = vld [vmem:[%s7311_s4 + $0x240] sm:$0xf] }
 0x9d4   : > { %3437 = vmatpush.bf16.msra.mxu0 %v6059_v11  ;;  %v6011_v26 = vor.u32 %v6607_v20, %v6010_v45  ;;  %v6605_v11 = vld [vmem:[%s7311_s4 + $0x27c] sm:$0xf]  ;;  %v5914_v16 = vld [vmem:[%s7311_s4 + $0x1b0] sm:$0xf]  ;;  %v6602_v45 = vld [vmem:[%s7311_s4 + $0x25c] sm:$0xf0] }
 0x9d5   : > { %v2785_v24 = vsub.f32 1.5, %v2784_v23  ;;  %v6604_v23 = vld [vmem:[%s7311_s4 + $0x274] sm:$0xf] }
 0x9d7   : > { %v2786_v27 = vmul.f32 %v6853_v18, %v2785_v24  ;;  %3069 = vmatpush.bf16.msrb.mxu2 %v6558_v36  ;;  %v6012_v24 = vld [vmem:[%s7311_s4 + $0x288] sm:$0xf0]  ;;  %v6598_v36 = vld [vmem:[%s7311_s4 + $0x244] sm:$0xf] }
 0x9d8   : > { %3438 = vmatpush.bf16.msra.mxu0 %v6035_v0  ;;  %v5916_v0 = vld [vmem:[%s7311_s4 + $0x1c8] sm:$0xf0] }
 0x9d9   : > { %v2790_v28 = vsel %vm2789_vm6, %v6853_v18, %v2786_v27  ;;  %v6610_v18 = vld [vmem:[%s7311_s4 + $0x2a4] sm:$0xf]  ;;  %v6015_v27 = vor.u32 %v6604_v23, %v6012_v24  ;;  %v6599_v24 = vld [vmem:[%s7311_s4 + $0x24c] sm:$0xf] }
 0x9da   : > { %v2792_v30 = vmul.f32 %v2790_v28, %v7878_v44  ;;  %v6567_v44 = vld [vmem:[%s7924_s21 + $0x48] sm:$0xff] }
 0x9db   : > { %3082 = vmatpush.bf16.msrb.mxu3 %v6567_v44  ;;  %v6601_v44 = vld [vmem:[%s7311_s4 + $0x254] sm:$0xf0] }
 0x9dc   : > { %v2793_v31 = vpack.c.bf16 %v2792_v30, %v2791_v29  ;;  %3439 = vmatpush.bf16.msra.mxu0 %v6011_v26  ;;  %v5996_v26 = vld [vmem:[%s7311_s4 + $0x260] sm:$0xf0] }
 0x9de   : > { %2904 = vmatmul.bf16.vlgmr.msrb.gmra.mxu0 %v2793_v31  ;;  %2918 = vmatmul.bf16.vlgmr.msra.gmra.mxu1 %v2793_v31 }
 0x9df   : > { %3083 = vmatpush.bf16.msrb.mxu3 %v6566_v38  ;;  %v5987_v38 = vor.u32 %v6601_v44, %v5986_v2  ;;  %v6596_v2 = vld [vmem:[%s7311_s4 + $0x22c] sm:$0xf0] }
 0x9e1   : > { %3440 = vmatpush.bf16.msra.mxu0 %v5987_v38  ;;  %v6593_v38 = vld [vmem:[%s7311_s4 + $0x21c] sm:$0xf] }
 0xa5b   : > { %v2905_v41 = vpop.f32.mrf.mxu0  ;;  %v2919_v42 = vpop.f32.mrf.mxu1 }
 0xa5c   : > { %v2906_v37 = vadd.f32 %v2905_v41, %v2812_v47  ;;  %v2920_v25 = vadd.f32 %v2919_v42, %v2813_v48  ;;  %v6066_v41 = vld [vmem:[%s7311_s4 + $0x2d8] sm:$0xf]  ;;  %v6620_v42 = vld [vmem:[%s7311_s4 + $0x2ec] sm:$0xf0] }
 0xa5e   : > { %v2924_v1 = vmax.f32 %v2906_v37, 0.0  ;;  %v2925_v56 = vmax.f32 %v2920_v25, 0.0  ;;  %v6617_v37 = vld [vmem:[%s7311_s4 + $0x2dc] sm:$0xf]  ;;  %v6068_v25 = vld [vmem:[%s7311_s4 + $0x2f0] sm:$0xf0] }
 0xa63   : > { %v2907_v52 = vpop.f32.mrf.mxu0  ;;  %v2921_v53 = vpop.f32.mrf.mxu1 }
 0xa64   : > { %v2908_v49 = vadd.f32 %v2907_v52, %v2812_v47  ;;  %v2922_v14 = vadd.f32 %v2921_v53, %v2813_v48  ;;  %v5991_v47 = vor.u32 %v6598_v36, %v5988_v39  ;;  %v6067_v48 = vor.u32 %v6620_v42, %v6066_v41  ;;  %v5962_v53 = vld [vmem:[%s7311_s4 + $0x210] sm:$0xf]  ;;  %v5972_v39 = vld [vmem:[%s7311_s4 + $0x230] sm:$0xf0]  ;;  %v6074_v41 = vld [vmem:[%s7311_s4 + $0x2e0] sm:$0xf] }
 0xa65   : > { %v6071_v52 = vor.u32 %v6617_v37, %v6068_v25  ;;  %v5975_v42 = vor.u32 %v6593_v38, %v5972_v39  ;;  %v6076_v37 = vld [vmem:[%s7311_s4 + $0x2f8] sm:$0xf0]  ;;  %v5954_v38 = vld [vmem:[%s7311_s4 + $0x1f0] sm:$0xf]  ;;  %v6591_v39 = vld [vmem:[%s7311_s4 + $0x204] sm:$0xf0] }
 0xa66   : > { %v2926_v51 = vmax.f32 %v2908_v49, 0.0  ;;  %v2927_v59 = vmax.f32 %v2922_v14, 0.0  ;;  %3465 = vmatpush.bf16.msra.mxu2 %v6067_v48  ;;  %v6595_v49 = vld [vmem:[%s7311_s4 + $0x224] sm:$0xf0]  ;;  %v6592_v14 = vld [vmem:[%s7311_s4 + $0x214] sm:$0xf] }
 0xa67   : > { %3479 = vmatpush.bf16.msra.mxu3 %v6071_v52  ;;  %v6618_v48 = vld [vmem:[%s7311_s4 + $0x2e4] sm:$0xf] }
 0xa68   : > { %v2928_v9 = vpack.c.bf16 %v2926_v51, %v2924_v1  ;;  %v2929_v57 = vpack.c.bf16 %v2927_v59, %v2925_v56  ;;  %v5963_v1 = vor.u32 %v6595_v49, %v5962_v53  ;;  %v5964_v56 = vld [vmem:[%s7311_s4 + $0x228] sm:$0xf0]  ;;  %v6042_v51 = vld [vmem:[%s7311_s4 + $0x2a8] sm:$0xf]  ;;  %v6614_v59 = vld [vmem:[%s7311_s4 + $0x2bc] sm:$0xf0]  ;;  %v6079_v52 = vor.u32 %v6618_v48, %v6076_v37 }
 0xa69   : > { %v5946_v53 = vld [vmem:[%s7311_s4 + $0x1e8] sm:$0xf]  ;;  %v6590_v49 = vld [vmem:[%s7311_s4 + $0x1fc] sm:$0xf0] }
 0xa6a   : > { %3070 = vmatmul.bf16.vlgmr.msrb.gmra.mxu2 %v2928_v9  ;;  %3084 = vmatmul.bf16.vlgmr.msrb.gmra.mxu3 %v2929_v57  ;;  %v5967_v9 = vor.u32 %v6592_v14, %v5964_v56  ;;  %v6043_v57 = vor.u32 %v6614_v59, %v6042_v51  ;;  %v6587_v14 = vld [vmem:[%s7311_s4 + $0x1ec] sm:$0xf]  ;;  %v5948_v56 = vld [vmem:[%s7311_s4 + $0x200] sm:$0xf0]  ;;  %v6050_v51 = vld [vmem:[%s7311_s4 + $0x2b0] sm:$0xf] }
 0xa6b   : > { %3441 = vmatpush.bf16.msra.mxu0 %v5963_v1  ;;  %v5947_v1 = vor.u32 %v6590_v49, %v5946_v53  ;;  %v6615_v59 = vld [vmem:[%s7311_s4 + $0x2c4] sm:$0xf0]  ;;  %v5930_v37 = vld [vmem:[%s7311_s4 + $0x1c0] sm:$0xf]  ;;  %v6582_v53 = vld [vmem:[%s7311_s4 + $0x1c4] sm:$0xf] }
 0xa6c   : > { %3466 = vmatpush.bf16.msra.mxu2 %v6043_v57  ;;  %v6051_v57 = vor.u32 %v6615_v59, %v6050_v51  ;;  %v5932_v49 = vld [vmem:[%s7311_s4 + $0x1d8] sm:$0xf0] }
 0xa6d   : > { %v5935_v59 = vor.u32 %v6582_v53, %v5932_v49 }
 0xaed   : > { %v3071_v63 = vpop.f32.mrf.mxu2  ;;  %v3085_v62 = vpop.f32.mrf.mxu3 }
 0xaee   : > { %v3072_v4 = vadd.f32 %v6772_v61, %v3071_v63  ;;  %v6044_v63 = vld [vmem:[%s7311_s4 + $0x2c0] sm:$0xf0] }
 0xaf0   : > { %v3086_v3 = vadd.f32 %v3085_v62, %v3072_v4  ;;  %v5938_v4 = vld [vmem:[%s7311_s4 + $0x1e0] sm:$0xf] }
 0xaf2   : > { %v7960_v54 = vadd.f32 %v3086_v3, %v7863_v50  ;;  %v6616_v50 = vld [vmem:[%s7311_s4 + $0x2d4] sm:$0xf]  ;;  %v6589_v3 = vld [vmem:[%s7311_s4 + $0x1f4] sm:$0xf0] }
 0xaf3   : > { %v6063_v17 = vor.u32 %v6616_v50, %v6060_v10  ;;  %v6020_v10 = vld [vmem:[%s7311_s4 + $0x290] sm:$0xf0] }
 0xaf4   : > { %3092 = vadd.xlane.f32.xlu2 %v7960_v54  ;;  %v6023_v13 = vor.u32 %v6605_v11, %v6020_v10  ;;  %v6606_v11 = vld [vmem:[%s7311_s4 + $0x284] sm:$0xf]  ;;  %v6028_v10 = vld [vmem:[%s7311_s4 + $0x298] sm:$0xf0] }
 0xaf5   : > { %v3073_v12 = vpop.f32.mrf.mxu2  ;;  %v3087_v7 = vpop.f32.mrf.mxu3  ;;  %3451 = vmatpush.bf16.msrb.mxu1 %v6063_v17  ;;  %v6583_v17 = vld [vmem:[%s7311_s4 + $0x1c4] sm:$0xf0] }
 0xaf6   : > { %v3074_v6 = vadd.f32 %v6772_v61, %v3073_v12  ;;  %v6611_v61 = vld [vmem:[%s7311_s4 + $0x2ac] sm:$0xf]  ;;  %v6586_v12 = vld [vmem:[%s7311_s4 + $0x1e4] sm:$0xf] }
 0xaf7   : > { %v6047_v62 = vor.u32 %v6611_v61, %v6044_v63  ;;  %v6612_v61 = vld [vmem:[%s7311_s4 + $0x2b4] sm:$0xf]  ;;  %v6052_v63 = vld [vmem:[%s7311_s4 + $0x2c8] sm:$0xf0] }
 0xaf8   : > { %v3088_v40 = vadd.f32 %v3087_v7, %v3074_v6  ;;  %v5939_v6 = vor.u32 %v6589_v3, %v5938_v4  ;;  %v5940_v7 = vld [vmem:[%s7311_s4 + $0x1f8] sm:$0xf0]  ;;  %v5922_v4 = vld [vmem:[%s7311_s4 + $0x1b8] sm:$0xf]  ;;  %v6584_v3 = vld [vmem:[%s7311_s4 + $0x1cc] sm:$0xf0] }
 0xaf9   : > { %3480 = vmatpush.bf16.msra.mxu3 %v6047_v62  ;;  %v5943_v8 = vor.u32 %v6586_v12, %v5940_v7  ;;  %v6055_v62 = vor.u32 %v6612_v61, %v6052_v63  ;;  %v6581_v12 = vld [vmem:[%s7311_s4 + $0x1bc] sm:$0xf]  ;;  %v5924_v7 = vld [vmem:[%s7311_s4 + $0x1d0] sm:$0xf0]  ;;  %v6579_v61 = vld [vmem:[%s7311_s4 + $0x1a4] sm:$0xf0] }
 0xafa   : > { %v7964_v5 = vadd.f32 %v3088_v40, %v7867_v60  ;;  %v6039_v60 = vor.u32 %v6610_v18, %v6036_v19  ;;  %v6018_v40 = vld [vmem:[%s7311_s4 + $0x278] sm:$0xf]  ;;  %3442 = vmatpush.bf16.msra.mxu0 %v5939_v6  ;;  %v6580_v18 = vld [vmem:[%s7311_s4 + $0x1b4] sm:$0xf]  ;;  %v5915_v19 = vor.u32 %v6583_v17, %v5914_v16  ;;  %v5923_v6 = vor.u32 %v6584_v3, %v5922_v4  ;;  %v5898_v16 = vld [vmem:[%s7311_s4 + $0x188] sm:$0xf] }
 0xafb   : > { %v6019_v50 = vor.u32 %v6608_v58, %v6018_v40  ;;  %v5919_v20 = vor.u32 %v6580_v18, %v5916_v0  ;;  %v6026_v40 = vld [vmem:[%s7311_s4 + $0x280] sm:$0xf]  ;;  %v6609_v58 = vld [vmem:[%s7311_s4 + $0x294] sm:$0xf0]  ;;  %v6575_v18 = vld [vmem:[%s7311_s4 + $0x18c] sm:$0xf] }
 0xafc   : > { %3094 = vadd.xlane.f32.xlu0 %v7964_v5  ;;  %3452 = vmatpush.bf16.msrb.mxu1 %v6039_v60  ;;  %v5994_v60 = vld [vmem:[%s7311_s4 + $0x248] sm:$0xf]  ;;  %v6578_v17 = vld [vmem:[%s7311_s4 + $0x19c] sm:$0xf0]  ;;  %v5900_v0 = vld [vmem:[%s7311_s4 + $0x1a0] sm:$0xf0] }
 0xafd   : > { %3467 = vmatpush.bf16.msra.mxu2 %v6019_v50  ;;  %3481 = vmatpush.bf16.msra.mxu3 %v6023_v13  ;;  %v5995_v23 = vor.u32 %v6602_v45, %v5994_v60  ;;  %v6027_v50 = vor.u32 %v6609_v58, %v6026_v40  ;;  %v6031_v13 = vor.u32 %v6606_v11, %v6028_v10  ;;  %v6002_v60 = vld [vmem:[%s7311_s4 + $0x250] sm:$0xf]  ;;  %v6603_v45 = vld [vmem:[%s7311_s4 + $0x264] sm:$0xf0]  ;;  %v6576_v63 = vld [vmem:[%s7311_s4 + $0x194] sm:$0xf] }
 0xafe   : > { %3443 = vmatpush.bf16.msra.mxu0 %v5915_v19  ;;  %v5899_v19 = vor.u32 %v6578_v17, %v5898_v16 }
 0xb00   : > { %3453 = vmatpush.bf16.msrb.mxu1 %v6015_v27  ;;  %v5999_v27 = vor.u32 %v6599_v24, %v5996_v26  ;;  %v6003_v24 = vor.u32 %v6603_v45, %v6002_v60  ;;  %v6600_v26 = vld [vmem:[%s7311_s4 + $0x254] sm:$0xf] }
 0xb01   : > { %3468 = vmatpush.bf16.msra.mxu2 %v5995_v23  ;;  %v5903_v23 = vor.u32 %v6575_v18, %v5900_v0  ;;  %v5887_v60 = vld [vmem:[%s7696_s22 + $0x6] sm:$0x3f] }
 0xb02   : > { %3482 = vmatpush.bf16.msra.mxu3 %v5999_v27  ;;  %v6004_v27 = vld [vmem:[%s7311_s4 + $0x268] sm:$0xf0] }
 0xb04   : > { %3454 = vmatpush.bf16.msrb.mxu1 %v5991_v47  ;;  %v6621_v47 = vld [vmem:[%s7311_s4 + $0x2f4] sm:$0xf0] }
 0xb05   : > { %v6075_v25 = vor.u32 %v6621_v47, %v6074_v41  ;;  %v6588_v41 = vld [vmem:[%s7311_s4 + $0x1f4] sm:$0xf]  ;;  %v5955_v47 = vor.u32 %v6591_v39, %v5954_v38 }
 0xb06   : > { %3483 = vmatpush.bf16.msra.mxu3 %v5975_v42  ;;  %v5956_v42 = vld [vmem:[%s7311_s4 + $0x208] sm:$0xf0] }
 0xb07   : > { %v5959_v48 = vor.u32 %v6588_v41, %v5956_v42 }
 0xb08   : > { %3455 = vmatpush.bf16.msrb.mxu1 %v5967_v9  ;;  %v5951_v9 = vor.u32 %v6587_v14, %v5948_v56 }
 0xb0a   : > { %3484 = vmatpush.bf16.msra.mxu3 %v5951_v9  ;;  %v5906_v9 = vld [vmem:[%s7311_s4 + $0x190] sm:$0xf] }
 0xb0b   : > { %v5907_v3 = vor.u32 %v6579_v61, %v5906_v9 }
 0xb0c   : > { %3456 = vmatpush.bf16.msrb.mxu1 %v5943_v8  ;;  %v5927_v8 = vor.u32 %v6581_v12, %v5924_v7 }
 0xb0e   : > { %3485 = vmatpush.bf16.msra.mxu3 %v5927_v8 }
 0xb10   : > { %3457 = vmatpush.bf16.msrb.mxu1 %v5919_v20 }
 0xb12   : > { %3486 = vmatpush.bf16.msra.mxu3 %v5903_v23  ;;  %v3185_v23 = vperm.slane %v5887_v60, 0 }
 0xb67   : > { %v3093_v28 = vpop.xlane.xlu2 %3092 }
 0xb68   : > { %v3096_v29 = vmul.f32 %v3093_v28, %v7388_v55  ;;  %v5890_v28 = vld [vmem:[%s7311_s4 + $0x180] sm:$0xf] }
 0xb6a   : > { %v7981_v30 = vsub.f32 %v7960_v54, %v3096_v29  ;;  %v6577_v29 = vld [vmem:[%s7311_s4 + $0x194] sm:$0xf0] }
 0xb6c   : > { %v3100_v31 = vmul.f32 %v7981_v30, %v7981_v30 }
 0xb6e   : > { %3102 = vadd.xlane.f32.xlu1 %v3100_v31  ;;  %v6574_v31 = vld [vmem:[%s7311_s4 + $0x184] sm:$0xf] }
 0xb6f   : > { %v3095_v32 = vpop.xlane.xlu0 %3094 }
 0xb70   : > { %v3097_v33 = vmul.f32 %v3095_v32, %v7388_v55  ;;  %v5891_v32 = vor.u32 %v6577_v29, %v5890_v28  ;;  %v6007_v29 = vor.u32 %v6600_v26, %v6004_v27 }
 0xb72   : > { %v7987_v34 = vsub.f32 %v7964_v5, %v3097_v33  ;;  %v5892_v33 = vld [vmem:[%s7311_s4 + $0x198] sm:$0xf0]  ;;  %3444 = vmatpush.bf16.msra.mxu0 %v5891_v32  ;;  %v6597_v32 = vld [vmem:[%s7311_s4 + $0x234] sm:$0xf0] }
 0xb73   : > { %v5895_v44 = vor.u32 %v6574_v31, %v5892_v33  ;;  %v5978_v31 = vld [vmem:[%s7311_s4 + $0x220] sm:$0xf]  ;;  %v6594_v33 = vld [vmem:[%s7311_s4 + $0x224] sm:$0xf] }
 0xb74   : > { %v3101_v35 = vmul.f32 %v7987_v34, %v7987_v34 }
 0xb75   : > { %3458 = vmatpush.bf16.msrb.mxu1 %v5895_v44  ;;  %v5980_v44 = vld [vmem:[%s7311_s4 + $0x238] sm:$0xf0] }
 0xb76   : > { %3104 = vadd.xlane.f32.xlu2 %v3101_v35  ;;  %v5970_v35 = vld [vmem:[%s7311_s4 + $0x218] sm:$0xf]  ;;  %3493 = vmatpush.bf16.msrb.mxu0 %v6075_v25 }
 0xb77   : > { %v5971_v36 = vor.u32 %v6596_v2, %v5970_v35  ;;  %v5979_v2 = vor.u32 %v6597_v32, %v5978_v31 }
 0xb79   : > { %3469 = vmatpush.bf16.msra.mxu2 %v5971_v36  ;;  %3507 = vmatpush.bf16.msra.mxu1 %v6079_v52  ;;  %v5983_v36 = vor.u32 %v6594_v33, %v5980_v44  ;;  %v6585_v52 = vld [vmem:[%s7311_s4 + $0x1d4] sm:$0xf0] }
 0xb7a   : > { %3494 = vmatpush.bf16.msrb.mxu0 %v6051_v57  ;;  %v5931_v51 = vor.u32 %v6585_v52, %v5930_v37  ;;  %v3190_v37 = vperm.slane %v5887_v60, 5 }
 0xb7d   : > { %3470 = vmatpush.bf16.msra.mxu2 %v5947_v1  ;;  %3508 = vmatpush.bf16.msra.mxu1 %v6055_v62  ;;  %v5908_v62 = vld [vmem:[%s7311_s4 + $0x1a8] sm:$0xf0] }
 0xb7e   : > { %3495 = vmatpush.bf16.msrb.mxu0 %v6027_v50  ;;  %v5911_v12 = vor.u32 %v6576_v63, %v5908_v62 }
 0xb81   : > { %3471 = vmatpush.bf16.msra.mxu2 %v5923_v6  ;;  %3509 = vmatpush.bf16.msra.mxu1 %v6031_v13 }
 0xb82   : > { %3496 = vmatpush.bf16.msrb.mxu0 %v6003_v24  ;;  %v3186_v24 = vperm.slane %v5887_v60, 1 }
 0xb85   : > { %3472 = vmatpush.bf16.msra.mxu2 %v5899_v19  ;;  %3510 = vmatpush.bf16.msra.mxu1 %v6007_v29 }
 0xb86   : > { %3497 = vmatpush.bf16.msrb.mxu0 %v5979_v2 }
 0xb89   : > { %3511 = vmatpush.bf16.msra.mxu1 %v5983_v36 }
 0xb8a   : > { %3498 = vmatpush.bf16.msrb.mxu0 %v5955_v47 }
 0xb8d   : > { %3512 = vmatpush.bf16.msra.mxu1 %v5959_v48  ;;  %v3189_v48 = vperm.slane %v5887_v60, 4 }
 0xb8e   : > { %3499 = vmatpush.bf16.msrb.mxu0 %v5931_v51 }
 0xb91   : > { %3513 = vmatpush.bf16.msra.mxu1 %v5935_v59  ;;  %v3188_v59 = vperm.slane %v5887_v60, 3 }
 0xb92   : > { %3500 = vmatpush.bf16.msrb.mxu0 %v5907_v3 }
 0xb95   : > { %3514 = vmatpush.bf16.msra.mxu1 %v5911_v12 }
 0xbe1   : > { %v3103_v20 = vpop.xlane.xlu1 %3102 }
 0xbe2   : > { %v3106_v28 = vmul.f32 %v3103_v20, %v7388_v55 }
 0xbe4   : > { %v3108_v35 = vadd.f32 1e-12, %v3106_v28 }
 0xbe6   : > { %6854 = vrsqrt.f32 %v3108_v35  ;;  %vm3116_vm12 = vweird.f32 %v3108_v35 }
 0xbe9   : > { %v3105_v25 = vpop.xlane.xlu2 %3104 }
 0xbea   : > { %v3107_v14 = vmul.f32 %v3105_v25, %v7388_v55 }
 0xbec   : > { %v6855_v1 = vpop.eup %6854  ;;  %v3109_v56 = vadd.f32 1e-12, %v3107_v14 }
 0xbed   : > { %v3111_v57 = vmul.f32 %v6855_v1, %v3108_v35  ;;  %vm3117_vm11 = vweird.f32 %v6855_v1 }
 0xbee   : > { %6856 = vrsqrt.f32 %v3109_v56  ;;  %vm3118_vm14 = vmor %vm3116_vm12, %vm3117_vm11  ;;  %vm3126_vm15 = vweird.f32 %v3109_v56 }
 0xbef   : > { %v3112_v4 = vmul.f32 %v6855_v1, %v3111_v57 }
 0xbf1   : > { %v3113_v6 = vmul.f32 0.5, %v3112_v4 }
 0xbf3   : > { %v3114_v40 = vsub.f32 1.5, %v3113_v6 }
 0xbf4   : > { %v6857_v7 = vpop.eup %6856 }
 0xbf5   : > { %v3121_v58 = vmul.f32 %v6857_v7, %v3109_v56  ;;  %v3115_v50 = vmul.f32 %v6855_v1, %v3114_v40  ;;  %vm3127_vm13 = vweird.f32 %v6857_v7 }
 0xbf6   : > { %vm3128_vm0 = vmor %vm3126_vm15, %vm3127_vm13 }
 0xbf7   : > { %v3122_v8 = vmul.f32 %v6857_v7, %v3121_v58  ;;  %v3119_v13 = vsel %vm3118_vm14, %v6855_v1, %v3115_v50  ;;  %v3187_v1 = vperm.slane %v5887_v60, 2 }
 0xbf8   : > { %v3130_v18 = vmul.f32 %v3119_v13, %v7981_v30 }
 0xbf9   : > { %v3123_v11 = vmul.f32 0.5, %v3122_v8 }
 0xbfb   : > { %v3124_v10 = vsub.f32 1.5, %v3123_v11 }
 0xbfd   : > { %v3125_v16 = vmul.f32 %v6857_v7, %v3124_v10 }
 0xbff   : > { %v3129_v17 = vsel %vm3128_vm0, %v6857_v7, %v3125_v16 }
 0xc00   : > { %v3131_v19 = vmul.f32 %v3129_v17, %v7987_v34 }
 0xc02   : > { %v3132_v0 = vpack.c.bf16 %v3131_v19, %v3130_v18 }
 0xc04   : > { %3445 = vmatmul.bf16.vlgmr.msra.gmra.mxu0 %v3132_v0  ;;  %3459 = vmatmul.bf16.vlgmr.msrb.gmra.mxu1 %v3132_v0 }
 0xc05   : > { %3473 = vmatmul.bf16.vlgmr.msra.gmra.mxu2 %v3132_v0  ;;  %3487 = vmatmul.bf16.vlgmr.msra.gmra.mxu3 %v3132_v0 }
 0xc14   : > { %3501 = vmatmul.bf16.vlgmr.msrb.gmra.mxu0 %v3132_v0  ;;  %3515 = vmatmul.bf16.vlgmr.msra.gmra.mxu1 %v3132_v0 }
 0xc81   : > { %v3446_v45 = vpop.f32.mrf.mxu0  ;;  %v3460_v20 = vpop.f32.mrf.mxu1 }
 0xc82   : > { %v3447_v26 = vadd.f32 %v3446_v45, %v3185_v23  ;;  %v3461_v27 = vadd.f32 %v3460_v20, %v3186_v24  ;;  %v3932_v20 = vsel %vm2105_vm7, %v7673_v46, 0 }
 0xc84   : > { %v3521_v31 = vpack.c.bf16 %v3461_v27, %v3447_v26 }
 0xc86   : > { %v3531_v33 = vunpack.c.l.b16 %v3521_v31  ;;  %v3534_v35 = vunpack.c.h.b16 %v3521_v31 }
 0xc88   : > { %v3474_v2 = vpop.f32.mrf.mxu2  ;;  %v3488_v44 = vpop.f32.mrf.mxu3 }
 0xc89   : > { %v3448_v28 = vpop.f32.mrf.mxu0  ;;  %v3462_v29 = vpop.f32.mrf.mxu1  ;;  %v3475_v3 = vadd.f32 %v3474_v2, %v3187_v1  ;;  %v3489_v12 = vadd.f32 %v3488_v44, %v3188_v59 }
 0xc8a   : > { %v3449_v30 = vadd.f32 %v3448_v28, %v3185_v23  ;;  %v3463_v32 = vadd.f32 %v3462_v29, %v3186_v24 }
 0xc8b   : > { %v3522_v50 = vpack.c.bf16 %v3489_v12, %v3475_v3 }
 0xc8c   : > { %v3524_v34 = vpack.c.bf16 %v3463_v32, %v3449_v30 }
 0xc8d   : > { %v3756_v16 = vunpack.c.h.b16 %v3522_v50  ;;  %v3752_v19 = vunpack.c.l.b16 %v3522_v50 }
 0xc8e   : > { %v3532_v36 = vunpack.c.l.b16 %v3524_v34  ;;  %v3535_v38 = vunpack.c.h.b16 %v3524_v34 }
 0xc90   : > { %v3533_v39 = vpack.c.b16 %v3532_v36, %v3531_v33  ;;  %v3536_v41 = vpack.c.b16 %v3535_v38, %v3534_v35  ;;  %v3476_v49 = vpop.f32.mrf.mxu2  ;;  %v3490_v14 = vpop.f32.mrf.mxu3  ;;  %v6928_v35 = vld [vmem:[%s8607_s20] sm:$0xff] }
 0xc91   : > { %v3502_v42 = vpop.f32.mrf.mxu0  ;;  %v3516_v47 = vpop.f32.mrf.mxu1  ;;  %v3477_v63 = vadd.f32 %v3476_v49, %v3187_v1  ;;  %v3491_v62 = vadd.f32 %v3490_v14, %v3188_v59 }
 0xc92   : > { %3627 = vrot.lane.b32.xlu2 %v3536_v41, %s7085_s28  ;;  %3581 = vrot.lane.b32.xlu0 %v3536_v41, %s7084_s6  ;;  %v3541_v25 = vsel %vm2105_vm7, %v3536_v41, 0  ;;  %v3503_v52 = vadd.f32 %v3502_v42, %v3189_v48  ;;  %v3517_v53 = vadd.f32 %v3516_v47, %v3190_v37  ;;  %v6929_v42 = vld [vmem:[%s8607_s20 + $0x8] sm:$0xff] }
 0xc93   : > { %3579 = vrot.lane.b32.xlu1 %v3533_v39, %s7084_s6  ;;  %3550 = vmatpush.bf16.xpose.msrb.mxu2 %v3541_v25  ;;  %v3525_v40 = vpack.c.bf16 %v3491_v62, %v3477_v63 }
 0xc94   : > { %v3523_v9 = vpack.c.bf16 %v3517_v53, %v3503_v52 }
 0xc95   : > { %v3757_v10 = vunpack.c.h.b16 %v3525_v40  ;;  %v3753_v17 = vunpack.c.l.b16 %v3525_v40 }
 0xc96   : > { %v3766_v6 = vunpack.c.h.b16 %v3523_v9  ;;  %v3762_v11 = vunpack.c.l.b16 %v3523_v9 }
 0xc97   : > { %v3758_v18 = vpack.c.b16 %v3757_v10, %v3756_v16  ;;  %v3754_v0 = vpack.c.b16 %v3753_v17, %v3752_v19 }
 0xc99   : > { %v3504_v56 = vpop.f32.mrf.mxu0  ;;  %v3518_v51 = vpop.f32.mrf.mxu1 }
 0xc9a   : > { %v3505_v57 = vadd.f32 %v3504_v56, %v3189_v48  ;;  %v3519_v61 = vadd.f32 %v3518_v51, %v3190_v37  ;;  %3673 = vrot.lane.b32.xlu0 %v3536_v41, %s7086_s1  ;;  %3671 = vrot.lane.b32.xlu2 %v3533_v39, %s7086_s1 }
 0xc9b   : > { %6081 = vmatmul.msk.bf16.vlgmr.msrb.gmra.mxu2 %vm2105_vm7, %v3533_v39 }
 0xc9c   : > { %v3526_v4 = vpack.c.bf16 %v3519_v61, %v3505_v57 }
 0xc9e   : > { %v3767_v7 = vunpack.c.h.b16 %v3526_v4  ;;  %v3763_v58 = vunpack.c.l.b16 %v3526_v4 }
 0xca0   : > { %v3768_v8 = vpack.c.b16 %v3767_v7, %v3766_v6  ;;  %v3764_v13 = vpack.c.b16 %v3763_v58, %v3762_v11 }
 0xca2   : > { %3779 = vmatpush.bf16.msra.mxu0 %v3768_v8  ;;  %3625 = vrot.lane.b32.xlu0 %v3533_v39, %s7085_s28 }
 0xca6   : > { %3780 = vmatpush.bf16.msra.mxu0 %v3764_v13 }
 0xcaa   : > { %3781 = vmatpush.bf16.msra.mxu0 %v3758_v18 }
 0xcae   : > { %3782 = vmatpush.bf16.msra.mxu0 %v3754_v0 }
 0xcec   : > { %v3628_v60 = vpop.permute.xlu2 %3627 }
 0xced   : > { %v3633_v45 = vsel %vm2105_vm7, %v3628_v60, 0 }
 0xcee   : > { %3642 = vmatpush.bf16.xpose.msra.mxu2 %v3633_v45 }
 0xcf4   : > { %v3672_v31 = vpop.permute.xlu2 %3671 }
 0xcf6   : > { %3941 = vmatpush.bf16.xpose.msrb.mxu2 %v3932_v20 }
 0xd04   : > { %v3582_v23 = vpop.permute.xlu0 %3581 }
 0xd05   : > { %v3587_v24 = vsel %vm2105_vm7, %v3582_v23, 0  ;;  %v3580_v26 = vpop.permute.xlu1 %3579 }
 0xd06   : > { %3596 = vmatpush.bf16.xpose.msrb.mxu3 %v3587_v24 }
 0xd0c   : > { %v3674_v27 = vpop.permute.xlu0 %3673 }
 0xd0d   : > { %v3679_v28 = vsel %vm2105_vm7, %v3674_v27, 0  ;;  %6082 = vmatmul.msk.bf16.vlgmr.msrb.gmra.mxu3 %vm2105_vm7, %v3580_v26 }
 0xd0e   : > { %3688 = vmatpush.bf16.xpose.msra.mxu3 %v3679_v28 }
 0xd14   : > { %v3626_v29 = vpop.permute.xlu0 %3625 }
 0xd15   : > { %6083 = vmatmul.msk.bf16.vlgmr.msra.gmra.mxu2 %vm2105_vm7, %v3626_v29 }
 0xd1d   : > { %6084 = vmatmul.msk.bf16.vlgmr.msra.gmra.mxu3 %vm2105_vm7, %v3672_v31 }
 0xd1e   : > { %v3552_v30 = vpop.f32.mrf.mxu2 }
 0xd1f   : > { %v3557_v1 = vmul.f32 0.17677669, %v3552_v30 }
 0xd21   : > { %v3559_v63 = vadd.f32 %v6928_v35, %v3557_v1 }
 0xd23   : > { %v3561_v58 = vmul.f32 1.442695, %v3559_v63 }
 0xd26   : > { %v3554_v32 = vpop.f32.mrf.mxu2 }
 0xd27   : > { %v3558_v59 = vmul.f32 0.17677669, %v3554_v32 }
 0xd29   : > { %v3560_v12 = vadd.f32 %v6929_v42, %v3558_v59 }
 0xd2b   : > { %v3563_v50 = vmul.f32 1.442695, %v3560_v12 }
 0xd90   : > { %v3598_v34 = vpop.f32.mrf.mxu3 }
 0xd91   : > { %v3603_v33 = vmul.f32 0.17677669, %v3598_v34 }
 0xd93   : > { %v3605_v2 = vadd.f32 %v6928_v35, %v3603_v33 }
 0xd95   : > { %v3607_v44 = vmul.f32 1.442695, %v3605_v2 }
 0xd97   : > { %6858 = vpow2.f32 %v3607_v44 }
 0xd98   : > { %v3600_v36 = vpop.f32.mrf.mxu3  ;;  %v3644_v38 = vpop.f32.mrf.mxu2 }
 0xd99   : > { %v3604_v39 = vmul.f32 0.17677669, %v3600_v36  ;;  %v3649_v41 = vmul.f32 0.17677669, %v3644_v38 }
 0xd9b   : > { %v3606_v47 = vadd.f32 %v6929_v42, %v3604_v39  ;;  %v3651_v48 = vadd.f32 %v6928_v35, %v3649_v41 }
 0xd9d   : > { %v6859_v37 = vpop.eup %6858  ;;  %v3609_v25 = vmul.f32 1.442695, %v3606_v47  ;;  %v3653_v52 = vmul.f32 1.442695, %v3651_v48 }
 0xd9e   : > { %v3611_v53 = vsel %vm2134_vm8, %v6859_v37, 0.0 }
 0xd9f   : > { %6860 = vpow2.f32 %v3609_v25  ;;  %3612 = vadd.xlane.f32.xlu1 %v3611_v53 }
 0xda0   : > { %6862 = vpow2.f32 %v3653_v52  ;;  %v3646_v49 = vpop.f32.mrf.mxu2  ;;  %v3690_v14 = vpop.f32.mrf.mxu3 }
 0xda1   : > { %v3650_v56 = vmul.f32 0.17677669, %v3646_v49  ;;  %v3695_v51 = vmul.f32 0.17677669, %v3690_v14 }
 0xda3   : > { %v3652_v9 = vadd.f32 %v6929_v42, %v3650_v56  ;;  %v3697_v57 = vadd.f32 %v6928_v35, %v3695_v51 }
 0xda5   : > { %v6861_v61 = vpop.eup %6860  ;;  %v3655_v62 = vmul.f32 1.442695, %v3652_v9  ;;  %v3699_v4 = vmul.f32 1.442695, %v3697_v57 }
 0xda6   : > { %v6863_v3 = vpop.eup %6862  ;;  %v3614_v6 = vsel %vm2134_vm8, %v6861_v61, 0.0 }
 0xda7   : > { %6864 = vpow2.f32 %v3655_v62  ;;  %3615 = vadd.xlane.f32.xlu0 %v3614_v6  ;;  %v3657_v7 = vsel %vm2134_vm8, %v6863_v3, 0.0 }
 0xda8   : > { %6866 = vpow2.f32 %v3699_v4  ;;  %3658 = vadd.xlane.f32.xlu2 %v3657_v7  ;;  %v3692_v40 = vpop.f32.mrf.mxu3 }
 0xda9   : > { %v3696_v8 = vmul.f32 0.17677669, %v3692_v40  ;;  %6868 = vpow2.f32 %v3561_v58 }
 0xdaa   : > { %6870 = vpow2.f32 %v3563_v50 }
 0xdab   : > { %v3698_v11 = vadd.f32 %v6929_v42, %v3696_v8 }
 0xdad   : > { %v6865_v10 = vpop.eup %6864  ;;  %v3701_v13 = vmul.f32 1.442695, %v3698_v11 }
 0xdae   : > { %v6867_v16 = vpop.eup %6866  ;;  %v3660_v17 = vsel %vm2134_vm8, %v6865_v10, 0.0 }
 0xdaf   : > { %6872 = vpow2.f32 %v3701_v13  ;;  %v3703_v18 = vsel %vm2134_vm8, %v6867_v16, 0.0  ;;  %3661 = vadd.xlane.f32.xlu1 %v3660_v17  ;;  %v8107_v19 = vpop.eup %6868 }
 0xdb0   : > { %3704 = vadd.xlane.f32.xlu2 %v3703_v18  ;;  %v8109_v0 = vpop.eup %6870  ;;  %v3565_v20 = vsel %vm2134_vm8, %v8107_v19, 0.0 }
 0xdb1   : > { %v3568_v23 = vsel %vm2134_vm8, %v8109_v0, 0.0 }
 0xdb5   : > { %v6873_v60 = vpop.eup %6872 }
 0xdb6   : > { %v3706_v45 = vsel %vm2134_vm8, %v6873_v60, 0.0 }
 0xdb7   : > { %3707 = vadd.xlane.f32.xlu0 %v3706_v45  ;;  %3566 = vadd.xlane.f32.xlu1 %v3565_v20 }
 0xdb8   : > { %3569 = vadd.xlane.f32.xlu2 %v3568_v23 }
 0xe12   : > { %v3613_v24 = vpop.xlane.xlu1 %3612 }
 0xe13   : > { %v3617_v26 = vadd.f32 1e-30, %v3613_v24 }
 0xe15   : > { %6874 = vrcp.f32 %v3617_v26 }
 0xe1a   : > { %v3616_v27 = vpop.xlane.xlu0 %3615 }
 0xe1b   : > { %v3618_v28 = vadd.f32 1e-30, %v3616_v27  ;;  %v3659_v29 = vpop.xlane.xlu2 %3658  ;;  %v6875_v30 = vpop.eup %6874 }
 0xe1c   : > { %v3663_v31 = vadd.f32 1e-30, %v3659_v29  ;;  %v3621_v32 = vmul.f32 %v6875_v30, %v6859_v37  ;;  %v6773_v29 = vld [vmem:[%s7750_s13 + $0x1] ss:$0 sm:$0xff] }
 0xe1d   : > { %6876 = vrcp.f32 %v3618_v28 }
 0xe1e   : > { %6878 = vrcp.f32 %v3663_v31  ;;  %v3623_v38 = vpack.c.bf16 %v3621_v32, %v3621_v32 }
 0xe20   : > { %v3724_v42 = vunpack.c.l.b16 %v3623_v38 }
 0xe22   : > { %v3662_v34 = vpop.xlane.xlu1 %3661 }
 0xe23   : > { %v6877_v33 = vpop.eup %6876  ;;  %v3705_v35 = vpop.xlane.xlu2 %3704  ;;  %v3664_v2 = vadd.f32 1e-30, %v3662_v34 }
 0xe24   : > { %v3709_v44 = vadd.f32 1e-30, %v3705_v35  ;;  %v3622_v36 = vmul.f32 %v6877_v33, %v6861_v61  ;;  %v6879_v39 = vpop.eup %6878 }
 0xe25   : > { %6880 = vrcp.f32 %v3664_v2  ;;  %v3667_v48 = vmul.f32 %v6879_v39, %v6863_v3 }
 0xe26   : > { %v3624_v41 = vpack.c.bf16 %v3622_v36, %v3622_v36  ;;  %6882 = vrcp.f32 %v3709_v44 }
 0xe27   : > { %v3669_v14 = vpack.c.bf16 %v3667_v48, %v3667_v48  ;;  %v6627_v48 = vld [vmem:[%s7806_s18 + $0x68] sm:$0xff] }
 0xe28   : > { %v3725_v47 = vunpack.c.l.b16 %v3624_v41 }
 0xe29   : > { %v3731_v51 = vunpack.c.l.b16 %v3669_v14 }
 0xe2a   : > { %v3708_v25 = vpop.xlane.xlu0 %3707  ;;  %v3726_v52 = vpack.c.b16 %v3725_v47, %v3724_v42  ;;  %v3567_v7 = vpop.xlane.xlu1 %3566  ;;  %v6629_v42 = vld [vmem:[%s7806_s18 + $0x78] sm:$0xff]  ;;  %v6628_v47 = vld [vmem:[%s7806_s18 + $0x70] sm:$0xff] }
 0xe2b   : > { %v6881_v53 = vpop.eup %6880  ;;  %v3710_v49 = vadd.f32 1e-30, %v3708_v25  ;;  %v3570_v40 = vpop.xlane.xlu2 %3569  ;;  %v3571_v58 = vadd.f32 1e-30, %v3567_v7  ;;  %3902 = vmatpush.bf16.msrb.mxu1 %v6629_v42  ;;  %v6626_v25 = vld [vmem:[%s7806_s18 + $0x60] sm:$0xff] }
 0xe2c   : > { %3727 = vrot.lane.b32.xlu0 %v3726_v52, %s7087_s17  ;;  %v3668_v37 = vmul.f32 %v6881_v53, %v6865_v10  ;;  %v6883_v1 = vpop.eup %6882  ;;  %v3572_v8 = vadd.f32 1e-30, %v3570_v40  ;;  %v6624_v52 = vld [vmem:[%s7806_s18 + $0x50] sm:$0xff] }
 0xe2d   : > { %6884 = vrcp.f32 %v3710_v49  ;;  %v3713_v9 = vmul.f32 %v6883_v1, %v6867_v16 }
 0xe2e   : > { %v3670_v56 = vpack.c.bf16 %v3668_v37, %v3668_v37  ;;  %6886 = vrcp.f32 %v3571_v58 }
 0xe2f   : > { %v3715_v62 = vpack.c.bf16 %v3713_v9, %v3713_v9  ;;  %6888 = vrcp.f32 %v3572_v8  ;;  %3903 = vmatpush.bf16.msrb.mxu1 %v6628_v47 }
 0xe30   : > { %v3732_v59 = vunpack.c.l.b16 %v3670_v56 }
 0xe31   : > { %v3738_v3 = vunpack.c.l.b16 %v3715_v62 }
 0xe32   : > { %v3733_v57 = vpack.c.b16 %v3732_v59, %v3731_v51 }
 0xe33   : > { %v6885_v61 = vpop.eup %6884  ;;  %3904 = vmatpush.bf16.msrb.mxu1 %v6627_v48  ;;  %v6931_v48 = vld [vmem:[%s8610_s16 + $0x8] sm:$0xff] }
 0xe34   : > { %3734 = vrot.lane.b32.xlu1 %v3733_v57, %s7086_s1  ;;  %v3714_v63 = vmul.f32 %v6885_v61, %v6873_v60  ;;  %v6887_v50 = vpop.eup %6886 }
 0xe35   : > { %v6889_v11 = vpop.eup %6888  ;;  %v3575_v10 = vmul.f32 %v6887_v50, %v8107_v19 }
 0xe36   : > { %v3716_v4 = vpack.c.bf16 %v3714_v63, %v3714_v63  ;;  %v3576_v13 = vmul.f32 %v6889_v11, %v8109_v0 }
 0xe37   : > { %v3577_v16 = vpack.c.bf16 %v3575_v10, %v3575_v10  ;;  %3905 = vmatpush.bf16.msrb.mxu1 %v6626_v25 }
 0xe38   : > { %v3739_v12 = vunpack.c.l.b16 %v3716_v4  ;;  %v3578_v17 = vpack.c.bf16 %v3576_v13, %v3576_v13 }
 0xe39   : > { %v3719_v18 = vunpack.c.l.b16 %v3577_v16 }
 0xe3a   : > { %v3740_v6 = vpack.c.b16 %v3739_v12, %v3738_v3  ;;  %v3720_v60 = vunpack.c.l.b16 %v3578_v17  ;;  %v6774_v17 = vld [vmem:[%s7789_s26 + $0x1] ss:$0 sm:$0xff] }
 0xe3c   : > { %3741 = vrot.lane.b32.xlu2 %v3740_v6, %s7088_s24  ;;  %v3721_v20 = vpack.c.b16 %v3720_v60, %v3719_v18 }
 0xe96   : > { %v3742_v26 = vpop.permute.xlu2 %3741 }
 0xe9e   : > { %v3728_v45 = vpop.permute.xlu0 %3727 }
 0xe9f   : > { %v3745_v23 = vsel %vm2134_vm8, %v3721_v20, %v3728_v45 }
 0xea6   : > { %v3735_v24 = vpop.permute.xlu1 %3734 }
 0xea7   : > { %v3747_v27 = vsel %vm2105_vm7, %v3745_v23, %v3735_v24 }
 0xea8   : > { %v3749_v28 = vsel %vm2318_vm9, %v3747_v27, %v3742_v26 }
 0xea9   : > { %6085 = vmatmul.msk.bf16.vlgmr.msra.gmra.mxu0 %vm2344_vm10, %v3749_v28 }
 0xf26   : > { %v3784_v19 = vpop.f32.mrf.mxu0 }
 0xf27   : > { %v3785_v31 = vadd.f32 %v6773_v29, %v3784_v19 }
 0xf29   : > { %v8127_v0 = vadd.f32 %v3785_v31, %v7960_v54 }
 0xf2b   : > { %3791 = vadd.xlane.f32.xlu0 %v8127_v0 }
 0xf2e   : > { %v3786_v30 = vpop.f32.mrf.mxu0 }
 0xf2f   : > { %v3787_v32 = vadd.f32 %v6773_v29, %v3786_v30 }
 0xf31   : > { %v8131_v34 = vadd.f32 %v3787_v32, %v7964_v5  ;;  %v6930_v32 = vld [vmem:[%s8610_s16] sm:$0xff] }
 0xf33   : > { %3793 = vadd.xlane.f32.xlu1 %v8131_v34 }
 0xf4c   : > { %3972 = vrot.lane.b32.xlu1 %v7673_v46, %s7084_s6 }
 0xf9e   : > { %v3792_v33 = vpop.xlane.xlu0 %3791 }
 0xf9f   : > { %v3795_v35 = vmul.f32 %v3792_v33, %v7388_v55 }
 0xfa1   : > { %v8138_v2 = vsub.f32 %v8127_v0, %v3795_v35 }
 0xfa3   : > { %v3799_v54 = vmul.f32 %v8138_v2, %v8138_v2 }
 0xfa5   : > { %3801 = vadd.xlane.f32.xlu2 %v3799_v54 }
 0xfa6   : > { %v3794_v44 = vpop.xlane.xlu1 %3793 }
 0xfa7   : > { %v3796_v5 = vmul.f32 %v3794_v44, %v7388_v55 }
 0xfa9   : > { %v8144_v36 = vsub.f32 %v8131_v34, %v3796_v5 }
 0xfab   : > { %v3800_v38 = vmul.f32 %v8144_v36, %v8144_v36 }
 0xfad   : > { %3803 = vadd.xlane.f32.xlu0 %v3800_v38 }
 0xfbd   : > { %4018 = vrot.lane.b32.xlu2 %v7673_v46, %s7085_s28 }
 0xfbe   : > { %v3973_v39 = vpop.permute.xlu1 %3972 }
 0xfbf   : > { %v3978_v41 = vsel %vm2105_vm7, %v3973_v39, 0 }
 0xfc0   : > { %3987 = vmatpush.bf16.xpose.msrb.mxu3 %v3978_v41 }
 0xfc1   : > { %4064 = vrot.lane.b32.xlu0 %v7673_v46, %s7086_s1  ;;  %v6623_v46 = vld [vmem:[%s7806_s18 + $0x48] sm:$0xff] }
 0xfc8   : > { %4170 = vmatpush.bf16.msra.mxu3 %v7686_v15  ;;  %v6625_v15 = vld [vmem:[%s7806_s18 + $0x58] sm:$0xff] }
 0xfc9   : > { %3906 = vmatpush.bf16.msrb.mxu1 %v6625_v15 }
 0xfcc   : > { %4171 = vmatpush.bf16.msra.mxu3 %v7721_v43  ;;  %v6622_v43 = vld [vmem:[%s7806_s18 + $0x40] sm:$0xff] }
 0xfcd   : > { %3907 = vmatpush.bf16.msrb.mxu1 %v6624_v52 }
 0xfd0   : > { %4172 = vmatpush.bf16.msra.mxu3 %v7688_v21 }
 0xfd1   : > { %3908 = vmatpush.bf16.msrb.mxu1 %v6623_v46 }
 0xfd4   : > { %4173 = vmatpush.bf16.msra.mxu3 %v7690_v22 }
 0xfd5   : > { %3909 = vmatpush.bf16.msrb.mxu1 %v6622_v43 }
0x1018   : > { %v3802_v53 = vpop.xlane.xlu2 %3801 }
0x1019   : > { %v3805_v21 = vmul.f32 %v3802_v53, %v7388_v55 }
0x101b   : > { %v3807_v22 = vadd.f32 1e-12, %v3805_v21 }
0x101d   : > { %6890 = vrsqrt.f32 %v3807_v22  ;;  %vm3815_vm2 = vweird.f32 %v3807_v22 }
0x1020   : > { %v4019_v49 = vpop.permute.xlu2 %4018  ;;  %v3804_v37 = vpop.xlane.xlu0 %3803 }
0x1021   : > { %v4024_v14 = vsel %vm2105_vm7, %v4019_v49, 0  ;;  %v3806_v1 = vmul.f32 %v3804_v37, %v7388_v55 }
0x1022   : > { %4033 = vmatpush.bf16.xpose.msrb.mxu0 %v4024_v14 }
0x1023   : > { %v6891_v56 = vpop.eup %6890  ;;  %v3808_v51 = vadd.f32 1e-12, %v3806_v1 }
0x1024   : > { %v3810_v59 = vmul.f32 %v6891_v56, %v3807_v22  ;;  %vm3816_vm1 = vweird.f32 %v6891_v56 }
0x1025   : > { %6892 = vrsqrt.f32 %v3808_v51  ;;  %vm3817_vm4 = vmor %vm3815_vm2, %vm3816_vm1  ;;  %vm3825_vm5 = vweird.f32 %v3808_v51 }
0x1026   : > { %v3811_v9 = vmul.f32 %v6891_v56, %v3810_v59 }
0x1028   : > { %v3812_v57 = vmul.f32 0.5, %v3811_v9 }
0x102a   : > { %v3813_v63 = vsub.f32 1.5, %v3812_v57 }
0x102b   : > { %v6893_v61 = vpop.eup %6892 }
0x102c   : > { %v3820_v62 = vmul.f32 %v6893_v61, %v3808_v51  ;;  %v3814_v3 = vmul.f32 %v6891_v56, %v3813_v63  ;;  %vm3826_vm3 = vweird.f32 %v6893_v61 }
0x102d   : > { %vm3827_vm6 = vmor %vm3825_vm5, %vm3826_vm3 }
0x102e   : > { %v3821_v4 = vmul.f32 %v6893_v61, %v3820_v62  ;;  %v3818_v40 = vsel %vm3817_vm4, %v6891_v56, %v3814_v3 }
0x102f   : > { %v3829_v11 = vmul.f32 %v3818_v40, %v8138_v2 }
0x1030   : > { %v3822_v12 = vmul.f32 0.5, %v3821_v4 }
0x1032   : > { %v3823_v6 = vsub.f32 1.5, %v3822_v12 }
0x1033   : > { %v4065_v7 = vpop.permute.xlu0 %4064 }
0x1034   : > { %v3824_v58 = vmul.f32 %v6893_v61, %v3823_v6  ;;  %v4070_v8 = vsel %vm2105_vm7, %v4065_v7, 0 }
0x1035   : > { %4079 = vmatpush.bf16.xpose.msra.mxu2 %v4070_v8 }
0x1036   : > { %v3828_v50 = vsel %vm3827_vm6, %v6893_v61, %v3824_v58 }
0x1037   : > { %v3830_v10 = vmul.f32 %v3828_v50, %v8144_v36 }
0x1039   : > { %v3831_v13 = vpack.c.bf16 %v3830_v10, %v3829_v11 }
0x103b   : > { %3910 = vmatmul.bf16.vlgmr.msrb.gmra.mxu1 %v3831_v13 }
0x10b8   : > { %v3911_v16 = vpop.f32.mrf.mxu1 }
0x10b9   : > { %v3912_v18 = vadd.f32 %v6774_v17, %v3911_v16 }
0x10bb   : > { %v3916_v45 = vpack.c.bf16 %v3912_v18, %v3912_v18 }
0x10bd   : > { %v3922_v24 = vunpack.c.l.b16 %v3916_v45 }
0x10c0   : > { %v3913_v60 = vpop.f32.mrf.mxu1 }
0x10c1   : > { %v3914_v20 = vadd.f32 %v6774_v17, %v3913_v60 }
0x10c3   : > { %v3917_v23 = vpack.c.bf16 %v3914_v20, %v3914_v20 }
0x10c5   : > { %v3923_v26 = vunpack.c.l.b16 %v3917_v23 }
0x10c7   : > { %v3924_v27 = vpack.c.b16 %v3923_v26, %v3922_v24 }
0x10c9   : > { %4016 = vrot.lane.b32.xlu2 %v3924_v27, %s7085_s28  ;;  %4062 = vrot.lane.b32.xlu1 %v3924_v27, %s7086_s1 }
0x10ca   : > { %3970 = vrot.lane.b32.xlu0 %v3924_v27, %s7084_s6  ;;  %6136 = vmatmul.msk.bf16.vlgmr.msrb.gmra.mxu2 %vm2105_vm7, %v3924_v27 }
0x1123   : > { %v4017_v28 = vpop.permute.xlu2 %4016 }
0x1124   : > { %6138 = vmatmul.msk.bf16.vlgmr.msrb.gmra.mxu0 %vm2105_vm7, %v4017_v28 }
0x113b   : > { %v4063_v29 = vpop.permute.xlu1 %4062 }
0x113c   : > { %v3971_v19 = vpop.permute.xlu0 %3970  ;;  %6139 = vmatmul.msk.bf16.vlgmr.msra.gmra.mxu2 %vm2105_vm7, %v4063_v29 }
0x113d   : > { %6137 = vmatmul.msk.bf16.vlgmr.msrb.gmra.mxu3 %vm2105_vm7, %v3971_v19 }
0x114d   : > { %v3943_v2 = vpop.f32.mrf.mxu2 }
0x114e   : > { %v3948_v46 = vmul.f32 0.17677669, %v3943_v2 }
0x1150   : > { %v3950_v1 = vadd.f32 %v6930_v32, %v3948_v46 }
0x1152   : > { %v3952_v61 = vmul.f32 1.442695, %v3950_v1 }
0x1155   : > { %v3945_v5 = vpop.f32.mrf.mxu2 }
0x1156   : > { %v3949_v63 = vmul.f32 0.17677669, %v3945_v5 }
0x1158   : > { %v3951_v6 = vadd.f32 %v6931_v48, %v3949_v63 }
0x115a   : > { %v3954_v8 = vmul.f32 1.442695, %v3951_v6 }
0x11a1   : > { %v4035_v31 = vpop.f32.mrf.mxu0 }
0x11a2   : > { %v4040_v30 = vmul.f32 0.17677669, %v4035_v31 }
0x11a4   : > { %v4042_v33 = vadd.f32 %v6930_v32, %v4040_v30 }
0x11a6   : > { %v4044_v35 = vmul.f32 1.442695, %v4042_v33 }
0x11a8   : > { %6894 = vpow2.f32 %v4044_v35 }
0x11a9   : > { %v4037_v36 = vpop.f32.mrf.mxu0 }
0x11aa   : > { %v4041_v41 = vmul.f32 0.17677669, %v4037_v36 }
0x11ac   : > { %v4043_v25 = vadd.f32 %v6931_v48, %v4041_v41 }
0x11ae   : > { %v8182_v54 = vpop.eup %6894  ;;  %v4046_v21 = vmul.f32 1.442695, %v4043_v25 }
0x11af   : > { %v4048_v44 = vsel %vm2134_vm8, %v8182_v54, 0.0 }
0x11b0   : > { %4049 = vadd.xlane.f32.xlu2 %v4048_v44 }
0x11bf   : > { %v4081_v38 = vpop.f32.mrf.mxu2 }
0x11c0   : > { %v3989_v39 = vpop.f32.mrf.mxu3  ;;  %v4086_v22 = vmul.f32 0.17677669, %v4081_v38 }
0x11c1   : > { %v3994_v42 = vmul.f32 0.17677669, %v3989_v39 }
0x11c2   : > { %v4088_v59 = vadd.f32 %v6930_v32, %v4086_v22 }
0x11c3   : > { %v3996_v47 = vadd.f32 %v6930_v32, %v3994_v42 }
0x11c4   : > { %v4090_v62 = vmul.f32 1.442695, %v4088_v59 }
0x11c5   : > { %v3998_v15 = vmul.f32 1.442695, %v3996_v47 }
0x11c7   : > { %6896 = vpow2.f32 %v3998_v15  ;;  %v4083_v52 = vpop.f32.mrf.mxu2 }
0x11c8   : > { %v3991_v43 = vpop.f32.mrf.mxu3  ;;  %v4087_v53 = vmul.f32 0.17677669, %v4083_v52  ;;  %6898 = vpow2.f32 %v4046_v21 }
0x11c9   : > { %v3995_v49 = vmul.f32 0.17677669, %v3991_v43 }
0x11ca   : > { %v4089_v37 = vadd.f32 %v6931_v48, %v4087_v53 }
0x11cb   : > { %v3997_v14 = vadd.f32 %v6931_v48, %v3995_v49 }
0x11cc   : > { %v4092_v56 = vmul.f32 1.442695, %v4089_v37 }
0x11cd   : > { %v6897_v51 = vpop.eup %6896  ;;  %v4000_v9 = vmul.f32 1.442695, %v3997_v14 }
0x11ce   : > { %6900 = vpow2.f32 %v4092_v56  ;;  %v4002_v57 = vsel %vm2134_vm8, %v6897_v51, 0.0  ;;  %v6899_v4 = vpop.eup %6898 }
0x11cf   : > { %6902 = vpow2.f32 %v4000_v9  ;;  %4003 = vadd.xlane.f32.xlu0 %v4002_v57  ;;  %v4051_v40 = vsel %vm2134_vm8, %v6899_v4, 0.0 }
0x11d0   : > { %6904 = vpow2.f32 %v3952_v61 }
0x11d1   : > { %6906 = vpow2.f32 %v4090_v62 }
0x11d2   : > { %6908 = vpow2.f32 %v3954_v8 }
0x11d4   : > { %v6901_v3 = vpop.eup %6900 }
0x11d5   : > { %v6903_v12 = vpop.eup %6902  ;;  %v4097_v7 = vsel %vm2134_vm8, %v6901_v3, 0.0 }
0x11d6   : > { %4098 = vadd.xlane.f32.xlu2 %v4097_v7  ;;  %v4005_v58 = vsel %vm2134_vm8, %v6903_v12, 0.0  ;;  %v8193_v50 = vpop.eup %6904 }
0x11d7   : > { %4052 = vadd.xlane.f32.xlu0 %v4051_v40  ;;  %4006 = vadd.xlane.f32.xlu1 %v4005_v58  ;;  %v6907_v11 = vpop.eup %6906  ;;  %v3956_v10 = vsel %vm2134_vm8, %v8193_v50, 0.0 }
0x11d8   : > { %v4094_v13 = vsel %vm2134_vm8, %v6907_v11, 0.0  ;;  %v6909_v16 = vpop.eup %6908 }
0x11d9   : > { %v3959_v17 = vsel %vm2134_vm8, %v6909_v16, 0.0 }
0x11df   : > { %3957 = vadd.xlane.f32.xlu0 %v3956_v10  ;;  %4095 = vadd.xlane.f32.xlu1 %v4094_v13 }
0x11e7   : > { %3960 = vadd.xlane.f32.xlu1 %v3959_v17  ;;  %v6775_v17 = vld [vmem:[%s7851_s0 + $0x1] ss:$0 sm:$0xff] }
0x1223   : > { %v4050_v18 = vpop.xlane.xlu2 %4049 }
0x1224   : > { %v4054_v45 = vadd.f32 1e-30, %v4050_v18 }
0x1226   : > { %6910 = vrcp.f32 %v4054_v45 }
0x122c   : > { %v6911_v19 = vpop.eup %6910 }
0x122d   : > { %v4058_v30 = vmul.f32 %v6911_v19, %v8182_v54 }
0x122f   : > { %v4060_v36 = vpack.c.bf16 %v4058_v30, %v4058_v30 }
0x1231   : > { %v4122_v48 = vunpack.c.l.b16 %v4060_v36 }
0x1242   : > { %v4004_v60 = vpop.xlane.xlu0 %4003 }
0x1243   : > { %v4008_v20 = vadd.f32 1e-30, %v4004_v60 }
0x1245   : > { %6912 = vrcp.f32 %v4008_v20 }
0x1249   : > { %v4099_v23 = vpop.xlane.xlu2 %4098 }
0x124a   : > { %v4053_v24 = vpop.xlane.xlu0 %4052  ;;  %v4007_v26 = vpop.xlane.xlu1 %4006  ;;  %v4101_v29 = vadd.f32 1e-30, %v4099_v23 }
0x124b   : > { %v4055_v27 = vadd.f32 1e-30, %v4053_v24  ;;  %v4009_v28 = vadd.f32 1e-30, %v4007_v26  ;;  %v6913_v31 = vpop.eup %6912 }
0x124c   : > { %v4012_v32 = vmul.f32 %v6913_v31, %v6897_v51 }
0x124d   : > { %6914 = vrcp.f32 %v4055_v27 }
0x124e   : > { %6916 = vrcp.f32 %v4009_v28  ;;  %v4014_v39 = vpack.c.bf16 %v4012_v32, %v4012_v32 }
0x124f   : > { %6918 = vrcp.f32 %v4101_v29 }
0x1250   : > { %v4115_v15 = vunpack.c.l.b16 %v4014_v39 }
0x1252   : > { %v4096_v33 = vpop.xlane.xlu1 %4095  ;;  %v3958_v51 = vpop.xlane.xlu0 %3957 }
0x1253   : > { %v6915_v35 = vpop.eup %6914  ;;  %v4100_v2 = vadd.f32 1e-30, %v4096_v33  ;;  %v3962_v9 = vadd.f32 1e-30, %v3958_v51 }
0x1254   : > { %v6917_v44 = vpop.eup %6916  ;;  %v4059_v5 = vmul.f32 %v6915_v35, %v6899_v4 }
0x1255   : > { %v4013_v38 = vmul.f32 %v6917_v44, %v6903_v12  ;;  %v6919_v41 = vpop.eup %6918  ;;  %6920 = vrcp.f32 %v4100_v2 }
0x1256   : > { %v4061_v42 = vpack.c.bf16 %v4059_v5, %v4059_v5  ;;  %v4105_v46 = vmul.f32 %v6919_v41, %v6901_v3 }
0x1257   : > { %v4015_v47 = vpack.c.bf16 %v4013_v38, %v4013_v38 }
0x1258   : > { %v4123_v25 = vunpack.c.l.b16 %v4061_v42  ;;  %v4107_v22 = vpack.c.bf16 %v4105_v46, %v4105_v46 }
0x1259   : > { %v4116_v52 = vunpack.c.l.b16 %v4015_v47 }
0x125a   : > { %v4124_v43 = vpack.c.b16 %v4123_v25, %v4122_v48  ;;  %v4130_v14 = vunpack.c.l.b16 %v4107_v22  ;;  %v3961_v56 = vpop.xlane.xlu1 %3960 }
0x125b   : > { %v4117_v54 = vpack.c.b16 %v4116_v52, %v4115_v15  ;;  %v6921_v53 = vpop.eup %6920  ;;  %v3963_v59 = vadd.f32 1e-30, %v3961_v56 }
0x125c   : > { %4125 = vrot.lane.b32.xlu0 %v4124_v43, %s7086_s1  ;;  %v4104_v21 = vmul.f32 %v6921_v53, %v6907_v11 }
0x125d   : > { %4118 = vrot.lane.b32.xlu2 %v4117_v54, %s7087_s17  ;;  %6922 = vrcp.f32 %v3963_v59 }
0x125e   : > { %v4106_v49 = vpack.c.bf16 %v4104_v21, %v4104_v21  ;;  %6924 = vrcp.f32 %v3962_v9 }
0x1260   : > { %v4129_v37 = vunpack.c.l.b16 %v4106_v49 }
0x1262   : > { %v4131_v1 = vpack.c.b16 %v4130_v14, %v4129_v37 }
0x1263   : > { %v6923_v57 = vpop.eup %6922 }
0x1264   : > { %4132 = vrot.lane.b32.xlu1 %v4131_v1, %s7088_s24  ;;  %v6925_v61 = vpop.eup %6924  ;;  %v3967_v63 = vmul.f32 %v6923_v57, %v6909_v16 }
0x1265   : > { %v3966_v62 = vmul.f32 %v6925_v61, %v8193_v50 }
0x1266   : > { %v3969_v4 = vpack.c.bf16 %v3967_v63, %v3967_v63 }
0x1267   : > { %v3968_v3 = vpack.c.bf16 %v3966_v62, %v3966_v62 }
0x1268   : > { %v4111_v12 = vunpack.c.l.b16 %v3969_v4 }
0x1269   : > { %v4110_v6 = vunpack.c.l.b16 %v3968_v3 }
0x126b   : > { %v4112_v40 = vpack.c.b16 %v4111_v12, %v4110_v6 }
0x12b7   : > { %v4119_v7 = vpop.permute.xlu2 %4118 }
0x12b8   : > { %v4136_v8 = vsel %vm2134_vm8, %v4112_v40, %v4119_v7 }
0x12ce   : > { %v4126_v58 = vpop.permute.xlu0 %4125 }
0x12cf   : > { %v4138_v11 = vsel %vm2105_vm7, %v4136_v8, %v4126_v58 }
0x12d6   : > { %v4133_v10 = vpop.permute.xlu1 %4132 }
0x12d7   : > { %v4140_v13 = vsel %vm2318_vm9, %v4138_v11, %v4133_v10 }
0x12d8   : > { %6140 = vmatmul.msk.bf16.vlgmr.msra.gmra.mxu3 %vm2344_vm10, %v4140_v13 }
0x135b   : > { %v4175_v16 = vpop.f32.mrf.mxu3 }
0x135c   : > { %v4176_v18 = vadd.f32 %v6775_v17, %v4175_v16 }
0x135e   : > { %v8210_v50 = vadd.f32 %v4176_v18, %v8127_v0 }
0x1362   : > { %4185 = sbr.rel (%p5137_p4) target bundleno = 4969 (0x1369), region = 128 }
0x1363   : > { %v4177_v60 = vpop.f32.mrf.mxu3 }
0x1364   : > { %v4178_v45 = vadd.f32 %v6775_v17, %v4177_v60 }
0x1366   : > { %v8213_v20 = vadd.f32 %v4178_v45, %v8131_v34 }
0x1367   : > { %4186 = vst [vmem:[#allocation2] sm:$0xff] %v8210_v50 }
0x1368   : > { %4187 = vst [vmem:[#allocation2 + $0x8] sm:$0xff] %v8213_v20 }
0x1369 PF: > { %p6142_p1 = scmp.ne.s32.totalorder %s7228_s5, 1 }
0x136a   : > { %s8612_s24 = sld [smem:[#allocation23_spill]] (!%p6142_p1) }
0x136b   : > { %4191 = sbr.rel (%p6142_p1) target bundleno = 6284 (0x188c), region = 132  ;;  %s8614_s28 = sld [smem:[#allocation24_spill]] (!%p6142_p1) }
0x136c   : > { %s8615_s23 = sld [smem:[#allocation25_spill]] (!%p6142_p1) }
0x136d   : > { %s8616_s5 = sld [smem:[#allocation27_spill]] (!%p6142_p1) }
0x136e   : > { %s8617_s27 = sld [smem:[#allocation28_spill]] (!%p6142_p1) }
0x136f   : > { %s8618_s21 = sld [smem:[#allocation29_spill]] (!%p6142_p1) }
0x1370   : > { %s8613_s18 = smov %s8612_s24  ;;  %v6651_v0 = vld [vmem:[%s8612_s24 + $0xac] sm:$0xf]  ;;  %v4192_v21 = vld [vmem:[#allocation2] sm:$0xff]  ;;  %s8619_s29 = sld [smem:[#allocation30_spill]] }
0x1371   : > { %v6231_v34 = vld [vmem:[%s8613_s18 + $0xb4] sm:$0xf0]  ;;  %v6648_v23 = vld [vmem:[%s8613_s18 + $0x94] sm:$0xf]  ;;  %v6219_v26 = vld [vmem:[%s8613_s18 + $0x9c] sm:$0xf0]  ;;  %v4194_v59 = vadd.f32 %v4192_v21, %v8210_v50 }
0x1372   : > { %v6234_v24 = vor.u32 %v6651_v0, %v6231_v34  ;;  %v6229_v27 = vld [vmem:[%s8613_s18 + $0xa8] sm:$0xf]  ;;  %v6222_v28 = vor.u32 %v6648_v23, %v6219_v26  ;;  %v6645_v29 = vld [vmem:[%s8613_s18 + $0x7c] sm:$0xf]  ;;  %v6652_v19 = vld [vmem:[%s8613_s18 + $0xb0] sm:$0xf0] }
0x1373   : > { %v6207_v31 = vld [vmem:[%s8613_s18 + $0x84] sm:$0xf0]  ;;  %v6230_v30 = vor.u32 %v6652_v19, %v6229_v27  ;;  %v6217_v32 = vld [vmem:[%s8613_s18 + $0x90] sm:$0xf]  ;;  %v6649_v33 = vld [vmem:[%s8613_s18 + $0x98] sm:$0xf0] }
0x1374   : > { %4381 = vmatpush.bf16.msra.mxu1 %v6234_v24  ;;  %v6218_v35 = vor.u32 %v6649_v33, %v6217_v32  ;;  %v6210_v2 = vor.u32 %v6645_v29, %v6207_v31  ;;  %v6205_v44 = vld [vmem:[%s8613_s18 + $0x78] sm:$0xf]  ;;  %v6646_v5 = vld [vmem:[%s8613_s18 + $0x80] sm:$0xf0]  ;;  %v6195_v38 = vld [vmem:[%s8613_s18 + $0x6c] sm:$0xf0] }
0x1375   : > { %4361 = vmatpush.bf16.msra.mxu0 %v6230_v30  ;;  %v6642_v36 = vld [vmem:[%s8613_s18 + $0x64] sm:$0xf]  ;;  %v6206_v39 = vor.u32 %v6646_v5, %v6205_v44  ;;  %v6193_v42 = vld [vmem:[%s8613_s18 + $0x60] sm:$0xf]  ;;  %v6643_v47 = vld [vmem:[%s8613_s18 + $0x68] sm:$0xf0] }
0x1376   : > { %v6198_v41 = vor.u32 %v6642_v36, %v6195_v38  ;;  %v6639_v48 = vld [vmem:[%s8613_s18 + $0x4c] sm:$0xf]  ;;  %v6183_v25 = vld [vmem:[%s8613_s18 + $0x54] sm:$0xf0]  ;;  %v6194_v15 = vor.u32 %v6643_v47, %v6193_v42  ;;  %v6181_v46 = vld [vmem:[%s8613_s18 + $0x48] sm:$0xf] }
0x1377   : > { %v6186_v52 = vor.u32 %v6639_v48, %v6183_v25  ;;  %v6640_v43 = vld [vmem:[%s8613_s18 + $0x50] sm:$0xf0]  ;;  %v6171_v53 = vld [vmem:[%s8613_s18 + $0x3c] sm:$0xf0]  ;;  %v4193_v37 = vld [vmem:[#allocation2 + $0x8] sm:$0xff]  ;;  %v4196_v12 = vmul.f32 0.5, %v4194_v59 }
0x1378   : > { %4382 = vmatpush.bf16.msra.mxu1 %v6222_v28  ;;  %v6636_v54 = vld [vmem:[%s8613_s18 + $0x34] sm:$0xf]  ;;  %v6182_v22 = vor.u32 %v6640_v43, %v6181_v46  ;;  %v6169_v14 = vld [vmem:[%s8613_s18 + $0x30] sm:$0xf]  ;;  %v6637_v1 = vld [vmem:[%s8613_s18 + $0x38] sm:$0xf0]  ;;  %v4195_v9 = vadd.f32 %v4193_v37, %v8213_v20  ;;  %v4199_v28 = vpack.c.bf16 %v4193_v37, %v4192_v21 }
0x1379   : > { %4362 = vmatpush.bf16.msra.mxu0 %v6218_v35  ;;  %v6174_v49 = vor.u32 %v6636_v54, %v6171_v53  ;;  %v6633_v56 = vld [vmem:[%s8613_s18 + $0x1c] sm:$0xf]  ;;  %v6159_v51 = vld [vmem:[%s8613_s18 + $0x24] sm:$0xf0]  ;;  %v6170_v57 = vor.u32 %v6637_v1, %v6169_v14  ;;  %v6157_v63 = vld [vmem:[%s8613_s18 + $0x18] sm:$0xf] }
0x137a   : > { %v6162_v61 = vor.u32 %v6633_v56, %v6159_v51  ;;  %v6634_v62 = vld [vmem:[%s8613_s18 + $0x20] sm:$0xf0]  ;;  %v6147_v3 = vld [vmem:[%s8613_s18 + $0xc] sm:$0xf0]  ;;  %v4197_v6 = vmul.f32 0.5, %v4195_v9 }
0x137b   : > { %v6630_v4 = vld [vmem:[%s8613_s18 + $0x4] sm:$0xf]  ;;  %v6158_v7 = vor.u32 %v6634_v62, %v6157_v63  ;;  %v6145_v58 = vld [vmem:[%s8613_s18] sm:$0xf]  ;;  %v6631_v8 = vld [vmem:[%s8613_s18 + $0x8] sm:$0xf0] }
0x137c   : > { %4383 = vmatpush.bf16.msra.mxu1 %v6210_v2  ;;  %v6150_v40 = vor.u32 %v6630_v4, %v6147_v3  ;;  %v4198_v11 = vpack.c.bf16 %v4197_v6, %v4196_v12  ;;  %v6146_v10 = vor.u32 %v6631_v8, %v6145_v58  ;;  %v6237_v13 = vld [vmem:[%s8613_s18 + $0xb0] sm:$0xf]  ;;  %v6653_v17 = vld [vmem:[%s8613_s18 + $0xb8] sm:$0xf0]  ;;  %v6225_v16 = vld [vmem:[%s8613_s18 + $0x98] sm:$0xf] }
0x137d   : > { %4363 = vmatpush.bf16.msra.mxu0 %v6206_v39  ;;  %v6238_v18 = vor.u32 %v6653_v17, %v6237_v13  ;;  %v6650_v60 = vld [vmem:[%s8613_s18 + $0xa0] sm:$0xf0]  ;;  %v6213_v0 = vld [vmem:[%s8613_s18 + $0x80] sm:$0xf]  ;;  %v6647_v34 = vld [vmem:[%s8613_s18 + $0x88] sm:$0xf0]  ;;  %v4200_v39 = vpack.c.bf16 %v8213_v20, %v8210_v50 }
0x137e   : > { %v6226_v45 = vor.u32 %v6650_v60, %v6225_v16  ;;  %v6214_v23 = vor.u32 %v6647_v34, %v6213_v0  ;;  %v6201_v24 = vld [vmem:[%s8613_s18 + $0x68] sm:$0xf]  ;;  %v6644_v26 = vld [vmem:[%s8613_s18 + $0x70] sm:$0xf0]  ;;  %v6189_v29 = vld [vmem:[%s8613_s18 + $0x50] sm:$0xf] }
0x137f   : > { %4403 = vmatpush.bf16.msra.mxu2 %v6238_v18  ;;  %v6202_v27 = vor.u32 %v6644_v26, %v6201_v24  ;;  %v6641_v19 = vld [vmem:[%s8613_s18 + $0x58] sm:$0xf0]  ;;  %v6177_v30 = vld [vmem:[%s8613_s18 + $0x38] sm:$0xf]  ;;  %v6638_v32 = vld [vmem:[%s8613_s18 + $0x40] sm:$0xf0] }
0x1380   : > { %4384 = vmatpush.bf16.msra.mxu1 %v6198_v41  ;;  %v6190_v31 = vor.u32 %v6641_v19, %v6189_v29  ;;  %v6178_v33 = vor.u32 %v6638_v32, %v6177_v30  ;;  %v6165_v35 = vld [vmem:[%s8613_s18 + $0x20] sm:$0xf]  ;;  %v6635_v2 = vld [vmem:[%s8613_s18 + $0x28] sm:$0xf0]  ;;  %v6153_v5 = vld [vmem:[%s8613_s18 + $0x8] sm:$0xf] }
0x1381   : > { %4364 = vmatpush.bf16.msra.mxu0 %v6194_v15  ;;  %v6166_v44 = vor.u32 %v6635_v2, %v6165_v35  ;;  %v6632_v36 = vld [vmem:[%s8613_s18 + $0x10] sm:$0xf0]  ;;  %v6289_v29 = vld [vmem:[%s8614_s28 + $0x60] sm:$0xf]  ;;  %v6281_v32 = vld [vmem:[%s8614_s28 + $0x50] sm:$0xf] }
0x1382   : > { %v6154_v38 = vor.u32 %v6632_v36, %v6153_v5 }
0x1383   : > { %4404 = vmatpush.bf16.msra.mxu2 %v6226_v45 }
0x1384   : > { %4385 = vmatpush.bf16.msra.mxu1 %v6186_v52 }
0x1385   : > { %4365 = vmatpush.bf16.msra.mxu0 %v6182_v22 }
0x1387   : > { %4405 = vmatpush.bf16.msra.mxu2 %v6214_v23 }
0x1388   : > { %4386 = vmatpush.bf16.msra.mxu1 %v6174_v49 }
0x1389   : > { %4366 = vmatpush.bf16.msra.mxu0 %v6170_v57 }
0x138b   : > { %4406 = vmatpush.bf16.msra.mxu2 %v6202_v27  ;;  %v6297_v27 = vld [vmem:[%s8614_s28 + $0x70] sm:$0xf] }
0x138c   : > { %4387 = vmatpush.bf16.msra.mxu1 %v6162_v61 }
0x138d   : > { %4367 = vmatpush.bf16.msra.mxu0 %v6158_v7 }
0x138f   : > { %4407 = vmatpush.bf16.msra.mxu2 %v6190_v31  ;;  %v6667_v31 = vld [vmem:[%s8614_s28 + $0x64] sm:$0xf0] }
0x1390   : > { %4388 = vmatpush.bf16.msra.mxu1 %v6150_v40  ;;  %v6290_v30 = vor.u32 %v6667_v31, %v6289_v29 }
0x1391   : > { %4368 = vmatpush.bf16.msra.mxu0 %v6146_v10 }
0x1393   : > { %4389 = vmatmul.bf16.vlgmr.msra.gmra.mxu1 %v4198_v11  ;;  %4408 = vmatpush.bf16.msra.mxu2 %v6178_v33  ;;  %v6665_v33 = vld [vmem:[%s8614_s28 + $0x54] sm:$0xf0] }
0x1394   : > { %4369 = vmatmul.bf16.vlgmr.msra.gmra.mxu0 %v4198_v11  ;;  %v6282_v35 = vor.u32 %v6665_v33, %v6281_v32  ;;  %v6677_v32 = vld [vmem:[#allocation7 + $0x38] sm:$0xff] }
0x1395   : > { %v6685_v33 = vld [vmem:[#allocation7 + $0x78] sm:$0xff]  ;;  %4768 = vmatpush.bf16.msrb.mxu0 %v6677_v32 }
0x1396   : > { %4782 = vmatpush.bf16.msrb.mxu1 %v6685_v33 }
0x1397   : > { %4409 = vmatpush.bf16.msra.mxu2 %v6166_v44 }
0x139b   : > { %4410 = vmatpush.bf16.msra.mxu2 %v6154_v38 }
0x139e   : > { %4411 = vmatmul.bf16.vlgmr.msra.gmra.mxu2 %v4198_v11 }
0x13a3   : > { %4392 = vmatmul.bf16.gmra.mxu1 %v4199_v28 }
0x13a4   : > { %4374 = vmatmul.bf16.gmra.mxu0 %v4199_v28 }
0x13ae   : > { %4414 = vmatmul.bf16.gmra.mxu2 %v4199_v28  ;;  %v6669_v28 = vld [vmem:[%s8614_s28 + $0x74] sm:$0xf0] }
0x13af   : > { %v6298_v19 = vor.u32 %v6669_v28, %v6297_v27 }
0x13b1   : > { %4602 = vmatpush.bf16.msra.mxu3 %v6298_v19 }
0x13b3   : > { %4397 = vmatmul.bf16.gmra.mxu1 %v4200_v39 }
0x13b4   : > { %4377 = vmatmul.bf16.gmra.mxu0 %v4200_v39 }
0x13b5   : > { %4603 = vmatpush.bf16.msra.mxu3 %v6290_v30 }
0x13b9   : > { %4604 = vmatpush.bf16.msra.mxu3 %v6282_v35 }
0x13be   : > { %4419 = vmatmul.bf16.gmra.mxu2 %v4200_v39 }
0x1410   : > { %v4390_v41 = vpop.f32.mrf.mxu1 }
0x1411   : > { %v4370_v42 = vpop.f32.mrf.mxu0 }
0x1418   : > { %v4391_v47 = vpop.f32.mrf.mxu1 }
0x1419   : > { %v4372_v48 = vpop.f32.mrf.mxu0  ;;  %v6273_v47 = vld [vmem:[%s8614_s28 + $0x40] sm:$0xf] }
0x1420   : > { %v4393_v25 = vpop.f32.mrf.mxu1 }
0x1421   : > { %v4425_v15 = vmul.f32 %v4393_v25, %v4370_v42  ;;  %v4375_v52 = vpop.f32.mrf.mxu0  ;;  %v4412_v22 = vpop.f32.mrf.mxu2 }
0x1422   : > { %v6661_v52 = vld [vmem:[%s8614_s28 + $0x34] sm:$0xf0]  ;;  %v6241_v22 = vld [vmem:[%s8614_s28] sm:$0xf] }
0x1423   : > { %4427 = vadd.xlane.f32.xlu0 %v4425_v15  ;;  %v6265_v15 = vld [vmem:[%s8614_s28 + $0x30] sm:$0xf] }
0x1428   : > { %v4395_v46 = vpop.f32.mrf.mxu1 }
0x1429   : > { %v4426_v43 = vmul.f32 %v4395_v46, %v4372_v48  ;;  %v4376_v54 = vpop.f32.mrf.mxu0  ;;  %v4413_v14 = vpop.f32.mrf.mxu2  ;;  %v6266_v46 = vor.u32 %v6661_v52, %v6265_v15 }
0x142a   : > { %v6659_v54 = vld [vmem:[%s8614_s28 + $0x24] sm:$0xf0]  ;;  %v6668_v14 = vld [vmem:[%s8614_s28 + $0x74] sm:$0xf] }
0x142b   : > { %4429 = vadd.xlane.f32.xlu0 %v4426_v43  ;;  %v6257_v43 = vld [vmem:[%s8614_s28 + $0x20] sm:$0xf] }
0x1430   : > { %v4398_v53 = vpop.f32.mrf.mxu1 }
0x1431   : > { %v4433_v50 = vmul.f32 %v4398_v53, %v4370_v42  ;;  %v4378_v20 = vpop.f32.mrf.mxu0  ;;  %v4415_v1 = vpop.f32.mrf.mxu2  ;;  %v6258_v53 = vor.u32 %v6659_v54, %v6257_v43 }
0x1432   : > { %v6657_v20 = vld [vmem:[%s8614_s28 + $0x14] sm:$0xf0] }
0x1433   : > { %4435 = vadd.xlane.f32.xlu1 %v4433_v50  ;;  %v6249_v50 = vld [vmem:[%s8614_s28 + $0x10] sm:$0xf] }
0x1438   : > { %v4400_v21 = vpop.f32.mrf.mxu1 }
0x1439   : > { %v4434_v49 = vmul.f32 %v4400_v21, %v4372_v48  ;;  %v4379_v37 = vpop.f32.mrf.mxu0  ;;  %v4417_v57 = vpop.f32.mrf.mxu2  ;;  %v6663_v48 = vld [vmem:[%s8614_s28 + $0x44] sm:$0xf0]  ;;  %v6250_v21 = vor.u32 %v6657_v20, %v6249_v50 }
0x143a   : > { %v6274_v25 = vor.u32 %v6663_v48, %v6273_v47  ;;  %v6675_v47 = vld [vmem:[#allocation7 + $0x28] sm:$0xff]  ;;  %v6673_v20 = vld [vmem:[#allocation7 + $0x18] sm:$0xff] }
0x143b   : > { %4437 = vadd.xlane.f32.xlu1 %v4434_v49  ;;  %v6655_v49 = vld [vmem:[%s8614_s28 + $0x4] sm:$0xf0]  ;;  %v6683_v48 = vld [vmem:[#allocation7 + $0x68] sm:$0xff] }
0x143c   : > { %4605 = vmatpush.bf16.msra.mxu3 %v6274_v25  ;;  %v6242_v37 = vor.u32 %v6655_v49, %v6241_v22  ;;  %v6682_v22 = vld [vmem:[#allocation7 + $0x60] sm:$0xff]  ;;  %v6681_v49 = vld [vmem:[#allocation7 + $0x58] sm:$0xff] }
0x1440   : > { %4606 = vmatpush.bf16.msra.mxu3 %v6266_v46  ;;  %v6674_v46 = vld [vmem:[#allocation7 + $0x20] sm:$0xff] }
0x1441   : > { %v4420_v8 = vpop.f32.mrf.mxu2 }
0x1444   : > { %4607 = vmatpush.bf16.msra.mxu3 %v6258_v53 }
0x1448   : > { %4608 = vmatpush.bf16.msra.mxu3 %v6250_v21  ;;  %v6672_v21 = vld [vmem:[#allocation7 + $0x10] sm:$0xff] }
0x1449   : > { %v4422_v34 = vpop.f32.mrf.mxu2 }
0x144c   : > { %4609 = vmatpush.bf16.msra.mxu3 %v6242_v37  ;;  %v6671_v37 = vld [vmem:[#allocation7 + $0x8] sm:$0xff] }
0x1496   : > { %v4428_v56 = vpop.xlane.xlu0 %4427 }
0x1497   : > { %v4431_v59 = vmul.f32 0.088388346, %v4428_v56 }
0x149e   : > { %v4430_v62 = vpop.xlane.xlu0 %4429 }
0x149f   : > { %v4432_v12 = vmul.f32 0.088388346, %v4430_v62  ;;  %v6662_v62 = vld [vmem:[%s8614_s28 + $0x44] sm:$0xf] }
0x14a6   : > { %v4436_v51 = vpop.xlane.xlu1 %4435 }
0x14a7   : > { %v4439_v9 = vmul.f32 0.088388346, %v4436_v51  ;;  %v6666_v51 = vld [vmem:[%s8614_s28 + $0x64] sm:$0xf] }
0x14a9   : > { %v4441_v61 = vsub.f32 %v4431_v59, %v4439_v9  ;;  %v6291_v59 = vld [vmem:[%s8614_s28 + $0x68] sm:$0xf0] }
0x14aa   : > { %v6294_v9 = vor.u32 %v6666_v51, %v6291_v59 }
0x14ab   : > { %v4443_v63 = vmul.f32 0.5, %v4441_v61  ;;  %v6283_v61 = vld [vmem:[%s8614_s28 + $0x58] sm:$0xf0] }
0x14ad   : > { %v4445_v4 = vadd.f32 0.5, %v4443_v63 }
0x14ae   : > { %v4438_v3 = vpop.xlane.xlu1 %4437 }
0x14af   : > { %v4447_v6 = vmax.f32 %v4445_v4, 0.0  ;;  %v4440_v7 = vmul.f32 0.088388346, %v4438_v3  ;;  %v6275_v4 = vld [vmem:[%s8614_s28 + $0x48] sm:$0xf0] }
0x14b0   : > { %v6278_v3 = vor.u32 %v6662_v62, %v6275_v4 }
0x14b1   : > { %v4449_v40 = vmin.f32 %v4447_v6, 1.0  ;;  %v4442_v58 = vsub.f32 %v4432_v12, %v4440_v7  ;;  %v6660_v7 = vld [vmem:[%s8614_s28 + $0x34] sm:$0xf] }
0x14b3   : > { %v4453_v11 = vsub.f32 1.0, %v4449_v40  ;;  %v4444_v10 = vmul.f32 0.5, %v4442_v58  ;;  %v4451_v13 = vmul.f32 %v4449_v40, %v4415_v1  ;;  %v6299_v1 = vld [vmem:[%s8614_s28 + $0x78] sm:$0xf0] }
0x14b4   : > { %v6302_v56 = vor.u32 %v6668_v14, %v6299_v1  ;;  %v6267_v40 = vld [vmem:[%s8614_s28 + $0x38] sm:$0xf0]  ;;  %v6670_v14 = vld [vmem:[#allocation7] sm:$0xff]  ;;  %v6680_v1 = vld [vmem:[#allocation7 + $0x50] sm:$0xff] }
0x14b5   : > { %v4455_v17 = vmul.f32 %v4453_v11, %v4420_v8  ;;  %v4446_v16 = vadd.f32 0.5, %v4444_v10  ;;  %v6270_v58 = vor.u32 %v6660_v7, %v6267_v40  ;;  %v6658_v11 = vld [vmem:[%s8614_s28 + $0x24] sm:$0xf]  ;;  %v6259_v10 = vld [vmem:[%s8614_s28 + $0x28] sm:$0xf0] }
0x14b6   : > { %4616 = vmatpush.bf16.msrb.mxu3 %v6302_v56  ;;  %v4516_v56 = vld [vmem:[%s8615_s23] sm:$0x3] }
0x14b7   : > { %v8368_v18 = vadd.f32 %v4455_v17, %v4451_v13  ;;  %v4448_v60 = vmax.f32 %v4446_v16, 0.0  ;;  %v6262_v13 = vor.u32 %v6658_v11, %v6259_v10  ;;  %v6656_v17 = vld [vmem:[%s8614_s28 + $0x14] sm:$0xf]  ;;  %v6251_v16 = vld [vmem:[%s8614_s28 + $0x18] sm:$0xf0]  ;;  %v4518_v59 = vperm.slane %v4516_v56, 0 }
0x14b9   : > { %v4450_v45 = vmin.f32 %v4448_v60, 1.0  ;;  %4459 = vadd.xlane.f32.xlu2 %v8368_v18 }
0x14ba   : > { %4617 = vmatpush.bf16.msrb.mxu3 %v6294_v9 }
0x14bb   : > { %v4454_v0 = vsub.f32 1.0, %v4450_v45  ;;  %v4452_v23 = vmul.f32 %v4450_v45, %v4417_v57  ;;  %v6664_v57 = vld [vmem:[%s8614_s28 + $0x54] sm:$0xf]  ;;  %v6254_v45 = vor.u32 %v6656_v17, %v6251_v16 }
0x14bc   : > { %v6286_v63 = vor.u32 %v6664_v57, %v6283_v61 }
0x14bd   : > { %v4456_v24 = vmul.f32 %v4454_v0, %v4422_v34  ;;  %v6654_v34 = vld [vmem:[%s8614_s28 + $0x4] sm:$0xf] }
0x14be   : > { %4618 = vmatpush.bf16.msrb.mxu3 %v6286_v63 }
0x14bf   : > { %v8371_v26 = vadd.f32 %v4456_v24, %v4452_v23  ;;  %v6243_v23 = vld [vmem:[%s8614_s28 + $0x8] sm:$0xf0] }
0x14c0   : > { %v6246_v29 = vor.u32 %v6654_v34, %v6243_v23 }
0x14c1   : > { %4461 = vadd.xlane.f32.xlu2 %v8371_v26 }
0x14c2   : > { %4619 = vmatpush.bf16.msrb.mxu3 %v6278_v3 }
0x14c6   : > { %4620 = vmatpush.bf16.msrb.mxu3 %v6270_v58 }
0x14ca   : > { %4621 = vmatpush.bf16.msrb.mxu3 %v6262_v13  ;;  %v6932_v13 = vld [vmem:[%s8616_s5] ss:$0 sm:$0xff] }
0x14ce   : > { %4622 = vmatpush.bf16.msrb.mxu3 %v6254_v45 }
0x14d2   : > { %4623 = vmatpush.bf16.msrb.mxu3 %v6246_v29  ;;  %v6692_v29 = vld [vmem:[%s8617_s27 + $0x30] sm:$0xff] }
0x152c   : > { %v4460_v2 = vpop.xlane.xlu2 %4459 }
0x152d   : > { %v4463_v44 = vmul.f32 %v4460_v2, %v7388_v55 }
0x152f   : > { %v8394_v5 = vsub.f32 %v8368_v18, %v4463_v44  ;;  %v6676_v44 = vld [vmem:[#allocation7 + $0x30] sm:$0xff] }
0x1530   : > { %4769 = vmatpush.bf16.msrb.mxu0 %v6676_v44  ;;  %v6690_v44 = vld [vmem:[%s8617_s27 + $0x20] sm:$0xff] }
0x1531   : > { %v4467_v36 = vmul.f32 %v8394_v5, %v8394_v5 }
0x1533   : > { %4469 = vadd.xlane.f32.xlu0 %v4467_v36  ;;  %v6684_v36 = vld [vmem:[#allocation7 + $0x70] sm:$0xff] }
0x1534   : > { %v4462_v38 = vpop.xlane.xlu2 %4461  ;;  %4783 = vmatpush.bf16.msrb.mxu1 %v6684_v36  ;;  %4770 = vmatpush.bf16.msrb.mxu0 %v6675_v47  ;;  %v6689_v36 = vld [vmem:[%s8617_s27 + $0x18] sm:$0xff] }
0x1535   : > { %v4464_v39 = vmul.f32 %v4462_v38, %v7388_v55 }
0x1537   : > { %v8400_v41 = vsub.f32 %v8371_v26, %v4464_v39 }
0x1538   : > { %4784 = vmatpush.bf16.msrb.mxu1 %v6683_v48  ;;  %4771 = vmatpush.bf16.msrb.mxu0 %v6674_v46 }
0x1539   : > { %v4468_v42 = vmul.f32 %v8400_v41, %v8400_v41 }
0x153b   : > { %4471 = vadd.xlane.f32.xlu1 %v4468_v42 }
0x153c   : > { %4772 = vmatpush.bf16.msrb.mxu0 %v6673_v20  ;;  %4785 = vmatpush.bf16.msrb.mxu1 %v6682_v22 }
0x1540   : > { %4773 = vmatpush.bf16.msrb.mxu0 %v6672_v21  ;;  %4786 = vmatpush.bf16.msrb.mxu1 %v6681_v49 }
0x1544   : > { %4774 = vmatpush.bf16.msrb.mxu0 %v6671_v37  ;;  %4787 = vmatpush.bf16.msrb.mxu1 %v6680_v1 }
0x1548   : > { %4775 = vmatpush.bf16.msrb.mxu0 %v6670_v14 }
0x15a6   : > { %v4470_v12 = vpop.xlane.xlu0 %4469 }
0x15a7   : > { %v4473_v6 = vmul.f32 %v4470_v12, %v7388_v55  ;;  %v4519_v12 = vperm.slane %v4516_v56, 1 }
0x15a9   : > { %v4475_v8 = vadd.f32 1e-12, %v4473_v6 }
0x15ab   : > { %6934 = vrsqrt.f32 %v4475_v8  ;;  %vm4483_vm8 = vweird.f32 %v4475_v8 }
0x15ae   : > { %v4472_v60 = vpop.xlane.xlu1 %4471 }
0x15af   : > { %v4474_v0 = vmul.f32 %v4472_v60, %v7388_v55 }
0x15b1   : > { %v6935_v24 = vpop.eup %6934  ;;  %v4476_v27 = vadd.f32 1e-12, %v4474_v0 }
0x15b2   : > { %v4478_v28 = vmul.f32 %v6935_v24, %v4475_v8  ;;  %vm4484_vm7 = vweird.f32 %v6935_v24 }
0x15b3   : > { %6936 = vrsqrt.f32 %v4476_v27  ;;  %vm4485_vm10 = vmor %vm4483_vm8, %vm4484_vm7  ;;  %vm4493_vm11 = vweird.f32 %v4476_v27 }
0x15b4   : > { %v4479_v19 = vmul.f32 %v6935_v24, %v4478_v28  ;;  %v6693_v28 = vld [vmem:[%s8617_s27 + $0x38] sm:$0xff] }
0x15b5   : > { %4907 = vmatpush.bf16.msrb.mxu2 %v6693_v28 }
0x15b6   : > { %v4480_v31 = vmul.f32 0.5, %v4479_v19 }
0x15b8   : > { %v4481_v35 = vsub.f32 1.5, %v4480_v31 }
0x15b9   : > { %v6937_v30 = vpop.eup %6936  ;;  %4908 = vmatpush.bf16.msrb.mxu2 %v6692_v29 }
0x15ba   : > { %v4488_v2 = vmul.f32 %v6937_v30, %v4476_v27  ;;  %v4482_v42 = vmul.f32 %v6935_v24, %v4481_v35  ;;  %vm4494_vm9 = vweird.f32 %v6937_v30 }
0x15bb   : > { %vm4495_vm12 = vmor %vm4493_vm11, %vm4494_vm9 }
0x15bc   : > { %v4489_v38 = vmul.f32 %v6937_v30, %v4488_v2  ;;  %v4486_v15 = vsel %vm4485_vm10, %v6935_v24, %v4482_v42  ;;  %v6686_v42 = vld [vmem:[%s8617_s27] sm:$0xff] }
0x15bd   : > { %v4497_v54 = vmul.f32 %v4486_v15, %v8394_v5  ;;  %v6679_v5 = vld [vmem:[#allocation7 + $0x48] sm:$0xff] }
0x15be   : > { %v4490_v39 = vmul.f32 0.5, %v4489_v38  ;;  %4788 = vmatpush.bf16.msrb.mxu1 %v6679_v5  ;;  %v6688_v38 = vld [vmem:[%s8617_s27 + $0x10] sm:$0xff] }
0x15c0   : > { %v4491_v25 = vsub.f32 1.5, %v4490_v39  ;;  %v6687_v39 = vld [vmem:[%s8617_s27 + $0x8] sm:$0xff] }
0x15c2   : > { %v4492_v52 = vmul.f32 %v6937_v30, %v4491_v25 }
0x15c4   : > { %v4496_v43 = vsel %vm4495_vm12, %v6937_v30, %v4492_v52 }
0x15c5   : > { %v4498_v53 = vmul.f32 %v4496_v43, %v8400_v41  ;;  %v6678_v41 = vld [vmem:[#allocation7 + $0x40] sm:$0xff] }
0x15c6   : > { %4789 = vmatpush.bf16.msrb.mxu1 %v6678_v41 }
0x15c7   : > { %v4499_v50 = vpack.c.bf16 %v4498_v53, %v4497_v54 }
0x15c9   : > { %4610 = vmatmul.bf16.vlgmr.msra.gmra.mxu3 %v4499_v50 }
0x15d9   : > { %4624 = vmatmul.bf16.vlgmr.msrb.gmra.mxu3 %v4499_v50 }
0x164c   : > { %v4611_v51 = vpop.f32.mrf.mxu3 }
0x164d   : > { %v4612_v9 = vadd.f32 %v4611_v51, %v4518_v59 }
0x164f   : > { %v4630_v63 = vmax.f32 %v4612_v9, 0.0  ;;  %v6933_v9 = vld [vmem:[%s8618_s21] ss:$0 sm:$0xff] }
0x1654   : > { %v4613_v57 = vpop.f32.mrf.mxu3 }
0x1655   : > { %v4614_v61 = vadd.f32 %v4613_v57, %v4518_v59 }
0x1657   : > { %v4632_v62 = vmax.f32 %v4614_v61, 0.0 }
0x1659   : > { %v4634_v4 = vpack.c.bf16 %v4632_v62, %v4630_v63 }
0x165b   : > { %4776 = vmatmul.bf16.vlgmr.msrb.gmra.mxu0 %v4634_v4 }
0x165c   : > { %v4625_v3 = vpop.f32.mrf.mxu3 }
0x165d   : > { %v4626_v6 = vadd.f32 %v4625_v3, %v4519_v12 }
0x165f   : > { %v4631_v58 = vmax.f32 %v4626_v6, 0.0 }
0x1664   : > { %v4627_v7 = vpop.f32.mrf.mxu3 }
0x1665   : > { %v4628_v40 = vadd.f32 %v4627_v7, %v4519_v12 }
0x1667   : > { %v4633_v8 = vmax.f32 %v4628_v40, 0.0 }
0x1669   : > { %v4635_v11 = vpack.c.bf16 %v4633_v8, %v4631_v58 }
0x166b   : > { %4790 = vmatmul.bf16.vlgmr.msrb.gmra.mxu1 %v4635_v11 }
0x16d8   : > { %v4777_v10 = vpop.f32.mrf.mxu0 }
0x16d9   : > { %v4778_v17 = vadd.f32 %v6932_v13, %v4777_v10 }
0x16e0   : > { %v4779_v0 = vpop.f32.mrf.mxu0 }
0x16e1   : > { %v4780_v34 = vadd.f32 %v6932_v13, %v4779_v0 }
0x16e8   : > { %v4791_v16 = vpop.f32.mrf.mxu1 }
0x16e9   : > { %v4792_v60 = vadd.f32 %v4791_v16, %v4778_v17 }
0x16eb   : > { %v4796_v45 = vadd.f32 %v4792_v60, %v8368_v18  ;;  %v6691_v18 = vld [vmem:[%s8617_s27 + $0x28] sm:$0xff] }
0x16ec   : > { %4909 = vmatpush.bf16.msrb.mxu2 %v6691_v18 }
0x16ed   : > { %4798 = vadd.xlane.f32.xlu2 %v4796_v45 }
0x16f0   : > { %v4793_v23 = vpop.f32.mrf.mxu1  ;;  %4910 = vmatpush.bf16.msrb.mxu2 %v6690_v44 }
0x16f1   : > { %v4794_v24 = vadd.f32 %v4793_v23, %v4780_v34 }
0x16f3   : > { %v4797_v27 = vadd.f32 %v4794_v24, %v8371_v26 }
0x16f4   : > { %4911 = vmatpush.bf16.msrb.mxu2 %v6689_v36 }
0x16f5   : > { %4800 = vadd.xlane.f32.xlu0 %v4797_v27 }
0x16f8   : > { %4912 = vmatpush.bf16.msrb.mxu2 %v6688_v38 }
0x16fc   : > { %4913 = vmatpush.bf16.msrb.mxu2 %v6687_v39 }
0x1700   : > { %4914 = vmatpush.bf16.msrb.mxu2 %v6686_v42 }
0x1760   : > { %v4799_v19 = vpop.xlane.xlu2 %4798 }
0x1761   : > { %v4802_v31 = vmul.f32 %v4799_v19, %v7388_v55 }
0x1763   : > { %v4804_v26 = vsub.f32 %v4796_v45, %v4802_v31 }
0x1765   : > { %v4806_v30 = vmul.f32 %v4804_v26, %v4804_v26 }
0x1767   : > { %4808 = vadd.xlane.f32.xlu1 %v4806_v30 }
0x1768   : > { %v4801_v32 = vpop.xlane.xlu0 %4800 }
0x1769   : > { %v4803_v33 = vmul.f32 %v4801_v32, %v7388_v55 }
0x176b   : > { %v4805_v35 = vsub.f32 %v4797_v27, %v4803_v33 }
0x176d   : > { %v4807_v2 = vmul.f32 %v4805_v35, %v4805_v35 }
0x176f   : > { %4810 = vadd.xlane.f32.xlu2 %v4807_v2 }
0x17da   : > { %v4809_v47 = vpop.xlane.xlu1 %4808 }
0x17db   : > { %v4812_v48 = vmul.f32 %v4809_v47, %v7388_v55 }
0x17dd   : > { %v4814_v25 = vadd.f32 1e-12, %v4812_v48 }
0x17df   : > { %6938 = vrsqrt.f32 %v4814_v25  ;;  %vm4822_vm14 = vweird.f32 %v4814_v25 }
0x17e2   : > { %v4811_v15 = vpop.xlane.xlu2 %4810 }
0x17e3   : > { %v4813_v52 = vmul.f32 %v4811_v15, %v7388_v55 }
0x17e5   : > { %v6939_v46 = vpop.eup %6938  ;;  %v4815_v43 = vadd.f32 1e-12, %v4813_v52 }
0x17e6   : > { %v4817_v54 = vmul.f32 %v6939_v46, %v4814_v25  ;;  %vm4823_vm13 = vweird.f32 %v6939_v46 }
0x17e7   : > { %6940 = vrsqrt.f32 %v4815_v43  ;;  %vm4824_vm0 = vmor %vm4822_vm14, %vm4823_vm13  ;;  %vm4832_vm1 = vweird.f32 %v4815_v43 }
0x17e8   : > { %v4818_v53 = vmul.f32 %v6939_v46, %v4817_v54 }
0x17ea   : > { %v4819_v50 = vmul.f32 0.5, %v4818_v53 }
0x17ec   : > { %v4820_v21 = vsub.f32 1.5, %v4819_v50 }
0x17ed   : > { %v6941_v20 = vpop.eup %6940 }
0x17ee   : > { %v4827_v22 = vmul.f32 %v6941_v20, %v4815_v43  ;;  %v4821_v37 = vmul.f32 %v6939_v46, %v4820_v21  ;;  %vm4833_vm15 = vweird.f32 %v6941_v20 }
0x17ef   : > { %vm4834_vm2 = vmor %vm4832_vm1, %vm4833_vm15 }
0x17f0   : > { %v4828_v49 = vmul.f32 %v6941_v20, %v4827_v22  ;;  %v4825_v55 = vsel %vm4824_vm0, %v6939_v46, %v4821_v37 }
0x17f1   : > { %v4836_v56 = vmul.f32 %v4825_v55, %v4804_v26 }
0x17f2   : > { %v4829_v14 = vmul.f32 0.5, %v4828_v49 }
0x17f4   : > { %v4830_v1 = vsub.f32 1.5, %v4829_v14 }
0x17f6   : > { %v4831_v5 = vmul.f32 %v6941_v20, %v4830_v1 }
0x17f8   : > { %v4835_v41 = vsel %vm4834_vm2, %v6941_v20, %v4831_v5 }
0x17f9   : > { %v4837_v51 = vmul.f32 %v4835_v41, %v4805_v35 }
0x17fb   : > { %v4838_v59 = vpack.c.bf16 %v4837_v51, %v4836_v56 }
0x17fd   : > { %4915 = vmatmul.bf16.vlgmr.msrb.gmra.mxu2 %v4838_v59 }
0x1880   : > { %v4916_v57 = vpop.f32.mrf.mxu2 }
0x1881   : > { %v4917_v61 = vadd.f32 %v6933_v9, %v4916_v57 }
0x1883   : > { %4921 = vst [vmem:[%s8619_s29] sm:$0xff] %v4917_v61 }
0x1888   : > { %v4918_v63 = vpop.f32.mrf.mxu2 }
0x1889   : > { %v4919_v62 = vadd.f32 %v6933_v9, %v4918_v63 }
0x188b   : > { %4922 = vst [vmem:[%s8619_s29 + $0x8] sm:$0xff] %v4919_v62 }
0x188c PF: > { %s8620_s25 = sld [smem:[#allocation12_spill]]  ;;  %s8623_s4 = smov %s7066_s30 }
0x188d   : > { %s8621_s6 = sld [smem:[#allocation11_spill]] }
0x188e   : > { %s8622_s24 = sld [smem:[#allocation13_spill]] }
0x1892   : > { %p36_p4 = scmp.ge.s32.totalorder %s8620_s25, 4  }
0x1893   : > { %s8624_s30 = smov %s8621_s6 }
0x1894   :  { %38 = sbr.rel (!%p36_p4) target bundleno = 23 (0x17), region = 215 }
0x1899   :  { %4934 = vsyncpa [#allocation4], 1 }
0x189a   :  { %4936 = vsyncpa [#allocation4 + $0x1], 1 }
0x189b   :  { %4937 = vsyncpa [#allocation6], 1 }
0x189c   :  { %4939 = vsyncpa [#allocation6 + $0x1], 1 }

</bundles_post_ra>
